<compile_context>
chip_gen: v7x
topology: tpu7x:2x2x1
jax: 0.10.0
libtpu: 0.0.40
codegen_flags: <defaults>
</compile_context>

<pallas_src>
import math
import jax
import jax.numpy as jnp
from jax.experimental import pallas as pl
from jax.experimental.pallas import tpu as pltpu  # noqa: F401  (kept for TPU-specific tuning hooks)

# ----------------------- small, module-consistent config ---------------------
B = 2             # batch
C = 3             # image channels
IMG = 16          # image size
P = 8             # patch size
NPATCH = (IMG // P) ** 2       # 4 patches
S = NPATCH + 1                 # 5 tokens (CLS + patches)
BS = B * S                     # batch folded into token axis inside the kernel
D = 32            # hidden size
NH = 2            # attention heads
HD = D // NH      # head dim
FF = 64           # MLP intermediate size
NL = 2            # encoder layers
LN_EPS = 1e-12    # HF ViT layer_norm_eps

POOL_INT = 64     # GatedAttentionPooler int_dim
POOL_H = 1        # pooler heads
POOL_OUT = D * POOL_H          # out_dim=None -> out_proj = Identity
CLS_HID = POOL_OUT // 2
NCLS = 19

assert POOL_H == 1, "kernel assumes out_proj=Identity / single pooler head"


# ----------------------- shared math helpers ---------------------------------
def _layernorm(x, w, b):
    mu = jnp.mean(x, axis=-1, keepdims=True)
    var = jnp.mean(jnp.square(x - mu), axis=-1, keepdims=True)
    return (x - mu) * jax.lax.rsqrt(var + LN_EPS) * w + b


def _gelu(x):
    # TODO(synk): PyTorch nn.GELU / HF ViT use the exact erf GELU; the tanh
    # approximation is used here (no guaranteed erf lowering in Mosaic).
    c = math.sqrt(2.0 / math.pi)
    return 0.5 * x * (1.0 + jnp.tanh(c * (x + 0.044715 * x * x * x)))


# in-kernel variants: divide -> EUP approximate reciprocal (free slot next to exp/tanh)
def _softmax_k(x, axis):
    m = jnp.max(x, axis=axis, keepdims=True)
    e = jnp.exp(x - m)
    return e * pl.reciprocal(jnp.sum(e, axis=axis, keepdims=True), approx=True)


def _sigmoid_k(x):
    return pl.reciprocal(1.0 + jnp.exp(-x), approx=True)


# plain-JAX variants for the pure-JAX reference
def _softmax(x, axis):
    m = jnp.max(x, axis=axis, keepdims=True)
    e = jnp.exp(x - m)
    return e / jnp.sum(e, axis=axis, keepdims=True)


def _sigmoid(x):
    return 1.0 / (1.0 + jnp.exp(-x))


# ------------------------------- fused Pallas kernel -------------------------
def fused_vit_pool_kernel(
        # inputs
        patches_ref, patch_w_ref, patch_b_ref, cls_ref, pos_ref,
        ln1w_ref, ln1b_ref, wqkv_ref, bqkv_ref, wo_ref, bo_ref,
        ln2w_ref, ln2b_ref, w1_ref, b1_ref, w2_ref, b2_ref,
        flnw_ref, flnb_ref,
        pwv_ref, pbv_ref, pwu_ref, pbu_ref, pwa_ref, pba_ref,
        cw1_ref, cb1_ref, cw2_ref, cb2_ref,
        # outputs
        hs_ref, attn_ref, last_ref, pooled_ref, pattn_ref, probs_ref):
    scale = 1.0 / math.sqrt(HD)

    # ---- patch embedding + CLS token + position embeddings -----------------
    # All batches' patches in one matmul: (B*NPATCH, C*P*P) @ (C*P*P, D).
    patches = patches_ref[...].reshape(B * NPATCH, C * P * P)
    tok = jnp.dot(patches, patch_w_ref[...],
                  preferred_element_type=jnp.float32) + patch_b_ref[0]   # (B*NPATCH, D)
    cls_row = cls_ref[0]                       # (1, D)
    pos = pos_ref[0]                           # (S, D)

    parts = []
    for b in range(B):
        parts.append(cls_row)
        parts.append(tok[b * NPATCH:(b + 1) * NPATCH, :])
    x = jnp.concatenate(parts, axis=0)                       # (B*S, D) flat token layout
    x = x + jnp.concatenate([pos] * B, axis=0)               # pos broadcast over batch
    hs_ref[0] = x.reshape(B, S, D)                           # hidden_states[0]

    # ---- transformer encoder: static layer loop, batch folded into rows ----
    for l in range(NL):
        ln1w, ln1b = ln1w_ref[l], ln1b_ref[l]
        wqkv, bqkv = wqkv_ref[l], bqkv_ref[l]
        wo, bo = wo_ref[l], bo_ref[l]
        ln2w, ln2b = ln2w_ref[l], ln2b_ref[l]
        w1, b1 = w1_ref[l], b1_ref[l]
        w2, b2 = w2_ref[l], b2_ref[l]

        h = _layernorm(x, ln1w, ln1b)                                    # (B*S, D)
        qkv = jnp.dot(h, wqkv,
                      preferred_element_type=jnp.float32) + bqkv        # (B*S, 3D) fused QKV

        attn_out = bo                                                    # (D,), broadcasts
        head_ps = []
        for hh in range(NH):
            # static lane slices of the 2-D qkv, then no-op leading-dim split
            q = qkv[:, hh * HD:(hh + 1) * HD].reshape(B, S, HD)
            k = qkv[:, D + hh * HD:D + (hh + 1) * HD].reshape(B, S, HD)
            v = qkv[:, 2 * D + hh * HD:2 * D + (hh + 1) * HD].reshape(B, S, HD)
            s = jnp.einsum('bqd,bkd->bqk', q, k,
                           preferred_element_type=jnp.float32) * scale   # (B, S, S)
            p = _softmax_k(s, axis=-1)
            head_ps.append(p)
            ctx = jnp.einsum('bqk,bkd->bqd', p, v,
                             preferred_element_type=jnp.float32)         # (B, S, HD)
            # Per-head 8-aligned row-slice of Wo keeps the fused-QKV win while
            # avoiding a lane-unaligned concat of head contexts.
            attn_out = attn_out + jnp.dot(ctx.reshape(B * S, HD),
                                          wo[hh * HD:(hh + 1) * HD, :],
                                          preferred_element_type=jnp.float32)
        attn_ref[l] = jnp.stack(head_ps, axis=1)              # (B, NH, S, S) coalesced store

        x = x + attn_out                                      # residual
        h2 = _layernorm(x, ln2w, ln2b)
        up = _gelu(jnp.dot(h2, w1, preferred_element_type=jnp.float32) + b1)   # (B*S, FF)
        x = x + jnp.dot(up, w2, preferred_element_type=jnp.float32) + b2       # residual
        hs_ref[l + 1] = x.reshape(B, S, D)

    # ---- final LayerNorm + gated-attention pooler + classifier -------------
    last = _layernorm(x, flnw_ref[0], flnb_ref[0])            # (B*S, D)
    last_ref[...] = last.reshape(B, S, D)

    v = jnp.tanh(jnp.dot(last, pwv_ref[...],
                         preferred_element_type=jnp.float32) + pbv_ref[0])       # (B*S, INT)
    u = _gelu(jnp.dot(last, pwu_ref[...],
                      preferred_element_type=jnp.float32) + pbu_ref[0])          # (B*S, INT)
    logits = jnp.dot(v * u, pwa_ref[...],
                     preferred_element_type=jnp.float32) + pba_ref[0]            # (B*S, POOL_H)

    pattn_list, pooled_list = [], []
    for b in range(B):
        lg = logits[b * S:(b + 1) * S, :]                     # (S, POOL_H)
        a = _softmax_k(lg, axis=0)                            # softmax over tokens
        pattn_list.append(a)
        lb = last[b * S:(b + 1) * S, :]                       # (S, D)
        pooled_list.append(jax.lax.dot_general(
            a, lb, (((0,), (0,)), ((), ())),
            preferred_element_type=jnp.float32))              # (POOL_H, D)
    pattn_ref[...] = jnp.stack(pattn_list, axis=0)            # (B, S, POOL_H)
    pooled = jnp.stack(pooled_list, axis=0)                   # (B, POOL_H, D)
    pooled_ref[...] = pooled

    # classifier head, both batches at once; POOL_H == 1 so reshape is a squeeze
    pooled_flat = pooled.reshape(B, POOL_OUT)
    hc = jnp.maximum(jnp.dot(pooled_flat, cw1_ref[...],
                             preferred_element_type=jnp.float32) + cb1_ref[0], 0.0)
    probs_ref[...] = _sigmoid_k(jnp.dot(hc, cw2_ref[...],
                                        preferred_element_type=jnp.float32) + cb2_ref[0])


# ------------------------------- JAX glue -------------------------------------
def patchify(x_nchw):
    # NCHW -> (B, num_patches, C*P*P); each row flattened in (C, P, P) order
    b = x_nchw.shape[0]
    xp = x_nchw.reshape(b, C, IMG // P, P, IMG // P, P)
    xp = jnp.transpose(xp, (0, 2, 4, 1, 3, 5))
    return xp.reshape(b, NPATCH, C * P * P)


def pack_params(params):
    """Stack per-layer weights into (NL, ...) arrays and fuse Wq/Wk/Wv -> Wqkv."""
    L = params["layers"]
    return dict(
        ln1w=jnp.stack([lp[0][0] for lp in L]),                              # (NL, D)
        ln1b=jnp.stack([lp[1][0] for lp in L]),
        wqkv=jnp.stack([jnp.concatenate([lp[2], lp[4], lp[6]], axis=1)       # (NL, D, 3D)
                        for lp in L]),
        bqkv=jnp.stack([jnp.concatenate([lp[3][0], lp[5][0], lp[7][0]],      # (NL, 3D)
                                        axis=0) for lp in L]),
        wo=jnp.stack([lp[8] for lp in L]),                                   # (NL, D, D)
        bo=jnp.stack([lp[9][0] for lp in L]),                                # (NL, D)
        ln2w=jnp.stack([lp[10][0] for lp in L]),
        ln2b=jnp.stack([lp[11][0] for lp in L]),
        w1=jnp.stack([lp[12] for lp in L]),                                  # (NL, D, FF)
        b1=jnp.stack([lp[13][0] for lp in L]),                               # (NL, FF)
        w2=jnp.stack([lp[14] for lp in L]),                                  # (NL, FF, D)
        b2=jnp.stack([lp[15][0] for lp in L]),                               # (NL, D)
    )


def init_params(key):
    ks = iter(jax.random.split(key, 64))

    def nrm(shape, scale=0.02):
        return (scale * jax.random.normal(next(ks), shape)).astype(jnp.float32)

    def zeros(shape):
        return jnp.zeros(shape, jnp.float32)

    def ones(shape):
        return jnp.ones(shape, jnp.float32)

    params = {
        "patch_w": nrm((C * P * P, D)),
        "patch_b": zeros((1, D)),
        "cls": nrm((1, 1, D)),
        "pos": nrm((1, S, D)),
        "final_ln_w": ones((1, D)),
        "final_ln_b": zeros((1, D)),
    }
    params["layers"] = [
        [ones((1, D)), zeros((1, D)),            # ln1
         nrm((D, D)), zeros((1, D)),             # Wq, bq
         nrm((D, D)), zeros((1, D)),             # Wk, bk
         nrm((D, D)), zeros((1, D)),             # Wv, bv
         nrm((D, D)), zeros((1, D)),             # Wo, bo
         ones((1, D)), zeros((1, D)),            # ln2
         nrm((D, FF)), zeros((1, FF)),           # MLP up
         nrm((FF, D)), zeros((1, D))]            # MLP down
        for _ in range(NL)
    ]
    params["pool"] = [nrm((D, POOL_INT)), nrm((1, POOL_INT)),     # attention_v
                      nrm((D, POOL_INT)), nrm((1, POOL_INT)),     # attention_u
                      nrm((POOL_INT, POOL_H)), nrm((1, POOL_H))]  # attention
    params["cls_head"] = [nrm((POOL_OUT, CLS_HID)), nrm((1, CLS_HID)),
                          nrm((CLS_HID, NCLS)), nrm((1, NCLS))]
    return params


@jax.jit
def vit_pool_forward(x_nchw, params):
    pk = pack_params(params)
    patches = patchify(x_nchw)

    hs, attn, last, pooled, pattn, probs = pl.pallas_call(
        fused_vit_pool_kernel,
        out_shape=(
            jax.ShapeDtypeStruct((NL + 1, B, S, D), jnp.float32),   # hidden_states
            jax.ShapeDtypeStruct((NL, B, NH, S, S), jnp.float32),   # attentions
            jax.ShapeDtypeStruct((B, S, D), jnp.float32),           # last_hidden_state
            jax.ShapeDtypeStruct((B, POOL_H, D), jnp.float32),      # pooled
            jax.ShapeDtypeStruct((B, S, POOL_H), jnp.float32),      # pool attn (pre-permute)
            jax.ShapeDtypeStruct((B, NCLS), jnp.float32),           # probabilities
        ),
    )(patches, params["patch_w"], params["patch_b"], params["cls"], params["pos"],
      pk["ln1w"], pk["ln1b"], pk["wqkv"], pk["bqkv"], pk["wo"], pk["bo"],
      pk["ln2w"], pk["ln2b"], pk["w1"], pk["b1"], pk["w2"], pk["b2"],
      params["final_ln_w"], params["final_ln_b"],
      *params["pool"], *params["cls_head"])

    hidden_states = tuple(hs[i] for i in range(NL + 1))
    attentions = tuple(attn[i] for i in range(NL))
    feature_vector = pooled.reshape(B, POOL_OUT)          # out_proj = Identity
    pool_attn = jnp.transpose(pattn, (0, 2, 1))           # (B, heads, S)

    return dict(hidden_states=hidden_states,
                attentions=attentions,
                last_hidden_state=last,
                feature_vector=feature_vector,
                pool_attn=pool_attn,
                probabilties=probs)   # key spelled as in the PyTorch dataclass


# ---------------------------- pure-JAX reference ------------------------------
def reference_forward(x_nchw, params):
    patches = patchify(x_nchw)                                    # (B, NPATCH, CPP)
    tok = patches @ params["patch_w"] + params["patch_b"][0]      # (B, NPATCH, D)
    h = jnp.concatenate([jnp.broadcast_to(params["cls"], (B, 1, D)), tok],
                        axis=1) + params["pos"]
    for lp in params["layers"]:
        ln1w, ln1b, wq, bq, wk, bk, wv, bv, wo, bo, ln2w, ln2b, w1, b1, w2, b2 = lp
        hn = _layernorm(h, ln1w[0], ln1b[0])
        q = (hn @ wq + bq[0]).reshape(B, S, NH, HD).transpose(0, 2, 1, 3)
        k = (hn @ wk + bk[0]).reshape(B, S, NH, HD).transpose(0, 2, 1, 3)
        v = (hn @ wv + bv[0]).reshape(B, S, NH, HD).transpose(0, 2, 1, 3)
        s = jnp.einsum('bhqd,bhkd->bhqk', q, k) / math.sqrt(HD)
        p = _softmax(s, -1)
        ctx = jnp.einsum('bhqk,bhkd->bhqd', p, v).transpose(0, 2, 1, 3).reshape(B, S, D)
        h = h + ctx @ wo + bo[0]
        hn2 = _layernorm(h, ln2w[0], ln2b[0])
        h = h + _gelu(hn2 @ w1 + b1[0]) @ w2 + b2[0]
    last = _layernorm(h, params["final_ln_w"][0], params["final_ln_b"][0])
    wv_, bv_, wu_, bu_, wa_, ba_ = params["pool"]
    vv = jnp.tanh(last @ wv_ + bv_[0])
    uu = _gelu(last @ wu_ + bu_[0])
    logits = (vv * uu) @ wa_ + ba_[0]
    a = _softmax(jnp.transpose(logits, (0, 2, 1)), -1)            # (B, H, S)
    pooled = jnp.einsum('bhs,bsd->bhd', a, last).reshape(B, POOL_OUT)
    w1c, b1c, w2c, b2c = params["cls_head"]
    probs = _sigmoid(jnp.maximum(pooled @ w1c + b1c[0], 0.0) @ w2c + b2c[0])
    return last, pooled, a, probs


# ----------------------------------- main -------------------------------------
if __name__ == "__main__":
    key = jax.random.PRNGKey(0)
    pkey, xkey = jax.random.split(key)
    params = init_params(pkey)
    x = jax.random.normal(xkey, (B, C, IMG, IMG), dtype=jnp.float32)

    out = vit_pool_forward(x, params)
    jax.block_until_ready(out)

    # shape checks
    assert out["last_hidden_state"].shape == (B, S, D)
    assert out["feature_vector"].shape == (B, POOL_OUT)
    assert out["pool_attn"].shape == (B, POOL_H, S)
    assert out["probabilties"].shape == (B, NCLS)
    assert len(out["hidden_states"]) == NL + 1
    assert len(out["attentions"]) == NL
    assert out["attentions"][0].shape == (B, NH, S, S)

    # numerical check against a pure-JAX reference of the same math
    # (tolerance covers the EUP approximate reciprocal in softmax/sigmoid)
    ref_last, ref_feat, ref_attn, ref_probs = reference_forward(x, params)
    assert bool(jnp.allclose(out["last_hidden_state"], ref_last, rtol=2e-2, atol=5e-3))
    assert bool(jnp.allclose(out["feature_vector"], ref_feat, rtol=2e-2, atol=5e-3))
    assert bool(jnp.allclose(out["pool_attn"], ref_attn, rtol=2e-2, atol=5e-3))
    assert bool(jnp.allclose(out["probabilties"], ref_probs, rtol=2e-2, atol=5e-3))

    print("KERNEL_OK")
</pallas_src>

<mosaic_0001>
module attributes {stable_mosaic.version = 11 : i64} {
  func.func @fused_vit_pool_kernel(%arg0: memref<2x4x192xf32, #tpu.memory_space<vmem>>, %arg1: memref<192x32xf32, #tpu.memory_space<vmem>>, %arg2: memref<1x32xf32, #tpu.memory_space<vmem>>, %arg3: memref<1x1x32xf32, #tpu.memory_space<vmem>>, %arg4: memref<1x5x32xf32, #tpu.memory_space<vmem>>, %arg5: memref<2x32xf32, #tpu.memory_space<vmem>>, %arg6: memref<2x32xf32, #tpu.memory_space<vmem>>, %arg7: memref<2x32x96xf32, #tpu.memory_space<vmem>>, %arg8: memref<2x96xf32, #tpu.memory_space<vmem>>, %arg9: memref<2x32x32xf32, #tpu.memory_space<vmem>>, %arg10: memref<2x32xf32, #tpu.memory_space<vmem>>, %arg11: memref<2x32xf32, #tpu.memory_space<vmem>>, %arg12: memref<2x32xf32, #tpu.memory_space<vmem>>, %arg13: memref<2x32x64xf32, #tpu.memory_space<vmem>>, %arg14: memref<2x64xf32, #tpu.memory_space<vmem>>, %arg15: memref<2x64x32xf32, #tpu.memory_space<vmem>>, %arg16: memref<2x32xf32, #tpu.memory_space<vmem>>, %arg17: memref<1x32xf32, #tpu.memory_space<vmem>>, %arg18: memref<1x32xf32, #tpu.memory_space<vmem>>, %arg19: memref<32x64xf32, #tpu.memory_space<vmem>>, %arg20: memref<1x64xf32, #tpu.memory_space<vmem>>, %arg21: memref<32x64xf32, #tpu.memory_space<vmem>>, %arg22: memref<1x64xf32, #tpu.memory_space<vmem>>, %arg23: memref<64x1xf32, #tpu.memory_space<vmem>>, %arg24: memref<1x1xf32, #tpu.memory_space<vmem>>, %arg25: memref<32x16xf32, #tpu.memory_space<vmem>>, %arg26: memref<1x16xf32, #tpu.memory_space<vmem>>, %arg27: memref<16x19xf32, #tpu.memory_space<vmem>>, %arg28: memref<1x19xf32, #tpu.memory_space<vmem>>, %arg29: memref<3x2x5x32xf32, #tpu.memory_space<vmem>>, %arg30: memref<2x2x2x5x5xf32, #tpu.memory_space<vmem>>, %arg31: memref<2x5x32xf32, #tpu.memory_space<vmem>>, %arg32: memref<2x1x32xf32, #tpu.memory_space<vmem>>, %arg33: memref<2x5x1xf32, #tpu.memory_space<vmem>>, %arg34: memref<2x19xf32, #tpu.memory_space<vmem>>) attributes {dimension_semantics = [], scalar_prefetch = 0 : i64, scratch_operands = 0 : i64, tpu.core_type = #tpu.core_type<tc>} {
    %c0 = arith.constant 0 : index
    %c0_0 = arith.constant 0 : index
    %c0_1 = arith.constant 0 : index
    %0 = vector.load %arg0[%c0, %c0_0, %c0_1] : memref<2x4x192xf32, #tpu.memory_space<vmem>>, vector<2x4x192xf32>
    %1 = vector.shape_cast %0 : vector<2x4x192xf32> to vector<8x192xf32>
    %c0_2 = arith.constant 0 : index
    %c0_3 = arith.constant 0 : index
    %2 = vector.load %arg1[%c0_2, %c0_3] : memref<192x32xf32, #tpu.memory_space<vmem>>, vector<192x32xf32>
    %cst = arith.constant dense<0.000000e+00> : vector<8x32xf32>
    %3 = tpu.matmul %1, %2, %cst {dimension_numbers = #tpu.dot_dimension_numbers<[1], [0], [0], [1], [0, 0, 1, 1], [], []>} : vector<8x192xf32>, vector<192x32xf32>, vector<8x32xf32> -> vector<8x32xf32>
    %c0_4 = arith.constant 0 : index
    %c0_5 = arith.constant 0 : index
    %4 = vector.load %arg2[%c0_4, %c0_5] : memref<1x32xf32, #tpu.memory_space<vmem>>, vector<1x32xf32>
    %5 = vector.shape_cast %4 : vector<1x32xf32> to vector<32xf32>
    %6 = vector.shape_cast %5 : vector<32xf32> to vector<1x32xf32>
    %7 = vector.broadcast %6 : vector<1x32xf32> to vector<8x32xf32>
    %8 = arith.addf %3, %7 : vector<8x32xf32>
    %c0_6 = arith.constant 0 : index
    %c0_7 = arith.constant 0 : index
    %c0_8 = arith.constant 0 : index
    %9 = vector.load %arg3[%c0_6, %c0_7, %c0_8] : memref<1x1x32xf32, #tpu.memory_space<vmem>>, vector<1x1x32xf32>
    %10 = vector.shape_cast %9 : vector<1x1x32xf32> to vector<1x32xf32>
    %c0_9 = arith.constant 0 : index
    %c0_10 = arith.constant 0 : index
    %c0_11 = arith.constant 0 : index
    %11 = vector.load %arg4[%c0_9, %c0_10, %c0_11] : memref<1x5x32xf32, #tpu.memory_space<vmem>>, vector<1x5x32xf32>
    %12 = vector.shape_cast %11 : vector<1x5x32xf32> to vector<5x32xf32>
    %13 = vector.extract_strided_slice %8 {offsets = [0, 0], sizes = [4, 32], strides = [1, 1]} : vector<8x32xf32> to vector<4x32xf32>
    %14 = vector.extract_strided_slice %8 {offsets = [4, 0], sizes = [4, 32], strides = [1, 1]} : vector<8x32xf32> to vector<4x32xf32>
    %15 = tpu.concatenate %10, %13, %10, %14 in 0 : vector<1x32xf32>, vector<4x32xf32>, vector<1x32xf32>, vector<4x32xf32> -> vector<10x32xf32>
    %16 = tpu.concatenate %12, %12 in 0 : vector<5x32xf32>, vector<5x32xf32> -> vector<10x32xf32>
    %17 = arith.addf %15, %16 : vector<10x32xf32>
    %18 = vector.shape_cast %17 : vector<10x32xf32> to vector<2x5x32xf32>
    %c0_12 = arith.constant 0 : index
    %c0_13 = arith.constant 0 : index
    %c0_14 = arith.constant 0 : index
    %c0_15 = arith.constant 0 : index
    %19 = vector.load %arg29[%c0_12, %c0_13, %c0_14, %c0_15] : memref<3x2x5x32xf32, #tpu.memory_space<vmem>>, vector<1x2x5x32xf32>
    %20 = vector.shape_cast %19 : vector<1x2x5x32xf32> to vector<2x5x32xf32>
    %21 = vector.shape_cast %18 : vector<2x5x32xf32> to vector<1x2x5x32xf32>
    tpu.vector_store %arg29[%c0_12, %c0_13, %c0_14, %c0_15], %21 {strides = array<i32>} : memref<3x2x5x32xf32, #tpu.memory_space<vmem>>, vector<1x2x5x32xf32>,
    %c0_16 = arith.constant 0 : index
    %c0_17 = arith.constant 0 : index
    %22 = vector.load %arg5[%c0_16, %c0_17] : memref<2x32xf32, #tpu.memory_space<vmem>>, vector<1x32xf32>
    %23 = vector.shape_cast %22 : vector<1x32xf32> to vector<32xf32>
    %c0_18 = arith.constant 0 : index
    %c0_19 = arith.constant 0 : index
    %24 = vector.load %arg6[%c0_18, %c0_19] : memref<2x32xf32, #tpu.memory_space<vmem>>, vector<1x32xf32>
    %25 = vector.shape_cast %24 : vector<1x32xf32> to vector<32xf32>
    %c0_20 = arith.constant 0 : index
    %c0_21 = arith.constant 0 : index
    %c0_22 = arith.constant 0 : index
    %26 = vector.load %arg7[%c0_20, %c0_21, %c0_22] : memref<2x32x96xf32, #tpu.memory_space<vmem>>, vector<1x32x96xf32>
    %27 = vector.shape_cast %26 : vector<1x32x96xf32> to vector<32x96xf32>
    %c0_23 = arith.constant 0 : index
    %c0_24 = arith.constant 0 : index
    %28 = vector.load %arg8[%c0_23, %c0_24] : memref<2x96xf32, #tpu.memory_space<vmem>>, vector<1x96xf32>
    %29 = vector.shape_cast %28 : vector<1x96xf32> to vector<96xf32>
    %c0_25 = arith.constant 0 : index
    %c0_26 = arith.constant 0 : index
    %c0_27 = arith.constant 0 : index
    %30 = vector.load %arg9[%c0_25, %c0_26, %c0_27] : memref<2x32x32xf32, #tpu.memory_space<vmem>>, vector<1x32x32xf32>
    %31 = vector.shape_cast %30 : vector<1x32x32xf32> to vector<32x32xf32>
    %c0_28 = arith.constant 0 : index
    %c0_29 = arith.constant 0 : index
    %32 = vector.load %arg10[%c0_28, %c0_29] : memref<2x32xf32, #tpu.memory_space<vmem>>, vector<1x32xf32>
    %33 = vector.shape_cast %32 : vector<1x32xf32> to vector<32xf32>
    %c0_30 = arith.constant 0 : index
    %c0_31 = arith.constant 0 : index
    %34 = vector.load %arg11[%c0_30, %c0_31] : memref<2x32xf32, #tpu.memory_space<vmem>>, vector<1x32xf32>
    %35 = vector.shape_cast %34 : vector<1x32xf32> to vector<32xf32>
    %c0_32 = arith.constant 0 : index
    %c0_33 = arith.constant 0 : index
    %36 = vector.load %arg12[%c0_32, %c0_33] : memref<2x32xf32, #tpu.memory_space<vmem>>, vector<1x32xf32>
    %37 = vector.shape_cast %36 : vector<1x32xf32> to vector<32xf32>
    %c0_34 = arith.constant 0 : index
    %c0_35 = arith.constant 0 : index
    %c0_36 = arith.constant 0 : index
    %38 = vector.load %arg13[%c0_34, %c0_35, %c0_36] : memref<2x32x64xf32, #tpu.memory_space<vmem>>, vector<1x32x64xf32>
    %39 = vector.shape_cast %38 : vector<1x32x64xf32> to vector<32x64xf32>
    %c0_37 = arith.constant 0 : index
    %c0_38 = arith.constant 0 : index
    %40 = vector.load %arg14[%c0_37, %c0_38] : memref<2x64xf32, #tpu.memory_space<vmem>>, vector<1x64xf32>
    %41 = vector.shape_cast %40 : vector<1x64xf32> to vector<64xf32>
    %c0_39 = arith.constant 0 : index
    %c0_40 = arith.constant 0 : index
    %c0_41 = arith.constant 0 : index
    %42 = vector.load %arg15[%c0_39, %c0_40, %c0_41] : memref<2x64x32xf32, #tpu.memory_space<vmem>>, vector<1x64x32xf32>
    %43 = vector.shape_cast %42 : vector<1x64x32xf32> to vector<64x32xf32>
    %c0_42 = arith.constant 0 : index
    %c0_43 = arith.constant 0 : index
    %44 = vector.load %arg16[%c0_42, %c0_43] : memref<2x32xf32, #tpu.memory_space<vmem>>, vector<1x32xf32>
    %45 = vector.shape_cast %44 : vector<1x32xf32> to vector<32xf32>
    %cst_44 = arith.constant dense<0.000000e+00> : vector<10xf32>
    %46 = vector.multi_reduction <add>, %17, %cst_44 [1] : vector<10x32xf32> to vector<10xf32>
    %47 = vector.shape_cast %46 : vector<10xf32> to vector<10x1xf32>
    %cst_45 = arith.constant 3.200000e+01 : f32
    %48 = vector.broadcast %cst_45 : f32 to vector<10x1xf32>
    %49 = arith.divf %47, %48 : vector<10x1xf32>
    %50 = vector.broadcast %49 : vector<10x1xf32> to vector<10x32xf32>
    %51 = arith.subf %17, %50 : vector<10x32xf32>
    %52 = arith.mulf %51, %51 : vector<10x32xf32>
    %cst_46 = arith.constant dense<0.000000e+00> : vector<10xf32>
    %53 = vector.multi_reduction <add>, %52, %cst_46 [1] : vector<10x32xf32> to vector<10xf32>
    %54 = vector.shape_cast %53 : vector<10xf32> to vector<10x1xf32>
    %cst_47 = arith.constant 3.200000e+01 : f32
    %55 = vector.broadcast %cst_47 : f32 to vector<10x1xf32>
    %56 = arith.divf %54, %55 : vector<10x1xf32>
    %57 = vector.broadcast %49 : vector<10x1xf32> to vector<10x32xf32>
    %58 = arith.subf %17, %57 : vector<10x32xf32>
    %cst_48 = arith.constant 9.99999996E-13 : f32
    %59 = vector.broadcast %cst_48 : f32 to vector<10x1xf32>
    %60 = arith.addf %56, %59 : vector<10x1xf32>
    %61 = math.rsqrt %60 : vector<10x1xf32>
    %62 = vector.broadcast %61 : vector<10x1xf32> to vector<10x32xf32>
    %63 = arith.mulf %58, %62 : vector<10x32xf32>
    %64 = vector.shape_cast %23 : vector<32xf32> to vector<1x32xf32>
    %65 = vector.broadcast %64 : vector<1x32xf32> to vector<10x32xf32>
    %66 = arith.mulf %63, %65 : vector<10x32xf32>
    %67 = vector.shape_cast %25 : vector<32xf32> to vector<1x32xf32>
    %68 = vector.broadcast %67 : vector<1x32xf32> to vector<10x32xf32>
    %69 = arith.addf %66, %68 : vector<10x32xf32>
    %cst_49 = arith.constant dense<0.000000e+00> : vector<10x96xf32>
    %70 = tpu.matmul %69, %27, %cst_49 {dimension_numbers = #tpu.dot_dimension_numbers<[1], [0], [0], [1], [0, 0, 1, 1], [], []>} : vector<10x32xf32>, vector<32x96xf32>, vector<10x96xf32> -> vector<10x96xf32>
    %71 = vector.shape_cast %29 : vector<96xf32> to vector<1x96xf32>
    %72 = vector.broadcast %71 : vector<1x96xf32> to vector<10x96xf32>
    %73 = arith.addf %70, %72 : vector<10x96xf32>
    %74 = vector.extract_strided_slice %73 {offsets = [0, 0], sizes = [10, 16], strides = [1, 1]} : vector<10x96xf32> to vector<10x16xf32>
    %75 = vector.shape_cast %74 : vector<10x16xf32> to vector<2x5x16xf32>
    %76 = vector.extract_strided_slice %73 {offsets = [0, 32], sizes = [10, 16], strides = [1, 1]} : vector<10x96xf32> to vector<10x16xf32>
    %77 = vector.shape_cast %76 : vector<10x16xf32> to vector<2x5x16xf32>
    %78 = vector.extract_strided_slice %73 {offsets = [0, 64], sizes = [10, 16], strides = [1, 1]} : vector<10x96xf32> to vector<10x16xf32>
    %79 = vector.shape_cast %78 : vector<10x16xf32> to vector<2x5x16xf32>
    "tpu.trace_start"() <{level = 10 : i32, message = "bqd,bkd->bqk"}> : () -> ()
    %cst_50 = arith.constant dense<0.000000e+00> : vector<2x5x5xf32>
    %80 = tpu.matmul %75, %77, %cst_50 {dimension_numbers = #tpu.dot_dimension_numbers<[2], [2], [1], [1], [0, 0, 0, 1, 1, 1], [0], [0]>} : vector<2x5x16xf32>, vector<2x5x16xf32>, vector<2x5x5xf32> -> vector<2x5x5xf32>
    "tpu.trace_stop"() : () -> ()
    %cst_51 = arith.constant 2.500000e-01 : f32
    %81 = vector.broadcast %cst_51 : f32 to vector<2x5x5xf32>
    %82 = arith.mulf %80, %81 : vector<2x5x5xf32>
    %cst_52 = arith.constant dense<0xFF800000> : vector<2x5xf32>
    %83 = vector.multi_reduction <maximumf>, %82, %cst_52 [2] : vector<2x5x5xf32> to vector<2x5xf32>
    %84 = vector.shape_cast %83 : vector<2x5xf32> to vector<2x5x1xf32>
    %85 = vector.broadcast %84 : vector<2x5x1xf32> to vector<2x5x5xf32>
    %86 = arith.subf %82, %85 : vector<2x5x5xf32>
    %87 = math.exp %86 : vector<2x5x5xf32>
    %cst_53 = arith.constant dense<0.000000e+00> : vector<2x5xf32>
    %88 = vector.multi_reduction <add>, %87, %cst_53 [2] : vector<2x5x5xf32> to vector<2x5xf32>
    %89 = vector.shape_cast %88 : vector<2x5xf32> to vector<2x5x1xf32>
    %90 = tpu.reciprocal %89 {approx = true} : vector<2x5x1xf32> -> vector<2x5x1xf32>
    %91 = vector.broadcast %90 : vector<2x5x1xf32> to vector<2x5x5xf32>
    %92 = arith.mulf %87, %91 : vector<2x5x5xf32>
    "tpu.trace_start"() <{level = 10 : i32, message = "bqk,bkd->bqd"}> : () -> ()
    %cst_54 = arith.constant dense<0.000000e+00> : vector<2x5x16xf32>
    %93 = tpu.matmul %92, %79, %cst_54 {dimension_numbers = #tpu.dot_dimension_numbers<[2], [1], [1], [2], [0, 0, 0, 1, 1, 2], [0], [0]>} : vector<2x5x5xf32>, vector<2x5x16xf32>, vector<2x5x16xf32> -> vector<2x5x16xf32>
    "tpu.trace_stop"() : () -> ()
    %94 = vector.shape_cast %93 : vector<2x5x16xf32> to vector<10x16xf32>
    %95 = vector.extract_strided_slice %31 {offsets = [0, 0], sizes = [16, 32], strides = [1, 1]} : vector<32x32xf32> to vector<16x32xf32>
    %cst_55 = arith.constant dense<0.000000e+00> : vector<10x32xf32>
    %96 = tpu.matmul %94, %95, %cst_55 {dimension_numbers = #tpu.dot_dimension_numbers<[1], [0], [0], [1], [0, 0, 1, 1], [], []>} : vector<10x16xf32>, vector<16x32xf32>, vector<10x32xf32> -> vector<10x32xf32>
    %97 = vector.shape_cast %33 : vector<32xf32> to vector<1x32xf32>
    %98 = vector.broadcast %97 : vector<1x32xf32> to vector<10x32xf32>
    %99 = arith.addf %98, %96 : vector<10x32xf32>
    %100 = vector.extract_strided_slice %73 {offsets = [0, 16], sizes = [10, 16], strides = [1, 1]} : vector<10x96xf32> to vector<10x16xf32>
    %101 = vector.shape_cast %100 : vector<10x16xf32> to vector<2x5x16xf32>
    %102 = vector.extract_strided_slice %73 {offsets = [0, 48], sizes = [10, 16], strides = [1, 1]} : vector<10x96xf32> to vector<10x16xf32>
    %103 = vector.shape_cast %102 : vector<10x16xf32> to vector<2x5x16xf32>
    %104 = vector.extract_strided_slice %73 {offsets = [0, 80], sizes = [10, 16], strides = [1, 1]} : vector<10x96xf32> to vector<10x16xf32>
    %105 = vector.shape_cast %104 : vector<10x16xf32> to vector<2x5x16xf32>
    "tpu.trace_start"() <{level = 10 : i32, message = "bqd,bkd->bqk"}> : () -> ()
    %cst_56 = arith.constant dense<0.000000e+00> : vector<2x5x5xf32>
    %106 = tpu.matmul %101, %103, %cst_56 {dimension_numbers = #tpu.dot_dimension_numbers<[2], [2], [1], [1], [0, 0, 0, 1, 1, 1], [0], [0]>} : vector<2x5x16xf32>, vector<2x5x16xf32>, vector<2x5x5xf32> -> vector<2x5x5xf32>
    "tpu.trace_stop"() : () -> ()
    %cst_57 = arith.constant 2.500000e-01 : f32
    %107 = vector.broadcast %cst_57 : f32 to vector<2x5x5xf32>
    %108 = arith.mulf %106, %107 : vector<2x5x5xf32>
    %cst_58 = arith.constant dense<0xFF800000> : vector<2x5xf32>
    %109 = vector.multi_reduction <maximumf>, %108, %cst_58 [2] : vector<2x5x5xf32> to vector<2x5xf32>
    %110 = vector.shape_cast %109 : vector<2x5xf32> to vector<2x5x1xf32>
    %111 = vector.broadcast %110 : vector<2x5x1xf32> to vector<2x5x5xf32>
    %112 = arith.subf %108, %111 : vector<2x5x5xf32>
    %113 = math.exp %112 : vector<2x5x5xf32>
    %cst_59 = arith.constant dense<0.000000e+00> : vector<2x5xf32>
    %114 = vector.multi_reduction <add>, %113, %cst_59 [2] : vector<2x5x5xf32> to vector<2x5xf32>
    %115 = vector.shape_cast %114 : vector<2x5xf32> to vector<2x5x1xf32>
    %116 = tpu.reciprocal %115 {approx = true} : vector<2x5x1xf32> -> vector<2x5x1xf32>
    %117 = vector.broadcast %116 : vector<2x5x1xf32> to vector<2x5x5xf32>
    %118 = arith.mulf %113, %117 : vector<2x5x5xf32>
    "tpu.trace_start"() <{level = 10 : i32, message = "bqk,bkd->bqd"}> : () -> ()
    %cst_60 = arith.constant dense<0.000000e+00> : vector<2x5x16xf32>
    %119 = tpu.matmul %118, %105, %cst_60 {dimension_numbers = #tpu.dot_dimension_numbers<[2], [1], [1], [2], [0, 0, 0, 1, 1, 2], [0], [0]>} : vector<2x5x5xf32>, vector<2x5x16xf32>, vector<2x5x16xf32> -> vector<2x5x16xf32>
    "tpu.trace_stop"() : () -> ()
    %120 = vector.shape_cast %119 : vector<2x5x16xf32> to vector<10x16xf32>
    %121 = vector.extract_strided_slice %31 {offsets = [16, 0], sizes = [16, 32], strides = [1, 1]} : vector<32x32xf32> to vector<16x32xf32>
    %cst_61 = arith.constant dense<0.000000e+00> : vector<10x32xf32>
    %122 = tpu.matmul %120, %121, %cst_61 {dimension_numbers = #tpu.dot_dimension_numbers<[1], [0], [0], [1], [0, 0, 1, 1], [], []>} : vector<10x16xf32>, vector<16x32xf32>, vector<10x32xf32> -> vector<10x32xf32>
    %123 = arith.addf %99, %122 : vector<10x32xf32>
    %124 = vector.shape_cast %92 : vector<2x5x5xf32> to vector<2x1x5x5xf32>
    %125 = vector.shape_cast %118 : vector<2x5x5xf32> to vector<2x1x5x5xf32>
    %126 = tpu.concatenate %124, %125 in 1 : vector<2x1x5x5xf32>, vector<2x1x5x5xf32> -> vector<2x2x5x5xf32>
    %c0_62 = arith.constant 0 : index
    %c0_63 = arith.constant 0 : index
    %c0_64 = arith.constant 0 : index
    %c0_65 = arith.constant 0 : index
    %c0_66 = arith.constant 0 : index
    %127 = vector.load %arg30[%c0_62, %c0_63, %c0_64, %c0_65, %c0_66] : memref<2x2x2x5x5xf32, #tpu.memory_space<vmem>>, vector<1x2x2x5x5xf32>
    %128 = vector.shape_cast %127 : vector<1x2x2x5x5xf32> to vector<2x2x5x5xf32>
    %129 = vector.shape_cast %126 : vector<2x2x5x5xf32> to vector<1x2x2x5x5xf32>
    tpu.vector_store %arg30[%c0_62, %c0_63, %c0_64, %c0_65, %c0_66], %129 {strides = array<i32>} : memref<2x2x2x5x5xf32, #tpu.memory_space<vmem>>, vector<1x2x2x5x5xf32>,
    %130 = arith.addf %17, %123 : vector<10x32xf32>
    %cst_67 = arith.constant dense<0.000000e+00> : vector<10xf32>
    %131 = vector.multi_reduction <add>, %130, %cst_67 [1] : vector<10x32xf32> to vector<10xf32>
    %132 = vector.shape_cast %131 : vector<10xf32> to vector<10x1xf32>
    %cst_68 = arith.constant 3.200000e+01 : f32
    %133 = vector.broadcast %cst_68 : f32 to vector<10x1xf32>
    %134 = arith.divf %132, %133 : vector<10x1xf32>
    %135 = vector.broadcast %134 : vector<10x1xf32> to vector<10x32xf32>
    %136 = arith.subf %130, %135 : vector<10x32xf32>
    %137 = arith.mulf %136, %136 : vector<10x32xf32>
    %cst_69 = arith.constant dense<0.000000e+00> : vector<10xf32>
    %138 = vector.multi_reduction <add>, %137, %cst_69 [1] : vector<10x32xf32> to vector<10xf32>
    %139 = vector.shape_cast %138 : vector<10xf32> to vector<10x1xf32>
    %cst_70 = arith.constant 3.200000e+01 : f32
    %140 = vector.broadcast %cst_70 : f32 to vector<10x1xf32>
    %141 = arith.divf %139, %140 : vector<10x1xf32>
    %142 = vector.broadcast %134 : vector<10x1xf32> to vector<10x32xf32>
    %143 = arith.subf %130, %142 : vector<10x32xf32>
    %cst_71 = arith.constant 9.99999996E-13 : f32
    %144 = vector.broadcast %cst_71 : f32 to vector<10x1xf32>
    %145 = arith.addf %141, %144 : vector<10x1xf32>
    %146 = math.rsqrt %145 : vector<10x1xf32>
    %147 = vector.broadcast %146 : vector<10x1xf32> to vector<10x32xf32>
    %148 = arith.mulf %143, %147 : vector<10x32xf32>
    %149 = vector.shape_cast %35 : vector<32xf32> to vector<1x32xf32>
    %150 = vector.broadcast %149 : vector<1x32xf32> to vector<10x32xf32>
    %151 = arith.mulf %148, %150 : vector<10x32xf32>
    %152 = vector.shape_cast %37 : vector<32xf32> to vector<1x32xf32>
    %153 = vector.broadcast %152 : vector<1x32xf32> to vector<10x32xf32>
    %154 = arith.addf %151, %153 : vector<10x32xf32>
    %cst_72 = arith.constant dense<0.000000e+00> : vector<10x64xf32>
    %155 = tpu.matmul %154, %39, %cst_72 {dimension_numbers = #tpu.dot_dimension_numbers<[1], [0], [0], [1], [0, 0, 1, 1], [], []>} : vector<10x32xf32>, vector<32x64xf32>, vector<10x64xf32> -> vector<10x64xf32>
    %156 = vector.shape_cast %41 : vector<64xf32> to vector<1x64xf32>
    %157 = vector.broadcast %156 : vector<1x64xf32> to vector<10x64xf32>
    %158 = arith.addf %155, %157 : vector<10x64xf32>
    %cst_73 = arith.constant 5.000000e-01 : f32
    %159 = vector.broadcast %cst_73 : f32 to vector<10x64xf32>
    %160 = arith.mulf %159, %158 : vector<10x64xf32>
    %cst_74 = arith.constant 4.471500e-02 : f32
    %161 = vector.broadcast %cst_74 : f32 to vector<10x64xf32>
    %162 = arith.mulf %161, %158 : vector<10x64xf32>
    %163 = arith.mulf %162, %158 : vector<10x64xf32>
    %164 = arith.mulf %163, %158 : vector<10x64xf32>
    %165 = arith.addf %158, %164 : vector<10x64xf32>
    %cst_75 = arith.constant 0.797884583 : f32
    %166 = vector.broadcast %cst_75 : f32 to vector<10x64xf32>
    %167 = arith.mulf %166, %165 : vector<10x64xf32>
    %168 = math.tanh %167 : vector<10x64xf32>
    %cst_76 = arith.constant 1.000000e+00 : f32
    %169 = vector.broadcast %cst_76 : f32 to vector<10x64xf32>
    %170 = arith.addf %169, %168 : vector<10x64xf32>
    %171 = arith.mulf %160, %170 : vector<10x64xf32>
    %cst_77 = arith.constant dense<0.000000e+00> : vector<10x32xf32>
    %172 = tpu.matmul %171, %43, %cst_77 {dimension_numbers = #tpu.dot_dimension_numbers<[1], [0], [0], [1], [0, 0, 1, 1], [], []>} : vector<10x64xf32>, vector<64x32xf32>, vector<10x32xf32> -> vector<10x32xf32>
    %173 = arith.addf %130, %172 : vector<10x32xf32>
    %174 = vector.shape_cast %45 : vector<32xf32> to vector<1x32xf32>
    %175 = vector.broadcast %174 : vector<1x32xf32> to vector<10x32xf32>
    %176 = arith.addf %173, %175 : vector<10x32xf32>
    %177 = vector.shape_cast %176 : vector<10x32xf32> to vector<2x5x32xf32>
    %c1 = arith.constant 1 : index
    %c0_78 = arith.constant 0 : index
    %c0_79 = arith.constant 0 : index
    %c0_80 = arith.constant 0 : index
    %178 = vector.load %arg29[%c1, %c0_78, %c0_79, %c0_80] : memref<3x2x5x32xf32, #tpu.memory_space<vmem>>, vector<1x2x5x32xf32>
    %179 = vector.shape_cast %178 : vector<1x2x5x32xf32> to vector<2x5x32xf32>
    %180 = vector.shape_cast %177 : vector<2x5x32xf32> to vector<1x2x5x32xf32>
    tpu.vector_store %arg29[%c1, %c0_78, %c0_79, %c0_80], %180 {strides = array<i32>} : memref<3x2x5x32xf32, #tpu.memory_space<vmem>>, vector<1x2x5x32xf32>,
    %c1_81 = arith.constant 1 : index
    %c0_82 = arith.constant 0 : index
    %181 = vector.load %arg5[%c1_81, %c0_82] : memref<2x32xf32, #tpu.memory_space<vmem>>, vector<1x32xf32>
    %182 = vector.shape_cast %181 : vector<1x32xf32> to vector<32xf32>
    %c1_83 = arith.constant 1 : index
    %c0_84 = arith.constant 0 : index
    %183 = vector.load %arg6[%c1_83, %c0_84] : memref<2x32xf32, #tpu.memory_space<vmem>>, vector<1x32xf32>
    %184 = vector.shape_cast %183 : vector<1x32xf32> to vector<32xf32>
    %c1_85 = arith.constant 1 : index
    %c0_86 = arith.constant 0 : index
    %c0_87 = arith.constant 0 : index
    %185 = vector.load %arg7[%c1_85, %c0_86, %c0_87] : memref<2x32x96xf32, #tpu.memory_space<vmem>>, vector<1x32x96xf32>
    %186 = vector.shape_cast %185 : vector<1x32x96xf32> to vector<32x96xf32>
    %c1_88 = arith.constant 1 : index
    %c0_89 = arith.constant 0 : index
    %187 = vector.load %arg8[%c1_88, %c0_89] : memref<2x96xf32, #tpu.memory_space<vmem>>, vector<1x96xf32>
    %188 = vector.shape_cast %187 : vector<1x96xf32> to vector<96xf32>
    %c1_90 = arith.constant 1 : index
    %c0_91 = arith.constant 0 : index
    %c0_92 = arith.constant 0 : index
    %189 = vector.load %arg9[%c1_90, %c0_91, %c0_92] : memref<2x32x32xf32, #tpu.memory_space<vmem>>, vector<1x32x32xf32>
    %190 = vector.shape_cast %189 : vector<1x32x32xf32> to vector<32x32xf32>
    %c1_93 = arith.constant 1 : index
    %c0_94 = arith.constant 0 : index
    %191 = vector.load %arg10[%c1_93, %c0_94] : memref<2x32xf32, #tpu.memory_space<vmem>>, vector<1x32xf32>
    %192 = vector.shape_cast %191 : vector<1x32xf32> to vector<32xf32>
    %c1_95 = arith.constant 1 : index
    %c0_96 = arith.constant 0 : index
    %193 = vector.load %arg11[%c1_95, %c0_96] : memref<2x32xf32, #tpu.memory_space<vmem>>, vector<1x32xf32>
    %194 = vector.shape_cast %193 : vector<1x32xf32> to vector<32xf32>
    %c1_97 = arith.constant 1 : index
    %c0_98 = arith.constant 0 : index
    %195 = vector.load %arg12[%c1_97, %c0_98] : memref<2x32xf32, #tpu.memory_space<vmem>>, vector<1x32xf32>
    %196 = vector.shape_cast %195 : vector<1x32xf32> to vector<32xf32>
    %c1_99 = arith.constant 1 : index
    %c0_100 = arith.constant 0 : index
    %c0_101 = arith.constant 0 : index
    %197 = vector.load %arg13[%c1_99, %c0_100, %c0_101] : memref<2x32x64xf32, #tpu.memory_space<vmem>>, vector<1x32x64xf32>
    %198 = vector.shape_cast %197 : vector<1x32x64xf32> to vector<32x64xf32>
    %c1_102 = arith.constant 1 : index
    %c0_103 = arith.constant 0 : index
    %199 = vector.load %arg14[%c1_102, %c0_103] : memref<2x64xf32, #tpu.memory_space<vmem>>, vector<1x64xf32>
    %200 = vector.shape_cast %199 : vector<1x64xf32> to vector<64xf32>
    %c1_104 = arith.constant 1 : index
    %c0_105 = arith.constant 0 : index
    %c0_106 = arith.constant 0 : index
    %201 = vector.load %arg15[%c1_104, %c0_105, %c0_106] : memref<2x64x32xf32, #tpu.memory_space<vmem>>, vector<1x64x32xf32>
    %202 = vector.shape_cast %201 : vector<1x64x32xf32> to vector<64x32xf32>
    %c1_107 = arith.constant 1 : index
    %c0_108 = arith.constant 0 : index
    %203 = vector.load %arg16[%c1_107, %c0_108] : memref<2x32xf32, #tpu.memory_space<vmem>>, vector<1x32xf32>
    %204 = vector.shape_cast %203 : vector<1x32xf32> to vector<32xf32>
    %cst_109 = arith.constant dense<0.000000e+00> : vector<10xf32>
    %205 = vector.multi_reduction <add>, %176, %cst_109 [1] : vector<10x32xf32> to vector<10xf32>
    %206 = vector.shape_cast %205 : vector<10xf32> to vector<10x1xf32>
    %cst_110 = arith.constant 3.200000e+01 : f32
    %207 = vector.broadcast %cst_110 : f32 to vector<10x1xf32>
    %208 = arith.divf %206, %207 : vector<10x1xf32>
    %209 = vector.broadcast %208 : vector<10x1xf32> to vector<10x32xf32>
    %210 = arith.subf %176, %209 : vector<10x32xf32>
    %211 = arith.mulf %210, %210 : vector<10x32xf32>
    %cst_111 = arith.constant dense<0.000000e+00> : vector<10xf32>
    %212 = vector.multi_reduction <add>, %211, %cst_111 [1] : vector<10x32xf32> to vector<10xf32>
    %213 = vector.shape_cast %212 : vector<10xf32> to vector<10x1xf32>
    %cst_112 = arith.constant 3.200000e+01 : f32
    %214 = vector.broadcast %cst_112 : f32 to vector<10x1xf32>
    %215 = arith.divf %213, %214 : vector<10x1xf32>
    %216 = vector.broadcast %208 : vector<10x1xf32> to vector<10x32xf32>
    %217 = arith.subf %176, %216 : vector<10x32xf32>
    %cst_113 = arith.constant 9.99999996E-13 : f32
    %218 = vector.broadcast %cst_113 : f32 to vector<10x1xf32>
    %219 = arith.addf %215, %218 : vector<10x1xf32>
    %220 = math.rsqrt %219 : vector<10x1xf32>
    %221 = vector.broadcast %220 : vector<10x1xf32> to vector<10x32xf32>
    %222 = arith.mulf %217, %221 : vector<10x32xf32>
    %223 = vector.shape_cast %182 : vector<32xf32> to vector<1x32xf32>
    %224 = vector.broadcast %223 : vector<1x32xf32> to vector<10x32xf32>
    %225 = arith.mulf %222, %224 : vector<10x32xf32>
    %226 = vector.shape_cast %184 : vector<32xf32> to vector<1x32xf32>
    %227 = vector.broadcast %226 : vector<1x32xf32> to vector<10x32xf32>
    %228 = arith.addf %225, %227 : vector<10x32xf32>
    %cst_114 = arith.constant dense<0.000000e+00> : vector<10x96xf32>
    %229 = tpu.matmul %228, %186, %cst_114 {dimension_numbers = #tpu.dot_dimension_numbers<[1], [0], [0], [1], [0, 0, 1, 1], [], []>} : vector<10x32xf32>, vector<32x96xf32>, vector<10x96xf32> -> vector<10x96xf32>
    %230 = vector.shape_cast %188 : vector<96xf32> to vector<1x96xf32>
    %231 = vector.broadcast %230 : vector<1x96xf32> to vector<10x96xf32>
    %232 = arith.addf %229, %231 : vector<10x96xf32>
    %233 = vector.extract_strided_slice %232 {offsets = [0, 0], sizes = [10, 16], strides = [1, 1]} : vector<10x96xf32> to vector<10x16xf32>
    %234 = vector.shape_cast %233 : vector<10x16xf32> to vector<2x5x16xf32>
    %235 = vector.extract_strided_slice %232 {offsets = [0, 32], sizes = [10, 16], strides = [1, 1]} : vector<10x96xf32> to vector<10x16xf32>
    %236 = vector.shape_cast %235 : vector<10x16xf32> to vector<2x5x16xf32>
    %237 = vector.extract_strided_slice %232 {offsets = [0, 64], sizes = [10, 16], strides = [1, 1]} : vector<10x96xf32> to vector<10x16xf32>
    %238 = vector.shape_cast %237 : vector<10x16xf32> to vector<2x5x16xf32>
    "tpu.trace_start"() <{level = 10 : i32, message = "bqd,bkd->bqk"}> : () -> ()
    %cst_115 = arith.constant dense<0.000000e+00> : vector<2x5x5xf32>
    %239 = tpu.matmul %234, %236, %cst_115 {dimension_numbers = #tpu.dot_dimension_numbers<[2], [2], [1], [1], [0, 0, 0, 1, 1, 1], [0], [0]>} : vector<2x5x16xf32>, vector<2x5x16xf32>, vector<2x5x5xf32> -> vector<2x5x5xf32>
    "tpu.trace_stop"() : () -> ()
    %cst_116 = arith.constant 2.500000e-01 : f32
    %240 = vector.broadcast %cst_116 : f32 to vector<2x5x5xf32>
    %241 = arith.mulf %239, %240 : vector<2x5x5xf32>
    %cst_117 = arith.constant dense<0xFF800000> : vector<2x5xf32>
    %242 = vector.multi_reduction <maximumf>, %241, %cst_117 [2] : vector<2x5x5xf32> to vector<2x5xf32>
    %243 = vector.shape_cast %242 : vector<2x5xf32> to vector<2x5x1xf32>
    %244 = vector.broadcast %243 : vector<2x5x1xf32> to vector<2x5x5xf32>
    %245 = arith.subf %241, %244 : vector<2x5x5xf32>
    %246 = math.exp %245 : vector<2x5x5xf32>
    %cst_118 = arith.constant dense<0.000000e+00> : vector<2x5xf32>
    %247 = vector.multi_reduction <add>, %246, %cst_118 [2] : vector<2x5x5xf32> to vector<2x5xf32>
    %248 = vector.shape_cast %247 : vector<2x5xf32> to vector<2x5x1xf32>
    %249 = tpu.reciprocal %248 {approx = true} : vector<2x5x1xf32> -> vector<2x5x1xf32>
    %250 = vector.broadcast %249 : vector<2x5x1xf32> to vector<2x5x5xf32>
    %251 = arith.mulf %246, %250 : vector<2x5x5xf32>
    "tpu.trace_start"() <{level = 10 : i32, message = "bqk,bkd->bqd"}> : () -> ()
    %cst_119 = arith.constant dense<0.000000e+00> : vector<2x5x16xf32>
    %252 = tpu.matmul %251, %238, %cst_119 {dimension_numbers = #tpu.dot_dimension_numbers<[2], [1], [1], [2], [0, 0, 0, 1, 1, 2], [0], [0]>} : vector<2x5x5xf32>, vector<2x5x16xf32>, vector<2x5x16xf32> -> vector<2x5x16xf32>
    "tpu.trace_stop"() : () -> ()
    %253 = vector.shape_cast %252 : vector<2x5x16xf32> to vector<10x16xf32>
    %254 = vector.extract_strided_slice %190 {offsets = [0, 0], sizes = [16, 32], strides = [1, 1]} : vector<32x32xf32> to vector<16x32xf32>
    %cst_120 = arith.constant dense<0.000000e+00> : vector<10x32xf32>
    %255 = tpu.matmul %253, %254, %cst_120 {dimension_numbers = #tpu.dot_dimension_numbers<[1], [0], [0], [1], [0, 0, 1, 1], [], []>} : vector<10x16xf32>, vector<16x32xf32>, vector<10x32xf32> -> vector<10x32xf32>
    %256 = vector.shape_cast %192 : vector<32xf32> to vector<1x32xf32>
    %257 = vector.broadcast %256 : vector<1x32xf32> to vector<10x32xf32>
    %258 = arith.addf %257, %255 : vector<10x32xf32>
    %259 = vector.extract_strided_slice %232 {offsets = [0, 16], sizes = [10, 16], strides = [1, 1]} : vector<10x96xf32> to vector<10x16xf32>
    %260 = vector.shape_cast %259 : vector<10x16xf32> to vector<2x5x16xf32>
    %261 = vector.extract_strided_slice %232 {offsets = [0, 48], sizes = [10, 16], strides = [1, 1]} : vector<10x96xf32> to vector<10x16xf32>
    %262 = vector.shape_cast %261 : vector<10x16xf32> to vector<2x5x16xf32>
    %263 = vector.extract_strided_slice %232 {offsets = [0, 80], sizes = [10, 16], strides = [1, 1]} : vector<10x96xf32> to vector<10x16xf32>
    %264 = vector.shape_cast %263 : vector<10x16xf32> to vector<2x5x16xf32>
    "tpu.trace_start"() <{level = 10 : i32, message = "bqd,bkd->bqk"}> : () -> ()
    %cst_121 = arith.constant dense<0.000000e+00> : vector<2x5x5xf32>
    %265 = tpu.matmul %260, %262, %cst_121 {dimension_numbers = #tpu.dot_dimension_numbers<[2], [2], [1], [1], [0, 0, 0, 1, 1, 1], [0], [0]>} : vector<2x5x16xf32>, vector<2x5x16xf32>, vector<2x5x5xf32> -> vector<2x5x5xf32>
    "tpu.trace_stop"() : () -> ()
    %cst_122 = arith.constant 2.500000e-01 : f32
    %266 = vector.broadcast %cst_122 : f32 to vector<2x5x5xf32>
    %267 = arith.mulf %265, %266 : vector<2x5x5xf32>
    %cst_123 = arith.constant dense<0xFF800000> : vector<2x5xf32>
    %268 = vector.multi_reduction <maximumf>, %267, %cst_123 [2] : vector<2x5x5xf32> to vector<2x5xf32>
    %269 = vector.shape_cast %268 : vector<2x5xf32> to vector<2x5x1xf32>
    %270 = vector.broadcast %269 : vector<2x5x1xf32> to vector<2x5x5xf32>
    %271 = arith.subf %267, %270 : vector<2x5x5xf32>
    %272 = math.exp %271 : vector<2x5x5xf32>
    %cst_124 = arith.constant dense<0.000000e+00> : vector<2x5xf32>
    %273 = vector.multi_reduction <add>, %272, %cst_124 [2] : vector<2x5x5xf32> to vector<2x5xf32>
    %274 = vector.shape_cast %273 : vector<2x5xf32> to vector<2x5x1xf32>
    %275 = tpu.reciprocal %274 {approx = true} : vector<2x5x1xf32> -> vector<2x5x1xf32>
    %276 = vector.broadcast %275 : vector<2x5x1xf32> to vector<2x5x5xf32>
    %277 = arith.mulf %272, %276 : vector<2x5x5xf32>
    "tpu.trace_start"() <{level = 10 : i32, message = "bqk,bkd->bqd"}> : () -> ()
    %cst_125 = arith.constant dense<0.000000e+00> : vector<2x5x16xf32>
    %278 = tpu.matmul %277, %264, %cst_125 {dimension_numbers = #tpu.dot_dimension_numbers<[2], [1], [1], [2], [0, 0, 0, 1, 1, 2], [0], [0]>} : vector<2x5x5xf32>, vector<2x5x16xf32>, vector<2x5x16xf32> -> vector<2x5x16xf32>
    "tpu.trace_stop"() : () -> ()
    %279 = vector.shape_cast %278 : vector<2x5x16xf32> to vector<10x16xf32>
    %280 = vector.extract_strided_slice %190 {offsets = [16, 0], sizes = [16, 32], strides = [1, 1]} : vector<32x32xf32> to vector<16x32xf32>
    %cst_126 = arith.constant dense<0.000000e+00> : vector<10x32xf32>
    %281 = tpu.matmul %279, %280, %cst_126 {dimension_numbers = #tpu.dot_dimension_numbers<[1], [0], [0], [1], [0, 0, 1, 1], [], []>} : vector<10x16xf32>, vector<16x32xf32>, vector<10x32xf32> -> vector<10x32xf32>
    %282 = arith.addf %258, %281 : vector<10x32xf32>
    %283 = vector.shape_cast %251 : vector<2x5x5xf32> to vector<2x1x5x5xf32>
    %284 = vector.shape_cast %277 : vector<2x5x5xf32> to vector<2x1x5x5xf32>
    %285 = tpu.concatenate %283, %284 in 1 : vector<2x1x5x5xf32>, vector<2x1x5x5xf32> -> vector<2x2x5x5xf32>
    %c1_127 = arith.constant 1 : index
    %c0_128 = arith.constant 0 : index
    %c0_129 = arith.constant 0 : index
    %c0_130 = arith.constant 0 : index
    %c0_131 = arith.constant 0 : index
    %286 = vector.load %arg30[%c1_127, %c0_128, %c0_129, %c0_130, %c0_131] : memref<2x2x2x5x5xf32, #tpu.memory_space<vmem>>, vector<1x2x2x5x5xf32>
    %287 = vector.shape_cast %286 : vector<1x2x2x5x5xf32> to vector<2x2x5x5xf32>
    %288 = vector.shape_cast %285 : vector<2x2x5x5xf32> to vector<1x2x2x5x5xf32>
    tpu.vector_store %arg30[%c1_127, %c0_128, %c0_129, %c0_130, %c0_131], %288 {strides = array<i32>} : memref<2x2x2x5x5xf32, #tpu.memory_space<vmem>>, vector<1x2x2x5x5xf32>,
    %289 = arith.addf %176, %282 : vector<10x32xf32>
    %cst_132 = arith.constant dense<0.000000e+00> : vector<10xf32>
    %290 = vector.multi_reduction <add>, %289, %cst_132 [1] : vector<10x32xf32> to vector<10xf32>
    %291 = vector.shape_cast %290 : vector<10xf32> to vector<10x1xf32>
    %cst_133 = arith.constant 3.200000e+01 : f32
    %292 = vector.broadcast %cst_133 : f32 to vector<10x1xf32>
    %293 = arith.divf %291, %292 : vector<10x1xf32>
    %294 = vector.broadcast %293 : vector<10x1xf32> to vector<10x32xf32>
    %295 = arith.subf %289, %294 : vector<10x32xf32>
    %296 = arith.mulf %295, %295 : vector<10x32xf32>
    %cst_134 = arith.constant dense<0.000000e+00> : vector<10xf32>
    %297 = vector.multi_reduction <add>, %296, %cst_134 [1] : vector<10x32xf32> to vector<10xf32>
    %298 = vector.shape_cast %297 : vector<10xf32> to vector<10x1xf32>
    %cst_135 = arith.constant 3.200000e+01 : f32
    %299 = vector.broadcast %cst_135 : f32 to vector<10x1xf32>
    %300 = arith.divf %298, %299 : vector<10x1xf32>
    %301 = vector.broadcast %293 : vector<10x1xf32> to vector<10x32xf32>
    %302 = arith.subf %289, %301 : vector<10x32xf32>
    %cst_136 = arith.constant 9.99999996E-13 : f32
    %303 = vector.broadcast %cst_136 : f32 to vector<10x1xf32>
    %304 = arith.addf %300, %303 : vector<10x1xf32>
    %305 = math.rsqrt %304 : vector<10x1xf32>
    %306 = vector.broadcast %305 : vector<10x1xf32> to vector<10x32xf32>
    %307 = arith.mulf %302, %306 : vector<10x32xf32>
    %308 = vector.shape_cast %194 : vector<32xf32> to vector<1x32xf32>
    %309 = vector.broadcast %308 : vector<1x32xf32> to vector<10x32xf32>
    %310 = arith.mulf %307, %309 : vector<10x32xf32>
    %311 = vector.shape_cast %196 : vector<32xf32> to vector<1x32xf32>
    %312 = vector.broadcast %311 : vector<1x32xf32> to vector<10x32xf32>
    %313 = arith.addf %310, %312 : vector<10x32xf32>
    %cst_137 = arith.constant dense<0.000000e+00> : vector<10x64xf32>
    %314 = tpu.matmul %313, %198, %cst_137 {dimension_numbers = #tpu.dot_dimension_numbers<[1], [0], [0], [1], [0, 0, 1, 1], [], []>} : vector<10x32xf32>, vector<32x64xf32>, vector<10x64xf32> -> vector<10x64xf32>
    %315 = vector.shape_cast %200 : vector<64xf32> to vector<1x64xf32>
    %316 = vector.broadcast %315 : vector<1x64xf32> to vector<10x64xf32>
    %317 = arith.addf %314, %316 : vector<10x64xf32>
    %cst_138 = arith.constant 5.000000e-01 : f32
    %318 = vector.broadcast %cst_138 : f32 to vector<10x64xf32>
    %319 = arith.mulf %318, %317 : vector<10x64xf32>
    %cst_139 = arith.constant 4.471500e-02 : f32
    %320 = vector.broadcast %cst_139 : f32 to vector<10x64xf32>
    %321 = arith.mulf %320, %317 : vector<10x64xf32>
    %322 = arith.mulf %321, %317 : vector<10x64xf32>
    %323 = arith.mulf %322, %317 : vector<10x64xf32>
    %324 = arith.addf %317, %323 : vector<10x64xf32>
    %cst_140 = arith.constant 0.797884583 : f32
    %325 = vector.broadcast %cst_140 : f32 to vector<10x64xf32>
    %326 = arith.mulf %325, %324 : vector<10x64xf32>
    %327 = math.tanh %326 : vector<10x64xf32>
    %cst_141 = arith.constant 1.000000e+00 : f32
    %328 = vector.broadcast %cst_141 : f32 to vector<10x64xf32>
    %329 = arith.addf %328, %327 : vector<10x64xf32>
    %330 = arith.mulf %319, %329 : vector<10x64xf32>
    %cst_142 = arith.constant dense<0.000000e+00> : vector<10x32xf32>
    %331 = tpu.matmul %330, %202, %cst_142 {dimension_numbers = #tpu.dot_dimension_numbers<[1], [0], [0], [1], [0, 0, 1, 1], [], []>} : vector<10x64xf32>, vector<64x32xf32>, vector<10x32xf32> -> vector<10x32xf32>
    %332 = arith.addf %289, %331 : vector<10x32xf32>
    %333 = vector.shape_cast %204 : vector<32xf32> to vector<1x32xf32>
    %334 = vector.broadcast %333 : vector<1x32xf32> to vector<10x32xf32>
    %335 = arith.addf %332, %334 : vector<10x32xf32>
    %336 = vector.shape_cast %335 : vector<10x32xf32> to vector<2x5x32xf32>
    %c2 = arith.constant 2 : index
    %c0_143 = arith.constant 0 : index
    %c0_144 = arith.constant 0 : index
    %c0_145 = arith.constant 0 : index
    %337 = vector.load %arg29[%c2, %c0_143, %c0_144, %c0_145] : memref<3x2x5x32xf32, #tpu.memory_space<vmem>>, vector<1x2x5x32xf32>
    %338 = vector.shape_cast %337 : vector<1x2x5x32xf32> to vector<2x5x32xf32>
    %339 = vector.shape_cast %336 : vector<2x5x32xf32> to vector<1x2x5x32xf32>
    tpu.vector_store %arg29[%c2, %c0_143, %c0_144, %c0_145], %339 {strides = array<i32>} : memref<3x2x5x32xf32, #tpu.memory_space<vmem>>, vector<1x2x5x32xf32>,
    %c0_146 = arith.constant 0 : index
    %c0_147 = arith.constant 0 : index
    %340 = vector.load %arg17[%c0_146, %c0_147] : memref<1x32xf32, #tpu.memory_space<vmem>>, vector<1x32xf32>
    %341 = vector.shape_cast %340 : vector<1x32xf32> to vector<32xf32>
    %c0_148 = arith.constant 0 : index
    %c0_149 = arith.constant 0 : index
    %342 = vector.load %arg18[%c0_148, %c0_149] : memref<1x32xf32, #tpu.memory_space<vmem>>, vector<1x32xf32>
    %343 = vector.shape_cast %342 : vector<1x32xf32> to vector<32xf32>
    %cst_150 = arith.constant dense<0.000000e+00> : vector<10xf32>
    %344 = vector.multi_reduction <add>, %335, %cst_150 [1] : vector<10x32xf32> to vector<10xf32>
    %345 = vector.shape_cast %344 : vector<10xf32> to vector<10x1xf32>
    %cst_151 = arith.constant 3.200000e+01 : f32
    %346 = vector.broadcast %cst_151 : f32 to vector<10x1xf32>
    %347 = arith.divf %345, %346 : vector<10x1xf32>
    %348 = vector.broadcast %347 : vector<10x1xf32> to vector<10x32xf32>
    %349 = arith.subf %335, %348 : vector<10x32xf32>
    %350 = arith.mulf %349, %349 : vector<10x32xf32>
    %cst_152 = arith.constant dense<0.000000e+00> : vector<10xf32>
    %351 = vector.multi_reduction <add>, %350, %cst_152 [1] : vector<10x32xf32> to vector<10xf32>
    %352 = vector.shape_cast %351 : vector<10xf32> to vector<10x1xf32>
    %cst_153 = arith.constant 3.200000e+01 : f32
    %353 = vector.broadcast %cst_153 : f32 to vector<10x1xf32>
    %354 = arith.divf %352, %353 : vector<10x1xf32>
    %355 = vector.broadcast %347 : vector<10x1xf32> to vector<10x32xf32>
    %356 = arith.subf %335, %355 : vector<10x32xf32>
    %cst_154 = arith.constant 9.99999996E-13 : f32
    %357 = vector.broadcast %cst_154 : f32 to vector<10x1xf32>
    %358 = arith.addf %354, %357 : vector<10x1xf32>
    %359 = math.rsqrt %358 : vector<10x1xf32>
    %360 = vector.broadcast %359 : vector<10x1xf32> to vector<10x32xf32>
    %361 = arith.mulf %356, %360 : vector<10x32xf32>
    %362 = vector.shape_cast %341 : vector<32xf32> to vector<1x32xf32>
    %363 = vector.broadcast %362 : vector<1x32xf32> to vector<10x32xf32>
    %364 = arith.mulf %361, %363 : vector<10x32xf32>
    %365 = vector.shape_cast %343 : vector<32xf32> to vector<1x32xf32>
    %366 = vector.broadcast %365 : vector<1x32xf32> to vector<10x32xf32>
    %367 = arith.addf %364, %366 : vector<10x32xf32>
    %368 = vector.shape_cast %367 : vector<10x32xf32> to vector<2x5x32xf32>
    %c0_155 = arith.constant 0 : index
    %c0_156 = arith.constant 0 : index
    %c0_157 = arith.constant 0 : index
    %369 = vector.load %arg31[%c0_155, %c0_156, %c0_157] : memref<2x5x32xf32, #tpu.memory_space<vmem>>, vector<2x5x32xf32>
    tpu.vector_store %arg31[%c0_155, %c0_156, %c0_157], %368 {strides = array<i32>} : memref<2x5x32xf32, #tpu.memory_space<vmem>>, vector<2x5x32xf32>,
    %c0_158 = arith.constant 0 : index
    %c0_159 = arith.constant 0 : index
    %370 = vector.load %arg19[%c0_158, %c0_159] : memref<32x64xf32, #tpu.memory_space<vmem>>, vector<32x64xf32>
    %cst_160 = arith.constant dense<0.000000e+00> : vector<10x64xf32>
    %371 = tpu.matmul %367, %370, %cst_160 {dimension_numbers = #tpu.dot_dimension_numbers<[1], [0], [0], [1], [0, 0, 1, 1], [], []>} : vector<10x32xf32>, vector<32x64xf32>, vector<10x64xf32> -> vector<10x64xf32>
    %c0_161 = arith.constant 0 : index
    %c0_162 = arith.constant 0 : index
    %372 = vector.load %arg20[%c0_161, %c0_162] : memref<1x64xf32, #tpu.memory_space<vmem>>, vector<1x64xf32>
    %373 = vector.shape_cast %372 : vector<1x64xf32> to vector<64xf32>
    %374 = vector.shape_cast %373 : vector<64xf32> to vector<1x64xf32>
    %375 = vector.broadcast %374 : vector<1x64xf32> to vector<10x64xf32>
    %376 = arith.addf %371, %375 : vector<10x64xf32>
    %377 = math.tanh %376 : vector<10x64xf32>
    %c0_163 = arith.constant 0 : index
    %c0_164 = arith.constant 0 : index
    %378 = vector.load %arg21[%c0_163, %c0_164] : memref<32x64xf32, #tpu.memory_space<vmem>>, vector<32x64xf32>
    %cst_165 = arith.constant dense<0.000000e+00> : vector<10x64xf32>
    %379 = tpu.matmul %367, %378, %cst_165 {dimension_numbers = #tpu.dot_dimension_numbers<[1], [0], [0], [1], [0, 0, 1, 1], [], []>} : vector<10x32xf32>, vector<32x64xf32>, vector<10x64xf32> -> vector<10x64xf32>
    %c0_166 = arith.constant 0 : index
    %c0_167 = arith.constant 0 : index
    %380 = vector.load %arg22[%c0_166, %c0_167] : memref<1x64xf32, #tpu.memory_space<vmem>>, vector<1x64xf32>
    %381 = vector.shape_cast %380 : vector<1x64xf32> to vector<64xf32>
    %382 = vector.shape_cast %381 : vector<64xf32> to vector<1x64xf32>
    %383 = vector.broadcast %382 : vector<1x64xf32> to vector<10x64xf32>
    %384 = arith.addf %379, %383 : vector<10x64xf32>
    %cst_168 = arith.constant 5.000000e-01 : f32
    %385 = vector.broadcast %cst_168 : f32 to vector<10x64xf32>
    %386 = arith.mulf %385, %384 : vector<10x64xf32>
    %cst_169 = arith.constant 4.471500e-02 : f32
    %387 = vector.broadcast %cst_169 : f32 to vector<10x64xf32>
    %388 = arith.mulf %387, %384 : vector<10x64xf32>
    %389 = arith.mulf %388, %384 : vector<10x64xf32>
    %390 = arith.mulf %389, %384 : vector<10x64xf32>
    %391 = arith.addf %384, %390 : vector<10x64xf32>
    %cst_170 = arith.constant 0.797884583 : f32
    %392 = vector.broadcast %cst_170 : f32 to vector<10x64xf32>
    %393 = arith.mulf %392, %391 : vector<10x64xf32>
    %394 = math.tanh %393 : vector<10x64xf32>
    %cst_171 = arith.constant 1.000000e+00 : f32
    %395 = vector.broadcast %cst_171 : f32 to vector<10x64xf32>
    %396 = arith.addf %395, %394 : vector<10x64xf32>
    %397 = arith.mulf %386, %396 : vector<10x64xf32>
    %398 = arith.mulf %377, %397 : vector<10x64xf32>
    %c0_172 = arith.constant 0 : index
    %c0_173 = arith.constant 0 : index
    %399 = vector.load %arg23[%c0_172, %c0_173] : memref<64x1xf32, #tpu.memory_space<vmem>>, vector<64x1xf32>
    %cst_174 = arith.constant dense<0.000000e+00> : vector<10x1xf32>
    %400 = tpu.matmul %398, %399, %cst_174 {dimension_numbers = #tpu.dot_dimension_numbers<[1], [0], [0], [1], [0, 0, 1, 1], [], []>} : vector<10x64xf32>, vector<64x1xf32>, vector<10x1xf32> -> vector<10x1xf32>
    %c0_175 = arith.constant 0 : index
    %c0_176 = arith.constant 0 : index
    %401 = vector.load %arg24[%c0_175, %c0_176] : memref<1x1xf32, #tpu.memory_space<vmem>>, vector<1x1xf32>
    %402 = vector.shape_cast %401 : vector<1x1xf32> to vector<1xf32>
    %403 = vector.shape_cast %402 : vector<1xf32> to vector<1x1xf32>
    %404 = vector.broadcast %403 : vector<1x1xf32> to vector<10x1xf32>
    %405 = arith.addf %400, %404 : vector<10x1xf32>
    %406 = vector.extract_strided_slice %405 {offsets = [0, 0], sizes = [5, 1], strides = [1, 1]} : vector<10x1xf32> to vector<5x1xf32>
    %cst_177 = arith.constant dense<0xFF800000> : vector<1xf32>
    %407 = vector.multi_reduction <maximumf>, %406, %cst_177 [0] : vector<5x1xf32> to vector<1xf32>
    %408 = vector.shape_cast %407 : vector<1xf32> to vector<1x1xf32>
    %409 = vector.broadcast %408 : vector<1x1xf32> to vector<5x1xf32>
    %410 = arith.subf %406, %409 : vector<5x1xf32>
    %411 = math.exp %410 : vector<5x1xf32>
    %cst_178 = arith.constant dense<0.000000e+00> : vector<1xf32>
    %412 = vector.multi_reduction <add>, %411, %cst_178 [0] : vector<5x1xf32> to vector<1xf32>
    %413 = vector.shape_cast %412 : vector<1xf32> to vector<1x1xf32>
    %414 = tpu.reciprocal %413 {approx = true} : vector<1x1xf32> -> vector<1x1xf32>
    %415 = vector.broadcast %414 : vector<1x1xf32> to vector<5x1xf32>
    %416 = arith.mulf %411, %415 : vector<5x1xf32>
    %417 = vector.extract_strided_slice %367 {offsets = [0, 0], sizes = [5, 32], strides = [1, 1]} : vector<10x32xf32> to vector<5x32xf32>
    %cst_179 = arith.constant dense<0.000000e+00> : vector<1x32xf32>
    %418 = tpu.matmul %416, %417, %cst_179 {dimension_numbers = #tpu.dot_dimension_numbers<[0], [0], [1], [1], [0, 1, 1, 1], [], []>} : vector<5x1xf32>, vector<5x32xf32>, vector<1x32xf32> -> vector<1x32xf32>
    %419 = vector.extract_strided_slice %405 {offsets = [5, 0], sizes = [5, 1], strides = [1, 1]} : vector<10x1xf32> to vector<5x1xf32>
    %cst_180 = arith.constant dense<0xFF800000> : vector<1xf32>
    %420 = vector.multi_reduction <maximumf>, %419, %cst_180 [0] : vector<5x1xf32> to vector<1xf32>
    %421 = vector.shape_cast %420 : vector<1xf32> to vector<1x1xf32>
    %422 = vector.broadcast %421 : vector<1x1xf32> to vector<5x1xf32>
    %423 = arith.subf %419, %422 : vector<5x1xf32>
    %424 = math.exp %423 : vector<5x1xf32>
    %cst_181 = arith.constant dense<0.000000e+00> : vector<1xf32>
    %425 = vector.multi_reduction <add>, %424, %cst_181 [0] : vector<5x1xf32> to vector<1xf32>
    %426 = vector.shape_cast %425 : vector<1xf32> to vector<1x1xf32>
    %427 = tpu.reciprocal %426 {approx = true} : vector<1x1xf32> -> vector<1x1xf32>
    %428 = vector.broadcast %427 : vector<1x1xf32> to vector<5x1xf32>
    %429 = arith.mulf %424, %428 : vector<5x1xf32>
    %430 = vector.extract_strided_slice %367 {offsets = [5, 0], sizes = [5, 32], strides = [1, 1]} : vector<10x32xf32> to vector<5x32xf32>
    %cst_182 = arith.constant dense<0.000000e+00> : vector<1x32xf32>
    %431 = tpu.matmul %429, %430, %cst_182 {dimension_numbers = #tpu.dot_dimension_numbers<[0], [0], [1], [1], [0, 1, 1, 1], [], []>} : vector<5x1xf32>, vector<5x32xf32>, vector<1x32xf32> -> vector<1x32xf32>
    %432 = vector.shape_cast %416 : vector<5x1xf32> to vector<1x5x1xf32>
    %433 = vector.shape_cast %429 : vector<5x1xf32> to vector<1x5x1xf32>
    %434 = tpu.concatenate %432, %433 in 0 : vector<1x5x1xf32>, vector<1x5x1xf32> -> vector<2x5x1xf32>
    %c0_183 = arith.constant 0 : index
    %c0_184 = arith.constant 0 : index
    %c0_185 = arith.constant 0 : index
    %435 = vector.load %arg33[%c0_183, %c0_184, %c0_185] : memref<2x5x1xf32, #tpu.memory_space<vmem>>, vector<2x5x1xf32>
    tpu.vector_store %arg33[%c0_183, %c0_184, %c0_185], %434 {strides = array<i32>} : memref<2x5x1xf32, #tpu.memory_space<vmem>>, vector<2x5x1xf32>,
    %436 = vector.shape_cast %418 : vector<1x32xf32> to vector<1x1x32xf32>
    %437 = vector.shape_cast %431 : vector<1x32xf32> to vector<1x1x32xf32>
    %438 = tpu.concatenate %436, %437 in 0 : vector<1x1x32xf32>, vector<1x1x32xf32> -> vector<2x1x32xf32>
    %c0_186 = arith.constant 0 : index
    %c0_187 = arith.constant 0 : index
    %c0_188 = arith.constant 0 : index
    %439 = vector.load %arg32[%c0_186, %c0_187, %c0_188] : memref<2x1x32xf32, #tpu.memory_space<vmem>>, vector<2x1x32xf32>
    tpu.vector_store %arg32[%c0_186, %c0_187, %c0_188], %438 {strides = array<i32>} : memref<2x1x32xf32, #tpu.memory_space<vmem>>, vector<2x1x32xf32>,
    %440 = vector.shape_cast %438 : vector<2x1x32xf32> to vector<2x32xf32>
    %c0_189 = arith.constant 0 : index
    %c0_190 = arith.constant 0 : index
    %441 = vector.load %arg25[%c0_189, %c0_190] : memref<32x16xf32, #tpu.memory_space<vmem>>, vector<32x16xf32>
    %cst_191 = arith.constant dense<0.000000e+00> : vector<2x16xf32>
    %442 = tpu.matmul %440, %441, %cst_191 {dimension_numbers = #tpu.dot_dimension_numbers<[1], [0], [0], [1], [0, 0, 1, 1], [], []>} : vector<2x32xf32>, vector<32x16xf32>, vector<2x16xf32> -> vector<2x16xf32>
    %c0_192 = arith.constant 0 : index
    %c0_193 = arith.constant 0 : index
    %443 = vector.load %arg26[%c0_192, %c0_193] : memref<1x16xf32, #tpu.memory_space<vmem>>, vector<1x16xf32>
    %444 = vector.shape_cast %443 : vector<1x16xf32> to vector<16xf32>
    %445 = vector.shape_cast %444 : vector<16xf32> to vector<1x16xf32>
    %446 = vector.broadcast %445 : vector<1x16xf32> to vector<2x16xf32>
    %447 = arith.addf %442, %446 : vector<2x16xf32>
    %cst_194 = arith.constant 0.000000e+00 : f32
    %448 = vector.broadcast %cst_194 : f32 to vector<2x16xf32>
    %449 = arith.maximumf %447, %448 : vector<2x16xf32>
    %c0_195 = arith.constant 0 : index
    %c0_196 = arith.constant 0 : index
    %450 = vector.load %arg27[%c0_195, %c0_196] : memref<16x19xf32, #tpu.memory_space<vmem>>, vector<16x19xf32>
    %cst_197 = arith.constant dense<0.000000e+00> : vector<2x19xf32>
    %451 = tpu.matmul %449, %450, %cst_197 {dimension_numbers = #tpu.dot_dimension_numbers<[1], [0], [0], [1], [0, 0, 1, 1], [], []>} : vector<2x16xf32>, vector<16x19xf32>, vector<2x19xf32> -> vector<2x19xf32>
    %c0_198 = arith.constant 0 : index
    %c0_199 = arith.constant 0 : index
    %452 = vector.load %arg28[%c0_198, %c0_199] : memref<1x19xf32, #tpu.memory_space<vmem>>, vector<1x19xf32>
    %453 = vector.shape_cast %452 : vector<1x19xf32> to vector<19xf32>
    %454 = vector.shape_cast %453 : vector<19xf32> to vector<1x19xf32>
    %455 = vector.broadcast %454 : vector<1x19xf32> to vector<2x19xf32>
    %456 = arith.addf %451, %455 : vector<2x19xf32>
    %cst_200 = arith.constant 0.000000e+00 : f32
    %457 = vector.broadcast %cst_200 : f32 to vector<2x19xf32>
    %458 = arith.subf %457, %456 : vector<2x19xf32>
    %459 = math.exp %458 : vector<2x19xf32>
    %cst_201 = arith.constant 1.000000e+00 : f32
    %460 = vector.broadcast %cst_201 : f32 to vector<2x19xf32>
    %461 = arith.addf %460, %459 : vector<2x19xf32>
    %462 = tpu.reciprocal %461 {approx = true} : vector<2x19xf32> -> vector<2x19xf32>
    %c0_202 = arith.constant 0 : index
    %c0_203 = arith.constant 0 : index
    %463 = vector.load %arg34[%c0_202, %c0_203] : memref<2x19xf32, #tpu.memory_space<vmem>>, vector<2x19xf32>
    tpu.vector_store %arg34[%c0_202, %c0_203], %462 {strides = array<i32>} : memref<2x19xf32, #tpu.memory_space<vmem>>, vector<2x19xf32>,
    return
  }
}

</mosaic_0001>

<bundles_post_ra>
// kernel: vit_pool_forward.1
= control target key start
LH: loop header
LB: loop body
LE: loop exit
PB: predicated region body
PF: predicated region fallthrough
CT: control target
= control target key end

     0   :  { %s5954_s6 = smov 1   ;;  %s5955_s10 = smov 2   ;;  %s6809_s0 = inlined_call_operand.smem [shape: u32[35], index: -1, kind: input, shape index: {}] }
   0x1   :  { %s6009_s5 = sld [smem:[%s6809_s0]]   ;;  %s5956_s14 = smov 3  }
   0x2   :  { %s6014_s9 = sld [smem:[%s6809_s0 + %s5954_s6]]   ;;  %s5957_s18 = smov 4  }
   0x3   :  { %s6019_s13 = sld [smem:[%s6809_s0 + %s5955_s10]]   ;;  %s5958_s22 = smov 5  }
   0x4   :  { %s6024_s17 = sld [smem:[%s6809_s0 + %s5956_s14]]   ;;  %s5959_s26 = smov 6  }
   0x5   :  { %s6029_s21 = sld [smem:[%s6809_s0 + %s5957_s18]]   ;;  %s5960_s30 = smov 7  }
   0x6   :  { %s6034_s25 = sld [smem:[%s6809_s0 + %s5958_s22]]   ;;  %s5961_s4 = smov 8  }
   0x7   :  { %s6039_s29 = sld [smem:[%s6809_s0 + %s5959_s26]]   ;;  %s5962_s10 = smov 9  }
   0x8   :  { %s6044_s3 = sld [smem:[%s6809_s0 + %s5960_s30]]   ;;  %s5963_s15 = smov 10  }
   0x9   :  { %s6049_s8 = sld [smem:[%s6809_s0 + %s5961_s4]]   ;;  %s5964_s20 = smov 11  }
   0xa   :  { %s6054_s14 = sld [smem:[%s6809_s0 + %s5962_s10]]   ;;  %s5965_s26 = smov 12  }
   0xb   :  { %s6059_s19 = sld [smem:[%s6809_s0 + %s5963_s15]]   ;;  %s5966_s1 = smov 13  }
   0xc   :  { %s6064_s24 = sld [smem:[%s6809_s0 + %s5964_s20]]   ;;  %s5967_s7 = smov 14  }
   0xd   :  { %s6069_s30 = sld [smem:[%s6809_s0 + %s5965_s26]]   ;;  %s5968_s15 = smov 15  }
   0xe   :  { %s6074_s6 = sld [smem:[%s6809_s0 + %s5966_s1]]   ;;  %s5969_s22 = smov 16  }
   0xf   :  { %s6079_s12 = sld [smem:[%s6809_s0 + %s5967_s7]]   ;;  %s5970_s28 = smov 17  }
  0x10   :  { %s6084_s20 = sld [smem:[%s6809_s0 + %s5968_s15]]   ;;  %s5971_s7 = smov 18  }
  0x11   :  { %s6089_s27 = sld [smem:[%s6809_s0 + %s5969_s22]]   ;;  %s5972_s15 = smov 19  }
  0x12   :  { %s6094_s4 = sld [smem:[%s6809_s0 + %s5970_s28]]   ;;  %s5973_s22 = smov 20  }
  0x13   :  { %6819 = sst [smem:[#allocation9_spill]] %s6069_s30  ;;  %s5974_s28 = smov 21  }
  0x14   :  { %s5978_s1 = smov 25   ;;  %s5979_s10 = smov 26  }
  0x15   :  { %6820 = sst [smem:[#allocation10_spill]] %s6079_s12  ;;  %s5980_s16 = smov 27  }
  0x16   :  { %6821 = sst [smem:[#allocation11_spill]] %s6084_s20  ;;  %s5981_s23 = smov 28  }
  0x17   :  { %6822 = sst [smem:[#allocation12_spill]] %s6089_s27 }
  0x18   :  { %6823 = sst [smem:[#allocation13_spill]] %s6094_s4 }
  0x19   :  { %s6099_s12 = sld [smem:[%s6809_s0 + %s5971_s7]]   ;;  %s5975_s7 = smov 22  }
  0x1a   :  { %s6104_s20 = sld [smem:[%s6809_s0 + %s5972_s15]]   ;;  %s5976_s15 = smov 23  }
  0x1b   :  { %s6109_s27 = sld [smem:[%s6809_s0 + %s5973_s22]]   ;;  %s5977_s22 = smov 24  }
  0x1c   :  { %s6114_s4 = sld [smem:[%s6809_s0 + %s5974_s28]]   ;;  %s5986_s28 = smov 33  }
  0x1d   :  { %s6147_s30 = sld [smem:[%s6809_s0 + %s5981_s23]]   ;;  %s5985_s23 = smov 32  }
  0x1f   :  { %6824 = sst [smem:[#allocation14_spill]] %s6099_s12 }
  0x20   :  { %6825 = sst [smem:[#allocation15_spill]] %s6104_s20 }
  0x21   :  { %6826 = sst [smem:[#allocation16_spill]] %s6109_s27 }
  0x22   :  { %6827 = sst [smem:[#allocation17_spill]] %s6114_s4 }
  0x23   :  { %s6119_s12 = sld [smem:[%s6809_s0 + %s5975_s7]]  }
  0x24   :  { %s6124_s20 = sld [smem:[%s6809_s0 + %s5976_s15]]  }
  0x25   :  { %s5086_s27 = sld [smem:[%s6809_s0 + %s5977_s22]]  }
  0x26   :  { %s6132_s4 = sld [smem:[%s6809_s0 + %s5978_s1]]   ;;  %s5982_s1 = smov 29  }
  0x27   :  { %6833 = sst [smem:[#allocation23_spill]] %s6147_s30 }
  0x29   :  { %6828 = sst [smem:[#allocation18_spill]] %s6119_s12 }
  0x2a   :  { %6829 = sst [smem:[#allocation19_spill]] %s6124_s20 }
  0x2b   :  { %s6137_s12 = sld [smem:[%s6809_s0 + %s5979_s10]]   ;;  %s5983_s10 = smov 30   ;;  %v75_v0 = vstv %s5086_s27 }
  0x2c   :  { %6830 = sst [smem:[#allocation20_spill]] %s6132_s4  ;;  %76 = vst [vmem:[#allocation2] sm:$0x1] %v75_v0  ;;  %s5987_s27 = smov 34  }
  0x2d   :  { %s6142_s20 = sld [smem:[%s6809_s0 + %s5980_s16]]   ;;  %s5984_s16 = smov 31  }
  0x2e   :  { %s6152_s4 = sld [smem:[%s6809_s0 + %s5982_s1]]  }
  0x2f   :  { %s6162_s22 = sld [smem:[%s6809_s0 + %s5984_s16]]  }
  0x30   :  { %s6167_s1 = sld [smem:[%s6809_s0 + %s5985_s23]]  }
  0x31   :  { %6831 = sst [smem:[#allocation21_spill]] %s6137_s12 }
  0x32   :  { %s6157_s12 = sld [smem:[%s6809_s0 + %s5983_s10]]  }
  0x33   :  { %6832 = sst [smem:[#allocation22_spill]] %s6142_s20 }
  0x34   :  { %s6172_s10 = sld [smem:[%s6809_s0 + %s5986_s28]]  }
  0x35   :  { %s6177_s15 = sld [smem:[%s6809_s0 + %s5987_s27]]  }
  0x36   :  { %77 = vsyncpa [#allocation4], 0  ;;  %v139_v1 = vld [vmem:[%s6014_s9] sm:$0xff]  ;;  %v140_v2 = vld [vmem:[%s6014_s9 + $0x8] sm:$0xff]  ;;  %v5988_v4 = vmov 0.0|0.0   ;;  %vm175_vm0 = vcmask 523264  }
  0x37   :  { %v141_v3 = vld [vmem:[%s6014_s9 + $0x10] sm:$0xff]  ;;  %5609 = vmatprep.subr.bf16.mxu0 %v5988_v4  ;;  %v5610_v5 = vpack.c.bf16 %v140_v2, %v139_v1  ;;  %v142_v6 = vld [vmem:[%s6014_s9 + $0x18] sm:$0xff]  ;;  %v143_v8 = vld [vmem:[%s6014_s9 + $0x20] sm:$0xff] }
  0x38   :  { %v5613_v7 = vpack.c.bf16 %v142_v6, %v141_v3  ;;  %v144_v9 = vld [vmem:[%s6014_s9 + $0x28] sm:$0xff]  ;;  %v145_v11 = vld [vmem:[%s6014_s9 + $0x30] sm:$0xff]  ;;  %v146_v12 = vld [vmem:[%s6014_s9 + $0x38] sm:$0xff] }
  0x39   :  { %5611 = vmatpush1.bf16.msra.mxu0 %v5610_v5  ;;  %v5616_v10 = vpack.c.bf16 %v144_v9, %v143_v8  ;;  %v5823_v13 = vld [vmem:[%s6009_s5 + $0x4] ss:$8 sps:$4 sm:$0xff]  }
  0x3a   :  { %5612 = vmatprep.subr.bf16.mxu0 %v5988_v4 }
  0x3d   :  { %5614 = vmatpush1.bf16.msra.mxu0 %v5613_v7 }
  0x3e   :  { %5615 = vmatprep.subr.bf16.mxu0 %v5988_v4 }
  0x3f   :  { %78 = vsyncpa [#allocation6], 0  ;;  %v5619_v14 = vpack.c.bf16 %v146_v12, %v145_v11  ;;  %5098 = vmatprep.mubr.msk.f32.mxu0 %vm175_vm0, %v5823_v13  ;;  %v147_v15 = vld [vmem:[%s6014_s9 + $0x40] sm:$0xff]  ;;  %v148_v16 = vld [vmem:[%s6014_s9 + $0x48] sm:$0xff]  ;;  %v254_v40 = vlaneseq  ;;  %v5989_v42 = vmov 1966171168  }
  0x40   :  { %v5622_v17 = vpack.c.bf16 %v148_v16, %v147_v15  ;;  %v149_v18 = vld [vmem:[%s6014_s9 + $0x50] sm:$0xff]  ;;  %v150_v19 = vld [vmem:[%s6014_s9 + $0x58] sm:$0xff]  ;;  %v151_v21 = vld [vmem:[%s6014_s9 + $0x60] sm:$0xff]  ;;  %v277_v43 = vunpack.c.l.s4 %v5989_v42  ;;  %vm261_vm1 = vcmask 1040384   ;;  %vm263_vm2 = vcmask 1044480   ;;  %s5992_s0 = smov 96  }
  0x41   :  { %5617 = vmatpush1.bf16.msra.mxu0 %v5616_v10  ;;  %v5625_v20 = vpack.c.bf16 %v150_v19, %v149_v18  ;;  %v152_v22 = vld [vmem:[%s6014_s9 + $0x68] sm:$0xff]  ;;  %v153_v24 = vld [vmem:[%s6014_s9 + $0x70] sm:$0xff]  ;;  %v154_v25 = vld [vmem:[%s6014_s9 + $0x78] sm:$0xff]  ;;  %v255_v41 = vshrl.u32 %v254_v40, 7  ;;  %vm265_vm3 = vcmask 1045504   ;;  %vm457_vm4 = vcmask 261120  }
  0x42   :  { %5618 = vmatprep.subr.bf16.mxu0 %v5988_v4  ;;  %v5628_v23 = vpack.c.bf16 %v152_v22, %v151_v21  ;;  %v5631_v26 = vpack.c.bf16 %v154_v25, %v153_v24  ;;  %v155_v27 = vld [vmem:[%s6014_s9 + $0x80] sm:$0xff]  ;;  %v156_v28 = vld [vmem:[%s6014_s9 + $0x88] sm:$0xff]  ;;  %v157_v30 = vld [vmem:[%s6014_s9 + $0x90] sm:$0xff]  ;;  %v278_v51 = vunpack.c.0.s8 %v277_v43  ;;  %vm461_vm5 = vcmask 254976   ;;  %s6835_s30 = sld [smem:[#allocation11_spill]]  ;;  %s6836_s20 = sld [smem:[#allocation10_spill]] }
  0x43   :  { %v5634_v29 = vpack.c.bf16 %v156_v28, %v155_v27  ;;  %v158_v31 = vld [vmem:[%s6014_s9 + $0x98] sm:$0xff]  ;;  %v159_v33 = vld [vmem:[%s6014_s9 + $0xa0] sm:$0xff]  ;;  %v160_v34 = vld [vmem:[%s6014_s9 + $0xa8] sm:$0xff]  ;;  %v256_v46 = vsub.s32 0, %v255_v41  ;;  %vm426_vm6 = vcmask 258048   ;;  %vm5991_vm7 = vmmov 0  }
  0x44   :  { %v5637_v32 = vpack.c.bf16 %v158_v31, %v157_v30  ;;  %v5640_v35 = vpack.c.bf16 %v160_v34, %v159_v33  ;;  %v161_v36 = vld [vmem:[%s6014_s9 + $0xb0] sm:$0xff]  ;;  %v162_v37 = vld [vmem:[%s6014_s9 + $0xb8] sm:$0xff]  ;;  %v5821_v39 = vld [vmem:[%s6009_s5] ss:$8 sps:$4 sm:$0xff]   ;;  %v6224_v59 = vsub.s32 %v278_v51, %v255_v41  ;;  %vm697_vm8 = vcmask 130048   ;;  %s5993_s5 = smov 64  }
  0x45   :  { %5620 = vmatpush1.bf16.msra.mxu0 %v5619_v14  ;;  %v5643_v38 = vpack.c.bf16 %v162_v37, %v161_v36  ;;  %v5097_v44 = vld [vmem:[%s6019_s13] ss:$0 sm:$0xff]  ;;  %vm889_vm9 = vcmask 36864   ;;  %s5994_s9 = smov 80   ;;  %s5995_s13 = smov 112   ;;  %vm914_vm10 = vcmask 39936  }
  0x46   :  { %5621 = vmatprep.subr.bf16.mxu0 %v5988_v4  ;;  %v249_v45 = vld [vmem:[%s6029_s21] sm:$0x1f]  ;;  %s6834_s21 = sld [smem:[#allocation9_spill]]  ;;  %s6837_s16 = sld [smem:[#allocation12_spill]]  ;;  %vm4703_vm11 = vcmask 1042432   ;;  %vm4686_vm12 = vcmask 1024  }
  0x47   :  { %v248_v47 = vld [vmem:[%s6024_s17] sm:$0x1]  ;;  %v268_v50 = vrot.slane %v249_v45, 3  ;;  %s5996_s17 = smov 48   ;;  %vm4557_vm13 = vcmask 4096   ;;  %vm4684_vm14 = vcmask 7173  }
  0x48   :  { %v257_v53 = vrot.slane %v248_v47, %v256_v46  ;;  %v432_v46 = vld [vmem:[%s6044_s3 + $0x8] sm:$0xff]  ;;  %vm4836_vm15 = vcmask 253952   ;;  %s5997_s18 = smov [#allocation3]  }
  0x49   :  { %5623 = vmatpush1.bf16.msra.mxu0 %v5622_v17  ;;  %v270_v57 = vsel %vm263_vm2, %v249_v45, %v268_v50  ;;  %v431_v45 = vld [vmem:[%s6044_s3] sm:$0xff] }
  0x4a   :  { %5624 = vmatprep.subr.bf16.mxu0 %v5988_v4 }
  0x4d   :  { %5626 = vmatpush1.bf16.msra.mxu0 %v5625_v20 }
  0x4e   :  { %5627 = vmatprep.subr.bf16.mxu0 %v5988_v4 }
  0x51   :  { %5629 = vmatpush1.bf16.msra.mxu0 %v5628_v23 }
  0x52   :  { %5630 = vmatprep.subr.bf16.mxu0 %v5988_v4 }
  0x55   :  { %5632 = vmatpush1.bf16.msra.mxu0 %v5631_v26 }
  0x56   :  { %5633 = vmatprep.subr.bf16.mxu0 %v5988_v4 }
  0x59   :  { %5635 = vmatpush1.bf16.msra.mxu0 %v5634_v29 }
  0x5a   :  { %5636 = vmatprep.subr.bf16.mxu0 %v5988_v4 }
  0x5d   :  { %5638 = vmatpush1.bf16.msra.mxu0 %v5637_v32 }
  0x5e   :  { %5639 = vmatprep.subr.bf16.mxu0 %v5988_v4 }
  0x61   :  { %5641 = vmatpush1.bf16.msra.mxu0 %v5640_v35 }
  0x62   :  { %5642 = vmatprep.subr.bf16.mxu0 %v5988_v4 }
  0x65   :  { %5644 = vmatpush1.bf16.msra.mxu0 %v5643_v38 }
  0x68   :  { %243 = vmatmul.mubr.f32.vlgmr.msra.gmra.mrb[0].mxu0 %v5821_v39 }
 0x13b   :  { %v244_v48 = vpop.f32.mrb[0].mxu0 }
 0x13c   :  { %v245_v49 = vadd.f32 %v5097_v44, %v244_v48  ;;  %v246_v52 = vpop.f32.mrb[1].mxu0  ;;  %v5645_v48 = vpack.c.bf16 %v432_v46, %v431_v45 }
 0x13e   :  { %v251_v54 = vrot.slane %v245_v49, 7  ;;  %v259_v55 = vrot.slane %v245_v49, 6  ;;  %v434_v49 = vld [vmem:[%s6044_s3 + $0x18] sm:$0xff]  ;;  %5646 = vmatprep.subr.bf16.mxu1 %v5645_v48 }
 0x13f   :  { %5648 = vmatpush3.bf16.msra.mxu1 %v5645_v48 }
 0x140   :  { %v262_v56 = vsel %vm261_vm1, %v248_v47, %v251_v54  ;;  %v6222_v58 = vadd.f32 %v268_v50, %v259_v55  ;;  %v433_v47 = vld [vmem:[%s6044_s3 + $0x10] sm:$0xff] }
 0x141   :  { %v264_v60 = vsel %vm263_vm2, %v262_v56, %v257_v53  ;;  %v5649_v50 = vpack.c.bf16 %v434_v49, %v433_v47 }
 0x142   :  { %v266_v61 = vsel %vm265_vm3, %v264_v60, %v259_v55  ;;  %v330_v63 = vrot.slane %v6222_v58, %v6224_v59  ;;  %v462_v7 = vsel %vm461_vm5, %v6222_v58, 0.0  ;;  %v5100_v60 = vld [vmem:[%s6034_s25] ss:$0 sm:$0xff] }
 0x143   :  { %v6227_v62 = vadd.f32 %v270_v57, %v266_v61  ;;  %5650 = vmatprep.subr.bf16.mxu1 %v5649_v50 }
 0x144   :  { %v331_v6 = vcombine.high %v330_v63, %v330_v63  ;;  %v338_v16 = vrot.slane %v330_v63, %v6224_v59  ;;  %5652 = vmatpush3.bf16.msra.mxu1 %v5649_v50  ;;  %v5101_v63 = vld [vmem:[%s6039_s29] ss:$0 sm:$0xff] }
 0x145   :  { %v275_v0 = vcombine.high %v6227_v62, %v6227_v62  ;;  %v282_v1 = vrot.slane %v6227_v62, %v6224_v59  ;;  %v458_v2 = vsel %vm457_vm4, %v6227_v62, 0.0 }
 0x146   :  { %459 = vadd.xlane.f32.xlu0 %v458_v2  ;;  %v345_v17 = vrot.slane %v331_v6, %v6224_v59 }
 0x147   :  { %v289_v3 = vrot.slane %v275_v0, %v6224_v59  ;;  %v290_v5 = vcombine.high %v282_v1, %v282_v1  ;;  %v298_v9 = vrot.slane %v282_v1, %v6224_v59 }
 0x148   :  { %v407_v25 = vrot.slane %v345_v17, %v6224_v59 }
 0x149   :  { %v291_v8 = vcombine.high %v289_v3, %v289_v3  ;;  %v305_v10 = vrot.slane %v289_v3, %v6224_v59  ;;  %v312_v11 = vrot.slane %v290_v5, %v6224_v59 }
 0x14a   :  { %463 = vadd.xlane.f32.xlu0 %v462_v7  ;;  %v422_v33 = vrot.slane %v407_v25, %v6224_v59  ;;  %v5990_v7 = vmov 0.0  }
 0x14b   :  { %v319_v12 = vrot.slane %v291_v8, %v6224_v59  ;;  %v321_v13 = vcombine.high %v305_v10, %v305_v10  ;;  %v346_v14 = vcombine.low %v298_v9, %v312_v11  ;;  %v5099_v15 = vcombine.high %v298_v9, %v312_v11  ;;  %5361 = vmatprep.subr.mxu1 %v5990_v7  ;;  %v5102_v8 = vld [vmem:[%s6049_s8] ss:$0 sm:$0xff] }
 0x14c   :  { %v368_v18 = vrot.slane %v305_v10, %v6224_v59 }
 0x14d   :  { %v323_v19 = vcombine.high %v319_v12, %v319_v12  ;;  %v354_v20 = vrot.slane %v346_v14, %v6224_v59  ;;  %v361_v21 = vrot.slane %v5099_v15, %v6224_v59  ;;  %v385_v22 = vcombine.low %v319_v12, %v321_v13 }
 0x14e   :  { %v383_v27 = vrot.slane %v368_v18, %v6224_v59 }
 0x14f   :  { %v369_v23 = vcombine.low %v354_v20, %v361_v21  ;;  %v386_v24 = vcombine.low %v323_v19, %v338_v16  ;;  %v393_v28 = vrot.slane %v385_v22, %v6224_v59 }
 0x151   :  { %v376_v26 = vrot.slane %v369_v23, %v6224_v59  ;;  %v400_v29 = vrot.slane %v386_v24, %v6224_v59 }
 0x153   :  { %v384_v30 = vcombine.low %v376_v26, %v383_v27  ;;  %v408_v31 = vcombine.low %v393_v28, %v400_v29 }
 0x155   :  { %v415_v32 = vrot.slane %v408_v31, %v6224_v59  ;;  %427 = vst.msk [vmem:[%s6152_s4] sm:$0x1f] %vm426_vm6, %v384_v30 }
 0x157   :  { %v423_v34 = vcombine.low %v415_v32, %v422_v33 }
 0x159   :  { %428 = vst.msk [vmem:[%s6152_s4 + $0x8] sm:$0x1f] %vm426_vm6, %v423_v34 }
 0x1d3   :  { %v460_v35 = vpop.xlane.xlu0 %459 }
 0x1d4   :  { %v466_v36 = vmul.f32 0.03125, %v460_v35 }
 0x1d6   :  { %v468_v37 = vsub.f32 %v6227_v62, %v466_v36 }
 0x1d7   :  { %v464_v38 = vpop.xlane.xlu0 %463 }
 0x1d8   :  { %v467_v39 = vmul.f32 0.03125, %v464_v38  ;;  %v470_v40 = vmul.f32 %v468_v37, %v468_v37 }
 0x1da   :  { %v469_v41 = vsub.f32 %v6222_v58, %v467_v39  ;;  %v472_v42 = vsel %vm457_vm4, %v470_v40, 0.0 }
 0x1db   :  { %473 = vadd.xlane.f32.xlu1 %v472_v42 }
 0x1dc   :  { %v471_v43 = vmul.f32 %v469_v41, %v469_v41 }
 0x1de   :  { %v475_v44 = vsel %vm461_vm5, %v471_v43, 0.0 }
 0x1df   :  { %476 = vadd.xlane.f32.xlu1 %v475_v44 }
 0x268   :  { %v474_v51 = vpop.xlane.xlu1 %473 }
 0x269   :  { %v478_v52 = vmul.f32 0.03125, %v474_v51 }
 0x26b   :  { %v480_v53 = vadd.f32 1e-12, %v478_v52 }
 0x26c   :  { %v477_v54 = vpop.xlane.xlu1 %476 }
 0x26d   :  { %5824 = vrsqrt.f32 %v480_v53  ;;  %v479_v55 = vmul.f32 0.03125, %v477_v54 }
 0x26f   :  { %v481_v56 = vadd.f32 1e-12, %v479_v55 }
 0x271   :  { %5826 = vrsqrt.f32 %v481_v56 }
 0x277   :  { %v5825_v57 = vpop.eup %5824 }
 0x278   :  { %v484_v61 = vmul.f32 %v5825_v57, %v468_v37 }
 0x27a   :  { %v490_v0 = vmul.f32 %v5100_v60, %v484_v61 }
 0x27b   :  { %v5827_v1 = vpop.eup %5826 }
 0x27c   :  { %v485_v2 = vmul.f32 %v5827_v1, %v469_v41  ;;  %v496_v3 = vadd.f32 %v5101_v63, %v490_v0 }
 0x27e   :  { %v491_v5 = vmul.f32 %v5100_v60, %v485_v2  ;;  %5358 = vmatprep.mubr.msk.f32.mxu1 %vm457_vm4, %v496_v3 }
 0x280   :  { %v497_v6 = vadd.f32 %v5101_v63, %v491_v5 }
 0x282   :  { %5359 = vmatmul.mubr.msk.f32.vlgmr.msra.gmra.mrb[0].mxu1 %vm457_vm4, %v497_v6 }
 0x283   :  { %5363 = vmatprep.mubr.msk.f32.mxu1 %vm5991_vm7, %v5990_v7 }
 0x355   :  { %v5360_v9 = vpop.f32.mrb[0].mxu1 }
 0x356   :  { %v580_v10 = vadd.f32 %v5360_v9, %v5102_v8  ;;  %v574_v11 = vpop.f32.mrb[1].mxu1 }
 0x357   :  { %v575_v12 = vadd.f32 %v5102_v8, %v574_v11 }
 0x358   :  { %v640_v13 = vrot.slane %v580_v10, %v6224_v59 }
 0x359   :  { %v585_v14 = vcombine.high %v575_v12, %v575_v12  ;;  %v592_v15 = vrot.slane %v575_v12, %v6224_v59 }
 0x35a   :  { %v641_v18 = vcombine.high %v640_v13, %v640_v13  ;;  %v648_v27 = vrot.slane %v640_v13, %v6224_v59 }
 0x35b   :  { %v599_v16 = vrot.slane %v585_v14, %v6224_v59  ;;  %v600_v17 = vcombine.high %v592_v15, %v592_v15  ;;  %v608_v20 = vrot.slane %v592_v15, %v6224_v59  ;;  %v436_v15 = vld [vmem:[%s6054_s14] sm:$0xff] }
 0x35c   :  { %v655_v28 = vrot.slane %v641_v18, %v6224_v59 }
 0x35d   :  { %v601_v19 = vcombine.high %v599_v16, %v599_v16  ;;  %v615_v21 = vrot.slane %v599_v16, %v6224_v59  ;;  %v622_v22 = vrot.slane %v600_v17, %v6224_v59  ;;  %v437_v16 = vld [vmem:[%s6054_s14 + $0x8] sm:$0xff] }
 0x35e   :  { %v794_v36 = vrot.slane %v655_v28, %v6224_v59  ;;  %v5653_v17 = vpack.c.bf16 %v437_v16, %v436_v15 }
 0x35f   :  { %v629_v23 = vrot.slane %v601_v19, %v6224_v59  ;;  %v631_v24 = vcombine.high %v615_v21, %v615_v21  ;;  %v656_v25 = vcombine.low %v608_v20, %v622_v22  ;;  %v5105_v26 = vcombine.high %v608_v20, %v622_v22 }
 0x360   :  { %v678_v29 = vrot.slane %v615_v21, %v6224_v59  ;;  %v809_v43 = vrot.slane %v794_v36, %v6224_v59 }
 0x361   :  { %v633_v30 = vcombine.high %v629_v23, %v629_v23  ;;  %v664_v31 = vrot.slane %v656_v25, %v6224_v59  ;;  %v671_v32 = vrot.slane %v5105_v26, %v6224_v59  ;;  %v772_v33 = vcombine.low %v629_v23, %v631_v24 }
 0x362   :  { %v693_v38 = vrot.slane %v678_v29, %v6224_v59 }
 0x363   :  { %v679_v34 = vcombine.low %v664_v31, %v671_v32  ;;  %v773_v35 = vcombine.low %v633_v30, %v648_v27  ;;  %v780_v39 = vrot.slane %v772_v33, %v6224_v59 }
 0x365   :  { %v686_v37 = vrot.slane %v679_v34, %v6224_v59  ;;  %v787_v40 = vrot.slane %v773_v35, %v6224_v59 }
 0x367   :  { %v6293_v41 = vcombine.low %v686_v37, %v693_v38  ;;  %v795_v42 = vcombine.low %v780_v39, %v787_v40 }
 0x369   :  { %v802_v44 = vrot.slane %v795_v42, %v6224_v59  ;;  %695 = vrot.lane.b32.xlu0 %v6293_v41, %s5992_s0 }
 0x36b   :  { %v6299_v45 = vcombine.low %v802_v44, %v809_v43 }
 0x36d   :  { %811 = vrot.lane.b32.xlu1 %v6299_v45, %s5992_s0 }
 0x3db   :  { %v696_v46 = vpop.permute.xlu0 %695 }
 0x3dc   :  { %5362 = vmatpush3.xpose.msk.msra.mxu1 %vm697_vm8, %v696_v46 }
 0x3dd   :  { %5366 = vmatprep.subr.mxu1 %v5990_v7 }
 0x3df   :  { %5364 = vmatmul.mubr.msk.f32.vlgmr.msra.gmra.mrb[2].mxu1 %vm697_vm8, %v6293_v41  ;;  %v812_v47 = vpop.permute.xlu1 %811 }
 0x3e0   :  { %5367 = vmatpush3.xpose.msk.msra.mxu1 %vm697_vm8, %v812_v47  ;;  %5368 = vmatprep.mubr.msk.f32.mxu1 %vm5991_vm7, %v5990_v7 }
 0x3e1   :  { %5371 = vmatprep.subr.mxu1 %v5990_v7 }
 0x3e3   :  { %5369 = vmatmul.mubr.msk.f32.vlgmr.msra.gmra.mrb[4].mxu1 %vm697_vm8, %v6299_v45 }
 0x3e4   :  { %5373 = vmatprep.mubr.msk.f32.mxu1 %vm5991_vm7, %v5990_v7 }
 0x4b2   :  { %v768_v48 = vpop.f32.mrb[2].mxu1 }
 0x4b3   :  { %v887_v49 = vmul.f32 0.25, %v768_v48  ;;  %v5365_v50 = vpop.f32.mrb[3].mxu1 }
 0x4b5   :  { %v890_v51 = vsel %vm889_vm9, %v887_v49, -inf }
 0x4b6   :  { %891 = vmax.xlane.f32.xlu1 %v890_v51  ;;  %v883_v52 = vpop.f32.mrb[4].mxu1 }
 0x4b7   :  { %v888_v53 = vmul.f32 0.25, %v883_v52  ;;  %v5370_v54 = vpop.f32.mrb[5].mxu1 }
 0x4b9   :  { %v893_v55 = vsel %vm889_vm9, %v888_v53, -inf }
 0x4ba   :  { %894 = vmax.xlane.f32.xlu0 %v893_v55 }
 0x543   :  { %v892_v56 = vpop.xlane.xlu1 %891 }
 0x544   :  { %v896_v57 = vsub.f32 %v887_v49, %v892_v56 }
 0x546   :  { %v898_v60 = vmul.f32 1.442695, %v896_v57 }
 0x547   :  { %v895_v61 = vpop.xlane.xlu0 %894 }
 0x548   :  { %5828 = vpow2.f32 %v898_v60  ;;  %v897_v63 = vsub.f32 %v888_v53, %v895_v61 }
 0x54a   :  { %v900_v0 = vmul.f32 1.442695, %v897_v63 }
 0x54c   :  { %5830 = vpow2.f32 %v900_v0 }
 0x552   :  { %v5829_v1 = vpop.eup %5828 }
 0x553   :  { %v902_v2 = vsel %vm889_vm9, %v5829_v1, 0.0 }
 0x554   :  { %903 = vadd.xlane.f32.xlu0 %v902_v2 }
 0x556   :  { %v5831_v3 = vpop.eup %5830 }
 0x557   :  { %v905_v5 = vsel %vm889_vm9, %v5831_v3, 0.0 }
 0x558   :  { %906 = vadd.xlane.f32.xlu1 %v905_v5 }
 0x569   :  { %990 = vrot.lane.b32.xlu1 %v6299_v45, %s5993_s5 }
 0x56a   :  { %912 = vrot.lane.b32.xlu0 %v6293_v41, %s5993_s5 }
 0x56d   :  { %1298 = vrot.lane.b32.xlu1 %v6293_v41, %s5994_s9 }
 0x56e   :  { %1376 = vrot.lane.b32.xlu0 %v6299_v45, %s5994_s9 }
 0x571   :  { %1296 = vrot.lane.b32.xlu1 %v6293_v41, %s5995_s13 }
 0x575   :  { %1374 = vrot.lane.b32.xlu1 %v6299_v45, %s5995_s13 }
 0x5e1   :  { %v904_v6 = vpop.xlane.xlu0 %903 }
 0x5e2   :  { %5832 = vrcp.f32 %v904_v6 }
 0x5e5   :  { %v913_v8 = vpop.permute.xlu0 %912  ;;  %v907_v9 = vpop.xlane.xlu1 %906 }
 0x5e6   :  { %5834 = vrcp.f32 %v907_v9  ;;  %5372 = vmatpush3.msk.msra.mxu1 %vm263_vm2, %v913_v8 }
 0x5e7   :  { %5376 = vmatprep.subr.mxu1 %v5990_v7 }
 0x5e9   :  { %v991_v12 = vpop.permute.xlu1 %990  ;;  %v1377_v60 = vpop.permute.xlu0 %1376 }
 0x5ec   :  { %v5833_v10 = vpop.eup %5832 }
 0x5ed   :  { %v910_v11 = vmul.f32 %v5833_v10, %v5829_v1  ;;  %v1299_v52 = vpop.permute.xlu1 %1298 }
 0x5ef   :  { %1855 = vst.msk [vmem:[%s6157_s12] sm:$0x1f] %vm889_vm9, %v910_v11  ;;  %5374 = vmatmul.mubr.msk.f32.vlgmr.msra.gmra.mrb[6].mxu1 %vm914_vm10, %v910_v11 }
 0x5f0   :  { %v5835_v13 = vpop.eup %5834  ;;  %5377 = vmatpush3.msk.msra.mxu1 %vm263_vm2, %v991_v12  ;;  %5378 = vmatprep.mubr.msk.f32.mxu1 %vm5991_vm7, %v5990_v7 }
 0x5f1   :  { %v911_v14 = vmul.f32 %v5835_v13, %v5831_v3  ;;  %5654 = vmatprep.subr.bf16.mxu1 %v5653_v17  ;;  %v1297_v57 = vpop.permute.xlu1 %1296 }
 0x5f3   :  { %1857 = vst.msk [vmem:[%s6157_s12 + $0x10] sm:$0x1f] %vm889_vm9, %v911_v14  ;;  %5379 = vmatmul.mubr.msk.f32.vlgmr.msra.gmra.mrb[8].mxu1 %vm914_vm10, %v911_v14 }
 0x5f4   :  { %5656 = vmatpush3.bf16.msra.mxu1 %v5653_v17 }
 0x5f5   :  { %5388 = vmatprep.subr.mxu1 %v5990_v7  ;;  %v1375_v61 = vpop.permute.xlu1 %1374 }
 0x6c2   :  { %v986_v18 = vpop.f32.mrb[6].mxu1 }
 0x6c3   :  { %v1069_v19 = vcombine.high %v986_v18, %v986_v18  ;;  %v1076_v20 = vrot.slane %v986_v18, %v6224_v59  ;;  %v5375_v21 = vpop.f32.mrb[7].mxu1 }
 0x6c5   :  { %v1084_v22 = vcombine.high %v1076_v20, %v1076_v20  ;;  %v1083_v23 = vrot.slane %v1069_v19, %v6224_v59  ;;  %v1091_v25 = vrot.slane %v1076_v20, %v6224_v59 }
 0x6c6   :  { %v1063_v24 = vpop.f32.mrb[8].mxu1 }
 0x6c7   :  { %v1105_v26 = vrot.slane %v1084_v22, %v6224_v59  ;;  %v1108_v27 = vcombine.high %v1063_v24, %v1063_v24  ;;  %v1115_v28 = vrot.slane %v1063_v24, %v6224_v59  ;;  %v5380_v29 = vpop.f32.mrb[9].mxu1  ;;  %v1098_v34 = vrot.slane %v1083_v23, %v6224_v59 }
 0x6c9   :  { %v1147_v30 = vcombine.low %v1091_v25, %v1105_v26  ;;  %v5114_v31 = vcombine.high %v1091_v25, %v1105_v26  ;;  %v1122_v32 = vrot.slane %v1108_v27, %v6224_v59  ;;  %v1123_v33 = vcombine.high %v1115_v28, %v1115_v28  ;;  %v438_v25 = vld [vmem:[%s6054_s14 + $0x10] sm:$0xff]  ;;  %v439_v26 = vld [vmem:[%s6054_s14 + $0x18] sm:$0xff] }
 0x6ca   :  { %v1130_v35 = vrot.slane %v1115_v28, %v6224_v59  ;;  %v5657_v27 = vpack.c.bf16 %v439_v26, %v438_v25  ;;  %v445_v25 = vld [vmem:[%s6074_s6 + $0x10] sm:$0xff]  ;;  %v446_v26 = vld [vmem:[%s6074_s6 + $0x18] sm:$0xff] }
 0x6cb   :  { %v1144_v36 = vrot.slane %v1123_v33, %v6224_v59  ;;  %v1157_v37 = vrot.slane %v1147_v30, %v6224_v59  ;;  %v1164_v38 = vrot.slane %v5114_v31, %v6224_v59  ;;  %v1137_v42 = vrot.slane %v1122_v32, %v6224_v59 }
 0x6cc   :  { %v1145_v39 = vcombine.high %v1130_v35, %v1130_v35  ;;  %v1149_v40 = vcombine.low %v1098_v34, %v1130_v35 }
 0x6cd   :  { %v1146_v43 = vcombine.high %v1144_v36, %v1144_v36  ;;  %v1179_v47 = vcombine.low %v1157_v37, %v1164_v38 }
 0x6ce   :  { %v1150_v44 = vcombine.low %v1144_v36, %v1145_v39  ;;  %v1171_v48 = vrot.slane %v1149_v40, %v6224_v59 }
 0x6cf   :  { %v1196_v46 = vcombine.low %v1146_v43, %v1137_v42  ;;  %v1187_v53 = vrot.slane %v1179_v47, %v6224_v59 }
 0x6d0   :  { %v1178_v49 = vrot.slane %v1150_v44, %v6224_v59 }
 0x6d1   :  { %v1203_v51 = vrot.slane %v1196_v46, %v6224_v59 }
 0x6d2   :  { %v1180_v50 = vcombine.low %v1171_v48, %v1178_v49 }
 0x6d3   :  { %v1210_v56 = vrot.slane %v1203_v51, %v6224_v59 }
 0x6d4   :  { %v1194_v54 = vrot.slane %v1180_v50, %v6224_v59 }
 0x6d6   :  { %v1195_v55 = vcombine.low %v1187_v53, %v1194_v54 }
 0x6d8   :  { %5385 = vmatprep.mubr.msk.f32.mxu1 %vm697_vm8, %v1195_v55 }
 0x6d9   :  { %5386 = vmatmul.mubr.msk.f32.vlgmr.msra.gmra.mrb[10].mxu1 %vm697_vm8, %v1210_v56 }
 0x6da   :  { %5389 = vmatpush3.xpose.msk.msra.mxu1 %vm697_vm8, %v1299_v52  ;;  %5390 = vmatprep.mubr.msk.f32.mxu1 %vm5991_vm7, %v5990_v7 }
 0x6db   :  { %5393 = vmatprep.subr.mxu1 %v5990_v7 }
 0x6dd   :  { %5391 = vmatmul.mubr.msk.f32.vlgmr.msra.gmra.mrb[12].mxu1 %vm697_vm8, %v1297_v57 }
 0x6de   :  { %5394 = vmatpush3.xpose.msk.msra.mxu1 %vm697_vm8, %v1377_v60  ;;  %5395 = vmatprep.mubr.msk.f32.mxu1 %vm5991_vm7, %v5990_v7 }
 0x6df   :  { %5398 = vmatprep.subr.mxu1 %v5990_v7 }
 0x6e1   :  { %5396 = vmatmul.mubr.msk.f32.vlgmr.msra.gmra.mrb[14].mxu1 %vm697_vm8, %v1375_v61 }
 0x6e2   :  { %5400 = vmatprep.mubr.msk.f32.mxu1 %vm5991_vm7, %v5990_v7 }
 0x7b0   :  { %v1370_v63 = vpop.f32.mrb[12].mxu1 }
 0x7b1   :  { %v1452_v0 = vmul.f32 0.25, %v1370_v63  ;;  %v5392_v1 = vpop.f32.mrb[13].mxu1 }
 0x7b3   :  { %v1454_v2 = vsel %vm889_vm9, %v1452_v0, -inf }
 0x7b4   :  { %1455 = vmax.xlane.f32.xlu0 %v1454_v2  ;;  %v1448_v3 = vpop.f32.mrb[14].mxu1 }
 0x7b5   :  { %v1453_v5 = vmul.f32 0.25, %v1448_v3  ;;  %v5397_v6 = vpop.f32.mrb[15].mxu1 }
 0x7b6   :  { %v5117_v6 = vld [vmem:[%s6059_s19] ss:$0 sm:$0xff] }
 0x7b7   :  { %v1457_v8 = vsel %vm889_vm9, %v1453_v5, -inf }
 0x7b8   :  { %1458 = vmax.xlane.f32.xlu1 %v1457_v8 }
 0x7c9   :  { %1553 = vrot.lane.b32.xlu1 %v6299_v45, %s5996_s17 }
 0x841   :  { %v1456_v9 = vpop.xlane.xlu0 %1455 }
 0x842   :  { %v1460_v10 = vsub.f32 %v1452_v0, %v1456_v9 }
 0x844   :  { %v1462_v11 = vmul.f32 1.442695, %v1460_v10 }
 0x845   :  { %v1459_v12 = vpop.xlane.xlu1 %1458 }
 0x846   :  { %5836 = vpow2.f32 %v1462_v11  ;;  %v1461_v13 = vsub.f32 %v1453_v5, %v1459_v12 }
 0x848   :  { %v1464_v14 = vmul.f32 1.442695, %v1461_v13 }
 0x849   :  { %v1554_v23 = vpop.permute.xlu1 %1553 }
 0x84a   :  { %5838 = vpow2.f32 %v1464_v14 }
 0x850   :  { %v5837_v15 = vpop.eup %5836 }
 0x851   :  { %v1466_v16 = vsel %vm889_vm9, %v5837_v15, 0.0 }
 0x852   :  { %1467 = vadd.xlane.f32.xlu0 %v1466_v16 }
 0x854   :  { %v5839_v17 = vpop.eup %5838 }
 0x855   :  { %v1469_v18 = vsel %vm889_vm9, %v5839_v17, 0.0 }
 0x856   :  { %1470 = vadd.xlane.f32.xlu0 %v1469_v18 }
 0x86c   :  { %1476 = vrot.lane.b32.xlu0 %v6293_v41, %s5996_s17 }
 0x8df   :  { %v1468_v45 = vpop.xlane.xlu0 %1467 }
 0x8e0   :  { %5840 = vrcp.f32 %v1468_v45 }
 0x8e3   :  { %v1471_v19 = vpop.xlane.xlu0 %1470 }
 0x8e4   :  { %5842 = vrcp.f32 %v1471_v19 }
 0x8e7   :  { %v1477_v20 = vpop.permute.xlu0 %1476 }
 0x8e8   :  { %5399 = vmatpush3.msk.msra.mxu1 %vm263_vm2, %v1477_v20 }
 0x8e9   :  { %5403 = vmatprep.subr.mxu1 %v5990_v7 }
 0x8ea   :  { %v5841_v21 = vpop.eup %5840 }
 0x8eb   :  { %v1474_v22 = vmul.f32 %v5841_v21, %v5837_v15 }
 0x8ed   :  { %1856 = vst.msk [vmem:[%s6157_s12 + $0x8] sm:$0x1f] %vm889_vm9, %v1474_v22  ;;  %5401 = vmatmul.mubr.msk.f32.vlgmr.msra.gmra.mrb[16].mxu1 %vm914_vm10, %v1474_v22 }
 0x8ee   :  { %v5843_v41 = vpop.eup %5842  ;;  %5404 = vmatpush3.msk.msra.mxu1 %vm263_vm2, %v1554_v23  ;;  %5405 = vmatprep.mubr.msk.f32.mxu1 %vm5991_vm7, %v5990_v7  ;;  %v443_v23 = vld [vmem:[%s6074_s6] sm:$0xff] }
 0x8ef   :  { %v1475_v24 = vmul.f32 %v5843_v41, %v5839_v17  ;;  %5658 = vmatprep.subr.bf16.mxu1 %v5657_v27  ;;  %v444_v41 = vld [vmem:[%s6074_s6 + $0x8] sm:$0xff] }
 0x8f1   :  { %1858 = vst.msk [vmem:[%s6157_s12 + $0x18] sm:$0x1f] %vm889_vm9, %v1475_v24  ;;  %5406 = vmatmul.mubr.msk.f32.vlgmr.msra.gmra.mrb[18].mxu1 %vm914_vm10, %v1475_v24  ;;  %v5661_v24 = vpack.c.bf16 %v444_v41, %v443_v23 }
 0x8f2   :  { %5660 = vmatpush3.bf16.msra.mxu1 %v5657_v27  ;;  %v5665_v27 = vpack.c.bf16 %v446_v26, %v445_v25 }
 0x8f3   :  { %5662 = vmatprep.subr.bf16.mxu0 %v5661_v24 }
 0x8f4   :  { %5664 = vmatpush3.bf16.msra.mxu0 %v5661_v24 }
 0x8f5   :  { %5666 = vmatprep.subr.bf16.mxu0 %v5665_v27 }
 0x8f8   :  { %5668 = vmatpush3.bf16.msra.mxu0 %v5665_v27 }
 0x9c0   :  { %v1549_v28 = vpop.f32.mrb[16].mxu1 }
 0x9c1   :  { %v1632_v29 = vcombine.high %v1549_v28, %v1549_v28  ;;  %v1639_v30 = vrot.slane %v1549_v28, %v6224_v59  ;;  %v5402_v31 = vpop.f32.mrb[17].mxu1 }
 0x9c3   :  { %v1647_v32 = vcombine.high %v1639_v30, %v1639_v30  ;;  %v1646_v33 = vrot.slane %v1632_v29, %v6224_v59  ;;  %v1654_v35 = vrot.slane %v1639_v30, %v6224_v59 }
 0x9c4   :  { %v1626_v34 = vpop.f32.mrb[18].mxu1 }
 0x9c5   :  { %v1668_v36 = vrot.slane %v1647_v32, %v6224_v59  ;;  %v1671_v37 = vcombine.high %v1626_v34, %v1626_v34  ;;  %v1678_v38 = vrot.slane %v1626_v34, %v6224_v59  ;;  %v5407_v39 = vpop.f32.mrb[19].mxu1  ;;  %v1661_v46 = vrot.slane %v1646_v33, %v6224_v59 }
 0x9c6   :  { %v5130_v39 = vld [vmem:[%s6834_s21] ss:$0 sm:$0xff] }
 0x9c7   :  { %v1710_v40 = vcombine.low %v1654_v35, %v1668_v36  ;;  %v5126_v42 = vcombine.high %v1654_v35, %v1668_v36  ;;  %v1685_v43 = vrot.slane %v1671_v37, %v6224_v59  ;;  %v1686_v44 = vcombine.high %v1678_v38, %v1678_v38  ;;  %v5129_v35 = vld [vmem:[%s6064_s24] ss:$0 sm:$0xff] }
 0x9c8   :  { %v1693_v47 = vrot.slane %v1678_v38, %v6224_v59 }
 0x9c9   :  { %v1707_v48 = vrot.slane %v1686_v44, %v6224_v59  ;;  %v1720_v49 = vrot.slane %v1710_v40, %v6224_v59  ;;  %v1727_v50 = vrot.slane %v5126_v42, %v6224_v59  ;;  %v1700_v53 = vrot.slane %v1685_v43, %v6224_v59 }
 0x9ca   :  { %v1708_v51 = vcombine.high %v1693_v47, %v1693_v47  ;;  %v1712_v52 = vcombine.low %v1661_v46, %v1693_v47  ;;  %v448_v46 = vld [vmem:[%s6835_s30] sm:$0xff]  ;;  %v449_v47 = vld [vmem:[%s6835_s30 + $0x8] sm:$0xff] }
 0x9cb   :  { %v1709_v54 = vcombine.high %v1707_v48, %v1707_v48  ;;  %v1742_v57 = vcombine.low %v1720_v49, %v1727_v50  ;;  %v450_v49 = vld [vmem:[%s6835_s30 + $0x10] sm:$0xff]  ;;  %v451_v50 = vld [vmem:[%s6835_s30 + $0x18] sm:$0xff] }
 0x9cc   :  { %v1713_v55 = vcombine.low %v1707_v48, %v1708_v51  ;;  %v1734_v60 = vrot.slane %v1712_v52, %v6224_v59  ;;  %v5669_v48 = vpack.c.bf16 %v449_v47, %v448_v46  ;;  %v452_v51 = vld [vmem:[%s6835_s30 + $0x20] sm:$0xff]  ;;  %v5673_v52 = vpack.c.bf16 %v451_v50, %v450_v49 }
 0x9cd   :  { %v1759_v56 = vcombine.low %v1709_v54, %v1700_v53  ;;  %v1750_v1 = vrot.slane %v1742_v57, %v6224_v59  ;;  %v453_v53 = vld [vmem:[%s6835_s30 + $0x28] sm:$0xff] }
 0x9ce   :  { %v1741_v61 = vrot.slane %v1713_v55, %v6224_v59  ;;  %5670 = vmatprep.subr.bf16.mxu1 %v5669_v48  ;;  %v5677_v54 = vpack.c.bf16 %v453_v53, %v452_v51  ;;  %v454_v55 = vld [vmem:[%s6835_s30 + $0x30] sm:$0xff] }
 0x9cf   :  { %v1766_v0 = vrot.slane %v1759_v56, %v6224_v59  ;;  %v455_v56 = vld [vmem:[%s6835_s30 + $0x38] sm:$0xff] }
 0x9d0   :  { %v1743_v63 = vcombine.low %v1734_v60, %v1741_v61  ;;  %v5681_v57 = vpack.c.bf16 %v455_v56, %v454_v55  ;;  %v5131_v60 = vld [vmem:[%s6836_s20] ss:$0 sm:$0xff] }
 0x9d1   :  { %v1773_v5 = vrot.slane %v1766_v0, %v6224_v59 }
 0x9d2   :  { %v1757_v2 = vrot.slane %v1743_v63, %v6224_v59 }
 0x9d4   :  { %v1758_v3 = vcombine.low %v1750_v1, %v1757_v2 }
 0x9d6   :  { %5412 = vmatprep.mubr.msk.f32.mxu1 %vm697_vm8, %v1758_v3 }
 0x9d7   :  { %5413 = vmatmul.mubr.msk.f32.vlgmr.msra.gmra.mrb[10].mxu1 %vm697_vm8, %v1773_v5 }
 0x9d8   :  { %5672 = vmatpush3.bf16.msra.mxu1 %v5669_v48 }
 0x9d9   :  { %5674 = vmatprep.subr.bf16.mxu1 %v5673_v52 }
 0x9dc   :  { %5676 = vmatpush3.bf16.msra.mxu1 %v5673_v52 }
 0x9dd   :  { %5678 = vmatprep.subr.bf16.mxu1 %v5677_v54 }
 0x9e0   :  { %5680 = vmatpush3.bf16.msra.mxu1 %v5677_v54 }
 0x9e1   :  { %5682 = vmatprep.subr.bf16.mxu1 %v5681_v57 }
 0x9e4   :  { %5684 = vmatpush3.bf16.msra.mxu1 %v5681_v57 }
 0x9e5   :  { %5461 = vmatprep.subr.mxu1 %v5990_v7 }
 0xaaa   :  { %v5414_v8 = vpop.f32.mrb[10].mxu1 }
 0xaab   :  { %v5766_v9 = vadd.f32 %v5414_v8, %v5117_v6  ;;  %v1844_v10 = vpop.f32.mrb[11].mxu1 }
 0xaac   :  { %v5767_v11 = vadd.f32 %v5117_v6, %v1844_v10 }
 0xaad   :  { %v6420_v12 = vadd.f32 %v5766_v9, %v6222_v58 }
 0xaae   :  { %v6423_v13 = vadd.f32 %v5767_v11, %v6227_v62 }
 0xaaf   :  { %v1864_v14 = vsel %vm461_vm5, %v6420_v12, 0.0 }
 0xab0   :  { %1865 = vadd.xlane.f32.xlu0 %v1864_v14  ;;  %v1861_v15 = vsel %vm457_vm4, %v6423_v13, 0.0 }
 0xab1   :  { %1862 = vadd.xlane.f32.xlu1 %v1861_v15 }
 0xb3d   :  { %v1866_v16 = vpop.xlane.xlu0 %1865 }
 0xb3e   :  { %v1868_v17 = vmul.f32 0.03125, %v1866_v16  ;;  %v1863_v18 = vpop.xlane.xlu1 %1862 }
 0xb3f   :  { %v1867_v58 = vmul.f32 0.03125, %v1863_v18 }
 0xb40   :  { %v1870_v45 = vsub.f32 %v6420_v12, %v1868_v17 }
 0xb41   :  { %v1869_v62 = vsub.f32 %v6423_v13, %v1867_v58 }
 0xb42   :  { %v1872_v19 = vmul.f32 %v1870_v45, %v1870_v45 }
 0xb43   :  { %v1871_v20 = vmul.f32 %v1869_v62, %v1869_v62 }
 0xb44   :  { %v1876_v21 = vsel %vm461_vm5, %v1872_v19, 0.0 }
 0xb45   :  { %1877 = vadd.xlane.f32.xlu1 %v1876_v21  ;;  %v1873_v22 = vsel %vm457_vm4, %v1871_v20, 0.0  ;;  %v5136_v21 = vld [vmem:[%s6837_s16] ss:$0 sm:$0xff] }
 0xb46   :  { %1874 = vadd.xlane.f32.xlu0 %v1873_v22 }
 0xbd2   :  { %v1878_v28 = vpop.xlane.xlu1 %1877 }
 0xbd3   :  { %v1880_v29 = vmul.f32 0.03125, %v1878_v28  ;;  %v1875_v30 = vpop.xlane.xlu0 %1874 }
 0xbd4   :  { %v1879_v31 = vmul.f32 0.03125, %v1875_v30 }
 0xbd5   :  { %v1882_v32 = vadd.f32 1e-12, %v1880_v29 }
 0xbd6   :  { %v1881_v33 = vadd.f32 1e-12, %v1879_v31 }
 0xbd7   :  { %5844 = vrsqrt.f32 %v1882_v32 }
 0xbd8   :  { %5846 = vrsqrt.f32 %v1881_v33 }
 0xbe1   :  { %v5845_v34 = vpop.eup %5844 }
 0xbe2   :  { %v5847_v36 = vpop.eup %5846  ;;  %v1886_v37 = vmul.f32 %v5845_v34, %v1870_v45 }
 0xbe3   :  { %v1885_v38 = vmul.f32 %v5847_v36, %v1869_v62 }
 0xbe4   :  { %v1892_v40 = vmul.f32 %v5129_v35, %v1886_v37 }
 0xbe5   :  { %v1891_v42 = vmul.f32 %v5129_v35, %v1885_v38 }
 0xbe6   :  { %v1898_v44 = vadd.f32 %v5130_v39, %v1892_v40 }
 0xbe7   :  { %v1897_v43 = vadd.f32 %v5130_v39, %v1891_v42 }
 0xbe9   :  { %5423 = vmatprep.mubr.msk.f32.mxu0 %vm457_vm4, %v1897_v43 }
 0xbea   :  { %5424 = vmatmul.mubr.msk.f32.vlgmr.msra.gmra.mrb[2].mxu0 %vm457_vm4, %v1898_v44 }
 0xcbd   :  { %v5425_v61 = vpop.f32.mrb[2].mxu0 }
 0xcbe   :  { %v1981_v63 = vadd.f32 %v5425_v61, %v5131_v60  ;;  %v1975_v0 = vpop.f32.mrb[3].mxu0 }
 0xcbf   :  { %v1976_v1 = vadd.f32 %v5131_v60, %v1975_v0 }
 0xcc0   :  { %v1987_v2 = vmul.f32 0.044715, %v1981_v63  ;;  %v1985_v62 = vmul.f32 0.5, %v1981_v63 }
 0xcc1   :  { %v1986_v3 = vmul.f32 0.044715, %v1976_v1  ;;  %v1984_v58 = vmul.f32 0.5, %v1976_v1 }
 0xcc2   :  { %v1989_v5 = vmul.f32 %v1987_v2, %v1981_v63 }
 0xcc3   :  { %v1988_v6 = vmul.f32 %v1986_v3, %v1976_v1 }
 0xcc4   :  { %v1991_v8 = vmul.f32 %v1989_v5, %v1981_v63 }
 0xcc5   :  { %v1990_v9 = vmul.f32 %v1988_v6, %v1976_v1 }
 0xcc6   :  { %v1993_v10 = vadd.f32 %v1991_v8, %v1981_v63 }
 0xcc7   :  { %v1992_v11 = vadd.f32 %v1990_v9, %v1976_v1 }
 0xcc8   :  { %v1995_v14 = vmul.f32 0.7978846, %v1993_v10 }
 0xcc9   :  { %v1994_v15 = vmul.f32 0.7978846, %v1992_v11 }
 0xcca   :  { %5848 = vtanh.f32 %v1995_v14 }
 0xccb   :  { %5850 = vtanh.f32 %v1994_v15  ;;  %v5140_v15 = vld [vmem:[%s6044_s3 + $0x20] sm:$0xff] }
 0xcd4   :  { %v5849_v16 = vpop.eup %5848 }
 0xcd5   :  { %v5851_v17 = vpop.eup %5850  ;;  %v1999_v18 = vadd.f32 1.0, %v5849_v16  ;;  %v5141_v16 = vld [vmem:[%s6044_s3 + $0x28] sm:$0xff] }
 0xcd6   :  { %v1998_v45 = vadd.f32 1.0, %v5851_v17  ;;  %v5685_v17 = vpack.c.bf16 %v5141_v16, %v5140_v15 }
 0xcd7   :  { %v2001_v20 = vmul.f32 %v1999_v18, %v1985_v62  ;;  %v5142_v18 = vld [vmem:[%s6044_s3 + $0x30] sm:$0xff] }
 0xcd8   :  { %v2000_v19 = vmul.f32 %v1998_v45, %v1984_v58  ;;  %v5143_v58 = vld [vmem:[%s6044_s3 + $0x38] sm:$0xff]  ;;  %5686 = vmatprep.subr.bf16.mxu0 %v5685_v17  ;;  %s6840_s3 = sld [smem:[#allocation13_spill]] }
 0xcd9   :  { %v5689_v45 = vpack.c.bf16 %v5143_v58, %v5142_v18  ;;  %5688 = vmatpush3.bf16.msra.mxu0 %v5685_v17 }
 0xcda   :  { %5442 = vmatprep.mubr.msk.f32.mxu1 %vm175_vm0, %v2000_v19 }
 0xcdb   :  { %5443 = vmatmul.mubr.msk.f32.vlgmr.msra.gmra.mrb[20].mxu1 %vm175_vm0, %v2001_v20  ;;  %5690 = vmatprep.subr.bf16.mxu0 %v5689_v45 }
 0xcdc   :  { %5463 = vmatprep.mubr.msk.f32.mxu1 %vm5991_vm7, %v5990_v7 }
 0xcdd   :  { %5692 = vmatpush3.bf16.msra.mxu0 %v5689_v45 }
 0xcde   :  { %5456 = vmatprep.subr.mxu0 %v5990_v7 }
 0xdae   :  { %v5444_v22 = vpop.f32.mrb[20].mxu1 }
 0xdaf   :  { %v2084_v23 = vadd.f32 %v5444_v22, %v6420_v12  ;;  %v2074_v41 = vpop.f32.mrb[21].mxu1 }
 0xdb0   :  { %v2083_v24 = vadd.f32 %v2074_v41, %v6423_v13 }
 0xdb1   :  { %v6458_v25 = vadd.f32 %v5136_v21, %v2084_v23 }
 0xdb2   :  { %v6460_v26 = vadd.f32 %v5136_v21, %v2083_v24  ;;  %v5160_v24 = vld [vmem:[%s6034_s25 + $0x1] ss:$0 sm:$0xff]  ;;  %s6838_s25 = sld [smem:[#allocation15_spill]] }
 0xdb3   :  { %v2148_v27 = vrot.slane %v6458_v25, %v6224_v59  ;;  %v2282_v28 = vsel %vm461_vm5, %v6458_v25, 0.0 }
 0xdb4   :  { %v2093_v29 = vcombine.high %v6460_v26, %v6460_v26  ;;  %v2100_v30 = vrot.slane %v6460_v26, %v6224_v59  ;;  %2283 = vadd.xlane.f32.xlu1 %v2282_v28  ;;  %v2279_v12 = vsel %vm457_vm4, %v6460_v26, 0.0 }
 0xdb5   :  { %2280 = vadd.xlane.f32.xlu0 %v2279_v12  ;;  %v2149_v32 = vcombine.high %v2148_v27, %v2148_v27  ;;  %v2156_v42 = vrot.slane %v2148_v27, %v6224_v59 }
 0xdb6   :  { %v2107_v13 = vrot.slane %v2093_v29, %v6224_v59  ;;  %v2108_v31 = vcombine.high %v2100_v30, %v2100_v30  ;;  %v2116_v34 = vrot.slane %v2100_v30, %v6224_v59  ;;  %v5161_v30 = vld [vmem:[%s6039_s29 + $0x1] ss:$0 sm:$0xff]  ;;  %s6839_s29 = sld [smem:[#allocation17_spill]] }
 0xdb7   :  { %v2163_v43 = vrot.slane %v2149_v32, %v6224_v59 }
 0xdb8   :  { %v2109_v33 = vcombine.high %v2107_v13, %v2107_v13  ;;  %v2123_v35 = vrot.slane %v2107_v13, %v6224_v59  ;;  %v2130_v36 = vrot.slane %v2108_v31, %v6224_v59 }
 0xdb9   :  { %v2225_v52 = vrot.slane %v2163_v43, %v6224_v59 }
 0xdba   :  { %v2137_v37 = vrot.slane %v2109_v33, %v6224_v59  ;;  %v2139_v38 = vcombine.high %v2123_v35, %v2123_v35  ;;  %v2164_v39 = vcombine.low %v2116_v34, %v2130_v36  ;;  %v5137_v40 = vcombine.high %v2116_v34, %v2130_v36  ;;  %v5162_v33 = vld [vmem:[%s6049_s8 + $0x1] ss:$0 sm:$0xff]  ;;  %s6841_s8 = sld [smem:[#allocation14_spill]] }
 0xdbb   :  { %v2186_v44 = vrot.slane %v2123_v35, %v6224_v59  ;;  %v2240_v61 = vrot.slane %v2225_v52, %v6224_v59 }
 0xdbc   :  { %v2141_v46 = vcombine.high %v2137_v37, %v2137_v37  ;;  %v2172_v47 = vrot.slane %v2164_v39, %v6224_v59  ;;  %v2179_v48 = vrot.slane %v5137_v40, %v6224_v59  ;;  %v2203_v49 = vcombine.low %v2137_v37, %v2139_v38 }
 0xdbd   :  { %v2201_v54 = vrot.slane %v2186_v44, %v6224_v59 }
 0xdbe   :  { %v2187_v50 = vcombine.low %v2172_v47, %v2179_v48  ;;  %v2204_v51 = vcombine.low %v2141_v46, %v2156_v42  ;;  %v2211_v55 = vrot.slane %v2203_v49, %v6224_v59 }
 0xdc0   :  { %v2194_v53 = vrot.slane %v2187_v50, %v6224_v59  ;;  %v2218_v56 = vrot.slane %v2204_v51, %v6224_v59 }
 0xdc2   :  { %v2202_v57 = vcombine.low %v2194_v53, %v2201_v54  ;;  %v2226_v60 = vcombine.low %v2211_v55, %v2218_v56 }
 0xdc4   :  { %v2233_v63 = vrot.slane %v2226_v60, %v6224_v59  ;;  %5138 = vst.msk [vmem:[%s6152_s4 + $0x10] sm:$0x1f] %vm426_vm6, %v2202_v57 }
 0xdc6   :  { %v2241_v0 = vcombine.low %v2233_v63, %v2240_v61 }
 0xdc8   :  { %5139 = vst.msk [vmem:[%s6152_s4 + $0x18] sm:$0x1f] %vm426_vm6, %v2241_v0 }
 0xe41   :  { %v2284_v1 = vpop.xlane.xlu1 %2283 }
 0xe42   :  { %v2286_v2 = vmul.f32 0.03125, %v2284_v1  ;;  %v2281_v3 = vpop.xlane.xlu0 %2280 }
 0xe43   :  { %v2285_v5 = vmul.f32 0.03125, %v2281_v3 }
 0xe44   :  { %v2288_v6 = vsub.f32 %v6458_v25, %v2286_v2 }
 0xe45   :  { %v2287_v8 = vsub.f32 %v6460_v26, %v2285_v5 }
 0xe46   :  { %v2290_v9 = vmul.f32 %v2288_v6, %v2288_v6 }
 0xe47   :  { %v2289_v10 = vmul.f32 %v2287_v8, %v2287_v8 }
 0xe48   :  { %v2294_v11 = vsel %vm461_vm5, %v2290_v9, 0.0 }
 0xe49   :  { %2295 = vadd.xlane.f32.xlu1 %v2294_v11  ;;  %v2291_v14 = vsel %vm457_vm4, %v2289_v10, 0.0 }
 0xe4a   :  { %2292 = vadd.xlane.f32.xlu0 %v2291_v14 }
 0xed6   :  { %v2296_v62 = vpop.xlane.xlu1 %2295 }
 0xed7   :  { %v2298_v19 = vmul.f32 0.03125, %v2296_v62  ;;  %v2293_v20 = vpop.xlane.xlu0 %2292 }
 0xed8   :  { %v2297_v21 = vmul.f32 0.03125, %v2293_v20 }
 0xed9   :  { %v2300_v22 = vadd.f32 1e-12, %v2298_v19 }
 0xeda   :  { %v2299_v23 = vadd.f32 1e-12, %v2297_v21 }
 0xedb   :  { %5852 = vrsqrt.f32 %v2300_v22 }
 0xedc   :  { %5854 = vrsqrt.f32 %v2299_v23 }
 0xee5   :  { %v5853_v41 = vpop.eup %5852 }
 0xee6   :  { %v5855_v27 = vpop.eup %5854  ;;  %v2304_v28 = vmul.f32 %v5853_v41, %v2288_v6 }
 0xee7   :  { %v2303_v29 = vmul.f32 %v5855_v27, %v2287_v8 }
 0xee8   :  { %v2310_v12 = vmul.f32 %v5160_v24, %v2304_v28 }
 0xee9   :  { %v2309_v13 = vmul.f32 %v5160_v24, %v2303_v29 }
 0xeea   :  { %v2316_v32 = vadd.f32 %v5161_v30, %v2310_v12 }
 0xeeb   :  { %v2315_v31 = vadd.f32 %v5161_v30, %v2309_v13 }
 0xeed   :  { %5453 = vmatprep.mubr.msk.f32.mxu0 %vm457_vm4, %v2315_v31 }
 0xeee   :  { %5454 = vmatmul.mubr.msk.f32.vlgmr.msra.gmra.mrb[4].mxu0 %vm457_vm4, %v2316_v32 }
 0xeef   :  { %5458 = vmatprep.mubr.msk.f32.mxu0 %vm5991_vm7, %v5990_v7 }
 0xfc1   :  { %v5455_v34 = vpop.f32.mrb[4].mxu0 }
 0xfc2   :  { %v2399_v35 = vadd.f32 %v5455_v34, %v5162_v33  ;;  %v2393_v36 = vpop.f32.mrb[5].mxu0 }
 0xfc3   :  { %v2394_v37 = vadd.f32 %v5162_v33, %v2393_v36 }
 0xfc4   :  { %v2459_v38 = vrot.slane %v2399_v35, %v6224_v59 }
 0xfc5   :  { %v2404_v39 = vcombine.high %v2394_v37, %v2394_v37  ;;  %v2411_v40 = vrot.slane %v2394_v37, %v6224_v59 }
 0xfc6   :  { %v2460_v44 = vcombine.high %v2459_v38, %v2459_v38  ;;  %v2467_v54 = vrot.slane %v2459_v38, %v6224_v59 }
 0xfc7   :  { %v2418_v42 = vrot.slane %v2404_v39, %v6224_v59  ;;  %v2419_v43 = vcombine.high %v2411_v40, %v2411_v40  ;;  %v2427_v47 = vrot.slane %v2411_v40, %v6224_v59 }
 0xfc8   :  { %v2474_v55 = vrot.slane %v2460_v44, %v6224_v59  ;;  %v5145_v44 = vld [vmem:[%s6054_s14 + $0x28] sm:$0xff] }
 0xfc9   :  { %v2420_v46 = vcombine.high %v2418_v42, %v2418_v42  ;;  %v2434_v48 = vrot.slane %v2418_v42, %v6224_v59  ;;  %v2441_v49 = vrot.slane %v2419_v43, %v6224_v59  ;;  %v5144_v43 = vld [vmem:[%s6054_s14 + $0x20] sm:$0xff] }
 0xfca   :  { %v2612_v2 = vrot.slane %v2474_v55, %v6224_v59 }
 0xfcb   :  { %v2448_v50 = vrot.slane %v2420_v46, %v6224_v59  ;;  %v2450_v51 = vcombine.high %v2434_v48, %v2434_v48  ;;  %v2475_v52 = vcombine.low %v2427_v47, %v2441_v49  ;;  %v5165_v53 = vcombine.high %v2427_v47, %v2441_v49 }
 0xfcc   :  { %v2497_v56 = vrot.slane %v2434_v48, %v6224_v59  ;;  %v2627_v11 = vrot.slane %v2612_v2, %v6224_v59  ;;  %v5693_v46 = vpack.c.bf16 %v5145_v44, %v5144_v43 }
 0xfcd   :  { %v2452_v57 = vcombine.high %v2448_v50, %v2448_v50  ;;  %v2483_v60 = vrot.slane %v2475_v52, %v6224_v59  ;;  %v2490_v61 = vrot.slane %v5165_v53, %v6224_v59  ;;  %v2590_v63 = vcombine.low %v2448_v50, %v2450_v51 }
 0xfce   :  { %v2512_v5 = vrot.slane %v2497_v56, %v6224_v59 }
 0xfcf   :  { %v2498_v0 = vcombine.low %v2483_v60, %v2490_v61  ;;  %v2591_v1 = vcombine.low %v2452_v57, %v2467_v54  ;;  %v2598_v6 = vrot.slane %v2590_v63, %v6224_v59 }
 0xfd1   :  { %v2505_v3 = vrot.slane %v2498_v0, %v6224_v59  ;;  %v2605_v8 = vrot.slane %v2591_v1, %v6224_v59 }
 0xfd3   :  { %v6526_v9 = vcombine.low %v2505_v3, %v2512_v5  ;;  %v2613_v10 = vcombine.low %v2598_v6, %v2605_v8 }
 0xfd5   :  { %v2620_v14 = vrot.slane %v2613_v10, %v6224_v59  ;;  %2514 = vrot.lane.b32.xlu0 %v6526_v9, %s5992_s0 }
 0xfd7   :  { %v6532_v15 = vcombine.low %v2620_v14, %v2627_v11 }
 0xfd9   :  { %2629 = vrot.lane.b32.xlu1 %v6532_v15, %s5992_s0 }
0x1047   :  { %v2515_v16 = vpop.permute.xlu0 %2514 }
0x1048   :  { %5457 = vmatpush3.xpose.msk.msra.mxu0 %vm697_vm8, %v2515_v16 }
0x1049   :  { %5466 = vmatprep.subr.mxu0 %v5990_v7 }
0x104b   :  { %5459 = vmatmul.mubr.msk.f32.vlgmr.msra.gmra.mrb[6].mxu0 %vm697_vm8, %v6526_v9  ;;  %v2630_v17 = vpop.permute.xlu1 %2629 }
0x104c   :  { %5462 = vmatpush3.xpose.msk.msra.mxu1 %vm697_vm8, %v2630_v17  ;;  %5468 = vmatprep.mubr.msk.f32.mxu0 %vm5991_vm7, %v5990_v7 }
0x104d   :  { %5471 = vmatprep.subr.mxu1 %v5990_v7 }
0x104f   :  { %5464 = vmatmul.mubr.msk.f32.vlgmr.msra.gmra.mrb[22].mxu1 %vm697_vm8, %v6532_v15 }
0x1050   :  { %5473 = vmatprep.mubr.msk.f32.mxu1 %vm5991_vm7, %v5990_v7 }
0x111e   :  { %v2586_v18 = vpop.f32.mrb[6].mxu0 }
0x111f   :  { %v2705_v58 = vmul.f32 0.25, %v2586_v18  ;;  %v5460_v45 = vpop.f32.mrb[7].mxu0 }
0x1121   :  { %v2707_v62 = vsel %vm889_vm9, %v2705_v58, -inf }
0x1122   :  { %2708 = vmax.xlane.f32.xlu1 %v2707_v62  ;;  %v2701_v19 = vpop.f32.mrb[22].mxu1 }
0x1123   :  { %v2706_v20 = vmul.f32 0.25, %v2701_v19  ;;  %v5465_v21 = vpop.f32.mrb[23].mxu1 }
0x1125   :  { %v2710_v22 = vsel %vm889_vm9, %v2706_v20, -inf }
0x1126   :  { %2711 = vmax.xlane.f32.xlu0 %v2710_v22 }
0x11af   :  { %v2709_v23 = vpop.xlane.xlu1 %2708 }
0x11b0   :  { %v2713_v41 = vsub.f32 %v2705_v58, %v2709_v23 }
0x11b2   :  { %v2715_v24 = vmul.f32 1.442695, %v2713_v41 }
0x11b3   :  { %v2712_v27 = vpop.xlane.xlu0 %2711 }
0x11b4   :  { %5856 = vpow2.f32 %v2715_v24  ;;  %v2714_v28 = vsub.f32 %v2706_v20, %v2712_v27 }
0x11b6   :  { %v2717_v29 = vmul.f32 1.442695, %v2714_v28 }
0x11b8   :  { %5858 = vpow2.f32 %v2717_v29 }
0x11be   :  { %v5857_v30 = vpop.eup %5856 }
0x11bf   :  { %v2719_v12 = vsel %vm889_vm9, %v5857_v30, 0.0 }
0x11c0   :  { %2720 = vadd.xlane.f32.xlu0 %v2719_v12 }
0x11c2   :  { %v5859_v13 = vpop.eup %5858 }
0x11c3   :  { %v2722_v31 = vsel %vm889_vm9, %v5859_v13, 0.0 }
0x11c4   :  { %2723 = vadd.xlane.f32.xlu1 %v2722_v31 }
0x11d5   :  { %2806 = vrot.lane.b32.xlu1 %v6532_v15, %s5993_s5 }
0x11d6   :  { %2729 = vrot.lane.b32.xlu0 %v6526_v9, %s5993_s5 }
0x11d9   :  { %3114 = vrot.lane.b32.xlu1 %v6526_v9, %s5994_s9 }
0x11da   :  { %3112 = vrot.lane.b32.xlu0 %v6526_v9, %s5995_s13 }
0x11dd   :  { %3192 = vrot.lane.b32.xlu1 %v6532_v15, %s5994_s9 }
0x11e1   :  { %3190 = vrot.lane.b32.xlu1 %v6532_v15, %s5995_s13 }
0x124d   :  { %v2721_v32 = vpop.xlane.xlu0 %2720 }
0x124e   :  { %5860 = vrcp.f32 %v2721_v32 }
0x1251   :  { %v2730_v33 = vpop.permute.xlu0 %2729  ;;  %v2724_v34 = vpop.xlane.xlu1 %2723 }
0x1252   :  { %5862 = vrcp.f32 %v2724_v34  ;;  %5467 = vmatpush3.msk.msra.mxu0 %vm263_vm2, %v2730_v33 }
0x1253   :  { %5694 = vmatprep.subr.bf16.mxu0 %v5693_v46 }
0x1255   :  { %v2807_v35 = vpop.permute.xlu1 %2806  ;;  %v3113_v42 = vpop.permute.xlu0 %3112 }
0x1256   :  { %5472 = vmatpush3.msk.msra.mxu1 %vm263_vm2, %v2807_v35 }
0x1257   :  { %5483 = vmatprep.subr.mxu1 %v5990_v7 }
0x1258   :  { %v5861_v36 = vpop.eup %5860 }
0x1259   :  { %v2727_v37 = vmul.f32 %v5861_v36, %v5857_v30  ;;  %v3115_v40 = vpop.permute.xlu1 %3114 }
0x125b   :  { %5189 = vst.msk [vmem:[%s6157_s12 + $0x20] sm:$0x1f] %vm889_vm9, %v2727_v37  ;;  %5469 = vmatmul.mubr.msk.f32.vlgmr.msra.gmra.mrb[8].mxu0 %vm914_vm10, %v2727_v37 }
0x125c   :  { %v5863_v38 = vpop.eup %5862  ;;  %5696 = vmatpush3.bf16.msra.mxu0 %v5693_v46 }
0x125d   :  { %v2728_v39 = vmul.f32 %v5863_v38, %v5859_v13  ;;  %5488 = vmatprep.subr.mxu0 %v5990_v7  ;;  %v3193_v28 = vpop.permute.xlu1 %3192 }
0x125f   :  { %5191 = vst.msk [vmem:[%s6157_s12 + $0x30] sm:$0x1f] %vm889_vm9, %v2728_v39  ;;  %5474 = vmatmul.mubr.msk.f32.vlgmr.msra.gmra.mrb[24].mxu1 %vm914_vm10, %v2728_v39 }
0x1260   :  { %5484 = vmatpush3.xpose.msk.msra.mxu1 %vm697_vm8, %v3115_v40  ;;  %5485 = vmatprep.mubr.msk.f32.mxu1 %vm5991_vm7, %v5990_v7 }
0x1261   :  { %5493 = vmatprep.subr.mxu1 %v5990_v7  ;;  %v3191_v12 = vpop.permute.xlu1 %3190 }
0x1263   :  { %5486 = vmatmul.mubr.msk.f32.vlgmr.msra.gmra.mrb[26].mxu1 %vm697_vm8, %v3113_v42 }
0x1264   :  { %5495 = vmatprep.mubr.msk.f32.mxu1 %vm5991_vm7, %v5990_v7 }
0x132e   :  { %v2802_v47 = vpop.f32.mrb[8].mxu0 }
0x132f   :  { %v2885_v48 = vcombine.high %v2802_v47, %v2802_v47  ;;  %v2892_v49 = vrot.slane %v2802_v47, %v6224_v59  ;;  %v5470_v50 = vpop.f32.mrb[9].mxu0 }
0x1331   :  { %v2900_v51 = vcombine.high %v2892_v49, %v2892_v49  ;;  %v2899_v52 = vrot.slane %v2885_v48, %v6224_v59  ;;  %v2907_v54 = vrot.slane %v2892_v49, %v6224_v59 }
0x1332   :  { %v2879_v53 = vpop.f32.mrb[24].mxu1 }
0x1333   :  { %v2921_v55 = vrot.slane %v2900_v51, %v6224_v59  ;;  %v2924_v56 = vcombine.high %v2879_v53, %v2879_v53  ;;  %v2931_v57 = vrot.slane %v2879_v53, %v6224_v59  ;;  %v5475_v60 = vpop.f32.mrb[25].mxu1  ;;  %v2914_v2 = vrot.slane %v2899_v52, %v6224_v59  ;;  %v5146_v53 = vld [vmem:[%s6054_s14 + $0x30] sm:$0xff] }
0x1335   :  { %v2963_v61 = vcombine.low %v2907_v54, %v2921_v55  ;;  %v5174_v63 = vcombine.high %v2907_v54, %v2921_v55  ;;  %v2938_v0 = vrot.slane %v2924_v56, %v6224_v59  ;;  %v2939_v1 = vcombine.high %v2931_v57, %v2931_v57  ;;  %v5147_v54 = vld [vmem:[%s6054_s14 + $0x38] sm:$0xff]  ;;  %s6842_s14 = sld [smem:[#allocation19_spill]] }
0x1336   :  { %v2946_v3 = vrot.slane %v2931_v57, %v6224_v59  ;;  %v3186_v5 = vpop.f32.mrb[26].mxu1  ;;  %v5697_v55 = vpack.c.bf16 %v5147_v54, %v5146_v53  ;;  %v5150_v53 = vld [vmem:[%s6074_s6 + $0x30] sm:$0xff]  ;;  %v5151_v54 = vld [vmem:[%s6074_s6 + $0x38] sm:$0xff] }
0x1337   :  { %v2973_v6 = vrot.slane %v2963_v61, %v6224_v59  ;;  %v2960_v8 = vrot.slane %v2939_v1, %v6224_v59  ;;  %v5487_v10 = vpop.f32.mrb[27].mxu1  ;;  %v2980_v11 = vrot.slane %v5174_v63, %v6224_v59  ;;  %v3268_v17 = vmul.f32 0.25, %v3186_v5 }
0x1338   :  { %v2961_v14 = vcombine.high %v2946_v3, %v2946_v3  ;;  %v2965_v16 = vcombine.low %v2914_v2, %v2946_v3  ;;  %v2953_v18 = vrot.slane %v2938_v0, %v6224_v59 }
0x1339   :  { %v2962_v58 = vcombine.high %v2960_v8, %v2960_v8  ;;  %v3270_v62 = vsel %vm889_vm9, %v3268_v17, -inf  ;;  %v2995_v20 = vcombine.low %v2973_v6, %v2980_v11 }
0x133a   :  { %v2966_v45 = vcombine.low %v2960_v8, %v2961_v14  ;;  %3271 = vmax.xlane.f32.xlu0 %v3270_v62  ;;  %v2987_v21 = vrot.slane %v2965_v16, %v6224_v59 }
0x133b   :  { %v3012_v19 = vcombine.low %v2962_v58, %v2953_v18  ;;  %v3003_v24 = vrot.slane %v2995_v20, %v6224_v59 }
0x133c   :  { %v2994_v22 = vrot.slane %v2966_v45, %v6224_v59 }
0x133d   :  { %v3019_v41 = vrot.slane %v3012_v19, %v6224_v59 }
0x133e   :  { %v2996_v23 = vcombine.low %v2987_v21, %v2994_v22 }
0x133f   :  { %v3026_v30 = vrot.slane %v3019_v41, %v6224_v59 }
0x1340   :  { %v3010_v27 = vrot.slane %v2996_v23, %v6224_v59 }
0x1342   :  { %v3011_v29 = vcombine.low %v3003_v24, %v3010_v27 }
0x1344   :  { %5480 = vmatprep.mubr.msk.f32.mxu0 %vm697_vm8, %v3011_v29 }
0x1345   :  { %5481 = vmatmul.mubr.msk.f32.vlgmr.msra.gmra.mrb[10].mxu0 %vm697_vm8, %v3026_v30 }
0x1346   :  { %5489 = vmatpush3.xpose.msk.msra.mxu0 %vm697_vm8, %v3193_v28  ;;  %5490 = vmatprep.mubr.msk.f32.mxu0 %vm5991_vm7, %v5990_v7 }
0x1347   :  { %5498 = vmatprep.subr.mxu0 %v5990_v7 }
0x1349   :  { %5491 = vmatmul.mubr.msk.f32.vlgmr.msra.gmra.mrb[12].mxu0 %vm697_vm8, %v3191_v12 }
0x134a   :  { %5500 = vmatprep.mubr.msk.f32.mxu0 %vm5991_vm7, %v5990_v7 }
0x13c7   :  { %v3272_v13 = vpop.xlane.xlu0 %3271 }
0x13c8   :  { %v3276_v31 = vsub.f32 %v3268_v17, %v3272_v13 }
0x13ca   :  { %v3278_v32 = vmul.f32 1.442695, %v3276_v31 }
0x13cc   :  { %5864 = vpow2.f32 %v3278_v32  ;;  %v5177_v32 = vld [vmem:[%s6059_s19 + $0x1] ss:$0 sm:$0xff]  ;;  %s6843_s19 = sld [smem:[#allocation18_spill]] }
0x13d6   :  { %v5865_v33 = vpop.eup %5864 }
0x13d7   :  { %v3282_v34 = vsel %vm889_vm9, %v5865_v33, 0.0 }
0x13d8   :  { %3283 = vadd.xlane.f32.xlu0 %v3282_v34 }
0x141c   :  { %v3264_v35 = vpop.f32.mrb[12].mxu0 }
0x141d   :  { %v3269_v36 = vmul.f32 0.25, %v3264_v35  ;;  %v5492_v37 = vpop.f32.mrb[13].mxu0 }
0x141f   :  { %v3273_v38 = vsel %vm889_vm9, %v3269_v36, -inf }
0x1420   :  { %3274 = vmax.xlane.f32.xlu1 %v3273_v38 }
0x1431   :  { %3369 = vrot.lane.b32.xlu1 %v6532_v15, %s5996_s17 }
0x1465   :  { %v3284_v39 = vpop.xlane.xlu0 %3283 }
0x1466   :  { %5866 = vrcp.f32 %v3284_v39 }
0x1470   :  { %v5867_v40 = vpop.eup %5866 }
0x1471   :  { %v3290_v42 = vmul.f32 %v5867_v40, %v5865_v33 }
0x1473   :  { %5190 = vst.msk [vmem:[%s6157_s12 + $0x28] sm:$0x1f] %vm889_vm9, %v3290_v42 }
0x14ad   :  { %v3275_v43 = vpop.xlane.xlu1 %3274 }
0x14ae   :  { %v3277_v44 = vsub.f32 %v3269_v36, %v3275_v43 }
0x14b0   :  { %v3280_v46 = vmul.f32 1.442695, %v3277_v44 }
0x14b1   :  { %v3370_v47 = vpop.permute.xlu1 %3369 }
0x14b2   :  { %5868 = vpow2.f32 %v3280_v46  ;;  %5499 = vmatpush3.msk.msra.mxu0 %vm263_vm2, %v3370_v47 }
0x14b3   :  { %5698 = vmatprep.subr.bf16.mxu0 %v5697_v55 }
0x14bc   :  { %v5869_v48 = vpop.eup %5868 }
0x14bd   :  { %v3285_v49 = vsel %vm889_vm9, %v5869_v48, 0.0 }
0x14be   :  { %3286 = vadd.xlane.f32.xlu0 %v3285_v49 }
0x14d4   :  { %3292 = vrot.lane.b32.xlu0 %v6526_v9, %s5996_s17 }
0x154b   :  { %v3287_v15 = vpop.xlane.xlu0 %3286 }
0x154c   :  { %5870 = vrcp.f32 %v3287_v15 }
0x154f   :  { %v3293_v50 = vpop.permute.xlu0 %3292 }
0x1550   :  { %5494 = vmatpush3.msk.msra.mxu1 %vm263_vm2, %v3293_v50  ;;  %v5148_v50 = vld [vmem:[%s6074_s6 + $0x20] sm:$0xff] }
0x1551   :  { %5496 = vmatmul.mubr.msk.f32.vlgmr.msra.gmra.mrb[28].mxu1 %vm914_vm10, %v3290_v42 }
0x1556   :  { %v5871_v51 = vpop.eup %5870 }
0x1557   :  { %v3291_v52 = vmul.f32 %v5871_v51, %v5869_v48  ;;  %v5149_v51 = vld [vmem:[%s6074_s6 + $0x28] sm:$0xff]  ;;  %s6845_s6 = sld [smem:[#allocation20_spill]] }
0x1559   :  { %5192 = vst.msk [vmem:[%s6157_s12 + $0x38] sm:$0x1f] %vm889_vm9, %v3291_v52  ;;  %5501 = vmatmul.mubr.msk.f32.vlgmr.msra.gmra.mrb[14].mxu0 %vm914_vm10, %v3291_v52  ;;  %v5701_v52 = vpack.c.bf16 %v5149_v51, %v5148_v50  ;;  %s6846_s12 = sld [smem:[#allocation22_spill]] }
0x155a   :  { %5700 = vmatpush3.bf16.msra.mxu0 %v5697_v55  ;;  %v5705_v55 = vpack.c.bf16 %v5151_v54, %v5150_v53 }
0x155b   :  { %5702 = vmatprep.subr.bf16.mxu1 %v5701_v52 }
0x155c   :  { %5704 = vmatpush3.bf16.msra.mxu1 %v5701_v52 }
0x155d   :  { %5706 = vmatprep.subr.bf16.mxu1 %v5705_v55 }
0x1560   :  { %5708 = vmatpush3.bf16.msra.mxu1 %v5705_v55 }
0x1624   :  { %v3365_v56 = vpop.f32.mrb[28].mxu1 }
0x1625   :  { %v3455_v9 = vrot.slane %v3365_v56, %v6224_v59  ;;  %v5497_v57 = vpop.f32.mrb[29].mxu1  ;;  %v3448_v60 = vcombine.high %v3365_v56, %v3365_v56 }
0x1627   :  { %v3463_v61 = vcombine.high %v3455_v9, %v3455_v9  ;;  %v3470_v0 = vrot.slane %v3455_v9, %v6224_v59  ;;  %v3462_v1 = vrot.slane %v3448_v60, %v6224_v59 }
0x1629   :  { %v3484_v63 = vrot.slane %v3463_v61, %v6224_v59  ;;  %v3477_v11 = vrot.slane %v3462_v1, %v6224_v59  ;;  %v5193_v1 = vld [vmem:[%s6064_s24 + $0x1] ss:$0 sm:$0xff]  ;;  %s6844_s24 = sld [smem:[#allocation16_spill]] }
0x162b   :  { %v3526_v2 = vcombine.low %v3470_v0, %v3484_v63  ;;  %v5186_v5 = vcombine.high %v3470_v0, %v3484_v63 }
0x162c   :  { %v3442_v3 = vpop.f32.mrb[14].mxu0 }
0x162d   :  { %v3487_v6 = vcombine.high %v3442_v3, %v3442_v3  ;;  %v3494_v8 = vrot.slane %v3442_v3, %v6224_v59  ;;  %v5502_v10 = vpop.f32.mrb[15].mxu0  ;;  %v3536_v18 = vrot.slane %v3526_v2, %v6224_v59  ;;  %v3543_v58 = vrot.slane %v5186_v5, %v6224_v59 }
0x162f   :  { %v3501_v14 = vrot.slane %v3487_v6, %v6224_v59  ;;  %v3502_v16 = vcombine.high %v3494_v8, %v3494_v8  ;;  %v3509_v17 = vrot.slane %v3494_v8, %v6224_v59  ;;  %v3558_v23 = vcombine.low %v3536_v18, %v3543_v58  ;;  %v5194_v6 = vld [vmem:[%s6834_s21 + $0x1] ss:$0 sm:$0xff]  ;;  %v5154_v58 = vld [vmem:[%s6835_s30 + $0x50] sm:$0xff] }
0x1631   :  { %v3523_v45 = vrot.slane %v3502_v16, %v6224_v59  ;;  %v3524_v62 = vcombine.high %v3509_v17, %v3509_v17  ;;  %v3528_v19 = vcombine.low %v3477_v11, %v3509_v17  ;;  %v3516_v20 = vrot.slane %v3501_v14, %v6224_v59  ;;  %v5152_v16 = vld [vmem:[%s6835_s30 + $0x40] sm:$0xff]  ;;  %v5153_v17 = vld [vmem:[%s6835_s30 + $0x48] sm:$0xff] }
0x1632   :  { %v3566_v30 = vrot.slane %v3558_v23, %v6224_v59  ;;  %v5709_v18 = vpack.c.bf16 %v5153_v17, %v5152_v16  ;;  %v5159_v23 = vld [vmem:[%s6835_s30 + $0x78] sm:$0xff] }
0x1633   :  { %v3525_v21 = vcombine.high %v3523_v45, %v3523_v45  ;;  %v3529_v22 = vcombine.low %v3523_v45, %v3524_v62  ;;  %v3550_v41 = vrot.slane %v3528_v19, %v6224_v59  ;;  %v5155_v45 = vld [vmem:[%s6835_s30 + $0x58] sm:$0xff]  ;;  %v5156_v19 = vld [vmem:[%s6835_s30 + $0x60] sm:$0xff] }
0x1634   :  { %v5713_v62 = vpack.c.bf16 %v5155_v45, %v5154_v58  ;;  %5710 = vmatprep.subr.bf16.mxu0 %v5709_v18 }
0x1635   :  { %v3557_v24 = vrot.slane %v3529_v22, %v6224_v59  ;;  %v3575_v27 = vcombine.low %v3525_v21, %v3516_v20  ;;  %v5157_v20 = vld [vmem:[%s6835_s30 + $0x68] sm:$0xff]  ;;  %v5158_v22 = vld [vmem:[%s6835_s30 + $0x70] sm:$0xff] }
0x1636   :  { %v5717_v21 = vpack.c.bf16 %v5157_v20, %v5156_v19 }
0x1637   :  { %v3559_v28 = vcombine.low %v3550_v41, %v3557_v24  ;;  %v3582_v29 = vrot.slane %v3575_v27, %v6224_v59  ;;  %v5721_v41 = vpack.c.bf16 %v5159_v23, %v5158_v22  ;;  %v5195_v24 = vld [vmem:[%s6836_s20 + $0x1] ss:$0 sm:$0xff] }
0x1639   :  { %v3573_v12 = vrot.slane %v3559_v28, %v6224_v59  ;;  %v3589_v31 = vrot.slane %v3582_v29, %v6224_v59 }
0x163b   :  { %v3574_v13 = vcombine.low %v3566_v30, %v3573_v12 }
0x163d   :  { %5507 = vmatprep.mubr.msk.f32.mxu0 %vm697_vm8, %v3574_v13 }
0x163e   :  { %5508 = vmatmul.mubr.msk.f32.vlgmr.msra.gmra.mrb[10].mxu0 %vm697_vm8, %v3589_v31 }
0x163f   :  { %5712 = vmatpush3.bf16.msra.mxu0 %v5709_v18 }
0x1640   :  { %5714 = vmatprep.subr.bf16.mxu0 %v5713_v62 }
0x1643   :  { %5716 = vmatpush3.bf16.msra.mxu0 %v5713_v62 }
0x1644   :  { %5718 = vmatprep.subr.bf16.mxu0 %v5717_v21 }
0x1647   :  { %5720 = vmatpush3.bf16.msra.mxu0 %v5717_v21 }
0x1648   :  { %5722 = vmatprep.subr.bf16.mxu0 %v5721_v41 }
0x164b   :  { %5724 = vmatpush3.bf16.msra.mxu0 %v5721_v41 }
0x1711   :  { %v5509_v33 = vpop.f32.mrb[10].mxu0 }
0x1712   :  { %v5768_v34 = vadd.f32 %v5509_v33, %v5177_v32  ;;  %v3660_v35 = vpop.f32.mrb[11].mxu0 }
0x1713   :  { %v5769_v36 = vadd.f32 %v5177_v32, %v3660_v35 }
0x1714   :  { %v6650_v37 = vadd.f32 %v5768_v34, %v6458_v25 }
0x1715   :  { %v6653_v38 = vadd.f32 %v5769_v36, %v6460_v26 }
0x1716   :  { %v3681_v39 = vsel %vm461_vm5, %v6650_v37, 0.0 }
0x1717   :  { %3682 = vadd.xlane.f32.xlu0 %v3681_v39  ;;  %v3678_v40 = vsel %vm457_vm4, %v6653_v38, 0.0 }
0x1718   :  { %3679 = vadd.xlane.f32.xlu1 %v3678_v40 }
0x17a4   :  { %v3683_v42 = vpop.xlane.xlu0 %3682 }
0x17a5   :  { %v3685_v43 = vmul.f32 0.03125, %v3683_v42  ;;  %v3680_v44 = vpop.xlane.xlu1 %3679 }
0x17a6   :  { %v3684_v25 = vmul.f32 0.03125, %v3680_v44 }
0x17a7   :  { %v3687_v46 = vsub.f32 %v6650_v37, %v3685_v43 }
0x17a8   :  { %v3686_v26 = vsub.f32 %v6653_v38, %v3684_v25 }
0x17a9   :  { %v3689_v47 = vmul.f32 %v3687_v46, %v3687_v46 }
0x17aa   :  { %v3688_v48 = vmul.f32 %v3686_v26, %v3686_v26 }
0x17ab   :  { %v3693_v49 = vsel %vm461_vm5, %v3689_v47, 0.0 }
0x17ac   :  { %3694 = vadd.xlane.f32.xlu1 %v3693_v49  ;;  %v3690_v15 = vsel %vm457_vm4, %v3688_v48, 0.0  ;;  %v5200_v49 = vld [vmem:[%s6837_s16 + $0x1] ss:$0 sm:$0xff] }
0x17ad   :  { %3691 = vadd.xlane.f32.xlu0 %v3690_v15 }
0x1839   :  { %v3695_v56 = vpop.xlane.xlu1 %3694 }
0x183a   :  { %v3697_v9 = vmul.f32 0.03125, %v3695_v56  ;;  %v3692_v57 = vpop.xlane.xlu0 %3691 }
0x183b   :  { %v3696_v60 = vmul.f32 0.03125, %v3692_v57 }
0x183c   :  { %v3699_v61 = vadd.f32 1e-12, %v3697_v9 }
0x183d   :  { %v3698_v63 = vadd.f32 1e-12, %v3696_v60 }
0x183e   :  { %5872 = vrsqrt.f32 %v3699_v61 }
0x183f   :  { %5874 = vrsqrt.f32 %v3698_v63 }
0x1848   :  { %v5873_v0 = vpop.eup %5872 }
0x1849   :  { %v5875_v2 = vpop.eup %5874  ;;  %v3703_v3 = vmul.f32 %v5873_v0, %v3687_v46 }
0x184a   :  { %v3702_v5 = vmul.f32 %v5875_v2, %v3686_v26 }
0x184b   :  { %v3709_v8 = vmul.f32 %v5193_v1, %v3703_v3 }
0x184c   :  { %v3708_v10 = vmul.f32 %v5193_v1, %v3702_v5 }
0x184d   :  { %v3715_v14 = vadd.f32 %v5194_v6, %v3709_v8 }
0x184e   :  { %v3714_v11 = vadd.f32 %v5194_v6, %v3708_v10 }
0x1850   :  { %5518 = vmatprep.mubr.msk.f32.mxu1 %vm457_vm4, %v3714_v11 }
0x1851   :  { %5519 = vmatmul.mubr.msk.f32.vlgmr.msra.gmra.mrb[30].mxu1 %vm457_vm4, %v3715_v14 }
0x1924   :  { %v5520_v27 = vpop.f32.mrb[30].mxu1 }
0x1925   :  { %v3798_v28 = vadd.f32 %v5520_v27, %v5195_v24  ;;  %v3792_v29 = vpop.f32.mrb[31].mxu1 }
0x1926   :  { %v3793_v30 = vadd.f32 %v5195_v24, %v3792_v29 }
0x1927   :  { %v3804_v12 = vmul.f32 0.044715, %v3798_v28  ;;  %v3802_v26 = vmul.f32 0.5, %v3798_v28 }
0x1928   :  { %v3803_v13 = vmul.f32 0.044715, %v3793_v30  ;;  %v3801_v25 = vmul.f32 0.5, %v3793_v30 }
0x1929   :  { %v3806_v31 = vmul.f32 %v3804_v12, %v3798_v28 }
0x192a   :  { %v3805_v32 = vmul.f32 %v3803_v13, %v3793_v30 }
0x192b   :  { %v3808_v33 = vmul.f32 %v3806_v31, %v3798_v28 }
0x192c   :  { %v3807_v34 = vmul.f32 %v3805_v32, %v3793_v30 }
0x192d   :  { %v3810_v35 = vadd.f32 %v3808_v33, %v3798_v28 }
0x192e   :  { %v3809_v36 = vadd.f32 %v3807_v34, %v3793_v30 }
0x192f   :  { %v3812_v39 = vmul.f32 0.7978846, %v3810_v35 }
0x1930   :  { %v3811_v40 = vmul.f32 0.7978846, %v3809_v36 }
0x1931   :  { %5876 = vtanh.f32 %v3812_v39 }
0x1932   :  { %5878 = vtanh.f32 %v3811_v40  ;;  %v4263_v40 = vld [vmem:[%s6838_s25] sm:$0xff] }
0x193b   :  { %v5877_v42 = vpop.eup %5876 }
0x193c   :  { %v5879_v43 = vpop.eup %5878  ;;  %v3816_v44 = vadd.f32 1.0, %v5877_v42  ;;  %v4264_v42 = vld [vmem:[%s6838_s25 + $0x8] sm:$0xff] }
0x193d   :  { %v3815_v46 = vadd.f32 1.0, %v5879_v43  ;;  %v5725_v43 = vpack.c.bf16 %v4264_v42, %v4263_v40 }
0x193e   :  { %v3818_v48 = vmul.f32 %v3816_v44, %v3802_v26  ;;  %v4265_v44 = vld [vmem:[%s6838_s25 + $0x10] sm:$0xff]  ;;  %v4355_v26 = vld [vmem:[%s6839_s29] sm:$0xff] }
0x193f   :  { %v3817_v47 = vmul.f32 %v3815_v46, %v3801_v25  ;;  %5726 = vmatprep.subr.bf16.mxu1 %v5725_v43  ;;  %v4266_v25 = vld [vmem:[%s6838_s25 + $0x18] sm:$0xff] }
0x1940   :  { %5728 = vmatpush3.bf16.msra.mxu1 %v5725_v43  ;;  %v5729_v46 = vpack.c.bf16 %v4266_v25, %v4265_v44  ;;  %v4461_v44 = vld [vmem:[%s6842_s14] sm:$0xff]  ;;  %v4462_v25 = vld [vmem:[%s6842_s14 + $0x8] sm:$0xff] }
0x1941   :  { %5537 = vmatprep.mubr.msk.f32.mxu0 %vm175_vm0, %v3817_v47  ;;  %v4356_v47 = vld [vmem:[%s6839_s29 + $0x8] sm:$0xff] }
0x1942   :  { %5538 = vmatmul.mubr.msk.f32.vlgmr.msra.gmra.mrb[16].mxu0 %vm175_vm0, %v3818_v48  ;;  %5730 = vmatprep.subr.bf16.mxu1 %v5729_v46  ;;  %v5733_v48 = vpack.c.bf16 %v4356_v47, %v4355_v26  ;;  %v4463_v26 = vld [vmem:[%s6842_s14 + $0x10] sm:$0xff]  ;;  %v4464_v47 = vld [vmem:[%s6842_s14 + $0x18] sm:$0xff] }
0x1944   :  { %5732 = vmatpush3.bf16.msra.mxu1 %v5729_v46  ;;  %v5741_v46 = vpack.c.bf16 %v4462_v25, %v4461_v44 }
0x1945   :  { %5734 = vmatprep.subr.bf16.mxu1 %v5733_v48 }
0x1946   :  { %5742 = vmatprep.subr.bf16.mxu0 %v5741_v46 }
0x1947   :  { %5744 = vmatpush3.bf16.msra.mxu0 %v5741_v46 }
0x1a15   :  { %v5539_v15 = vpop.f32.mrb[16].mxu0 }
0x1a16   :  { %v3901_v50 = vadd.f32 %v5539_v15, %v6650_v37  ;;  %v3891_v51 = vpop.f32.mrb[17].mxu0 }
0x1a17   :  { %v3900_v52 = vadd.f32 %v3891_v51, %v6653_v38 }
0x1a18   :  { %v3907_v53 = vadd.f32 %v5200_v49, %v3901_v50 }
0x1a19   :  { %v3906_v54 = vadd.f32 %v5200_v49, %v3900_v52 }
0x1a1a   :  { %v3965_v55 = vrot.slane %v3907_v53, %v6224_v59  ;;  %v4069_v56 = vsel %vm461_vm5, %v3907_v53, 0.0 }
0x1a1b   :  { %v3910_v9 = vcombine.high %v3906_v54, %v3906_v54  ;;  %v3917_v57 = vrot.slane %v3906_v54, %v6224_v59  ;;  %4070 = vadd.xlane.f32.xlu1 %v4069_v56  ;;  %v4066_v60 = vsel %vm457_vm4, %v3906_v54, 0.0 }
0x1a1c   :  { %4067 = vadd.xlane.f32.xlu0 %v4066_v60  ;;  %v3966_v37 = vcombine.high %v3965_v55, %v3965_v55  ;;  %v3973_v10 = vrot.slane %v3965_v55, %v6224_v59  ;;  %v5204_v55 = vld [vmem:[%s6840_s3] ss:$0 sm:$0xff] }
0x1a1d   :  { %v3924_v61 = vrot.slane %v3910_v9, %v6224_v59  ;;  %v3925_v63 = vcombine.high %v3917_v57, %v3917_v57  ;;  %v3933_v38 = vrot.slane %v3917_v57, %v6224_v59  ;;  %v5205_v57 = vld [vmem:[%s6841_s8] ss:$0 sm:$0xff] }
0x1a1e   :  { %v3980_v11 = vrot.slane %v3966_v37, %v6224_v59  ;;  %v4357_v37 = vld [vmem:[%s6839_s29 + $0x10] sm:$0xff] }
0x1a1f   :  { %v3926_v0 = vcombine.high %v3924_v61, %v3924_v61  ;;  %v3940_v1 = vrot.slane %v3924_v61, %v6224_v59  ;;  %v3947_v2 = vrot.slane %v3925_v63, %v6224_v59 }
0x1a20   :  { %v4042_v19 = vrot.slane %v3980_v11, %v6224_v59 }
0x1a21   :  { %v3954_v3 = vrot.slane %v3926_v0, %v6224_v59  ;;  %v3956_v5 = vcombine.high %v3940_v1, %v3940_v1  ;;  %v3981_v6 = vcombine.low %v3933_v38, %v3947_v2  ;;  %v5201_v8 = vcombine.high %v3933_v38, %v3947_v2  ;;  %v4358_v0 = vld [vmem:[%s6839_s29 + $0x18] sm:$0xff] }
0x1a22   :  { %v4003_v14 = vrot.slane %v3940_v1, %v6224_v59  ;;  %v4057_v27 = vrot.slane %v4042_v19, %v6224_v59 }
0x1a23   :  { %v3958_v16 = vcombine.high %v3954_v3, %v3954_v3  ;;  %v3989_v17 = vrot.slane %v3981_v6, %v6224_v59  ;;  %v3996_v18 = vrot.slane %v5201_v8, %v6224_v59  ;;  %v4020_v58 = vcombine.low %v3954_v3, %v3956_v5 }
0x1a24   :  { %v4018_v21 = vrot.slane %v4003_v14, %v6224_v59  ;;  %v5737_v3 = vpack.c.bf16 %v4358_v0, %v4357_v37 }
0x1a25   :  { %v4004_v45 = vcombine.low %v3989_v17, %v3996_v18  ;;  %v4021_v62 = vcombine.low %v3958_v16, %v3973_v10  ;;  %v4028_v22 = vrot.slane %v4020_v58, %v6224_v59 }
0x1a27   :  { %v4011_v20 = vrot.slane %v4004_v45, %v6224_v59  ;;  %v4035_v23 = vrot.slane %v4021_v62, %v6224_v59 }
0x1a29   :  { %v4019_v41 = vcombine.low %v4011_v20, %v4018_v21  ;;  %v4043_v24 = vcombine.low %v4028_v22, %v4035_v23 }
0x1a2b   :  { %v4050_v28 = vrot.slane %v4043_v24, %v6224_v59  ;;  %5202 = vst.msk [vmem:[%s6152_s4 + $0x20] sm:$0x1f] %vm426_vm6, %v4019_v41 }
0x1a2d   :  { %v4058_v29 = vcombine.low %v4050_v28, %v4057_v27 }
0x1a2f   :  { %5203 = vst.msk [vmem:[%s6152_s4 + $0x28] sm:$0x1f] %vm426_vm6, %v4058_v29  ;;  %s6847_s4 = sld [smem:[#allocation21_spill]] }
0x1aa8   :  { %v4071_v30 = vpop.xlane.xlu1 %4070 }
0x1aa9   :  { %v4073_v12 = vmul.f32 0.03125, %v4071_v30  ;;  %v4068_v13 = vpop.xlane.xlu0 %4067 }
0x1aaa   :  { %v4072_v31 = vmul.f32 0.03125, %v4068_v13 }
0x1aab   :  { %v4075_v32 = vsub.f32 %v3907_v53, %v4073_v12 }
0x1aac   :  { %v4074_v33 = vsub.f32 %v3906_v54, %v4072_v31 }
0x1aad   :  { %v4077_v34 = vmul.f32 %v4075_v32, %v4075_v32 }
0x1aae   :  { %v4076_v35 = vmul.f32 %v4074_v33, %v4074_v33 }
0x1aaf   :  { %v4081_v36 = vsel %vm461_vm5, %v4077_v34, 0.0 }
0x1ab0   :  { %4082 = vadd.xlane.f32.xlu1 %v4081_v36  ;;  %v4078_v39 = vsel %vm457_vm4, %v4076_v35, 0.0 }
0x1ab1   :  { %4079 = vadd.xlane.f32.xlu0 %v4078_v39 }
0x1b3d   :  { %v4083_v49 = vpop.xlane.xlu1 %4082 }
0x1b3e   :  { %v4085_v15 = vmul.f32 0.03125, %v4083_v49  ;;  %v4080_v50 = vpop.xlane.xlu0 %4079  ;;  %v4465_v49 = vld [vmem:[%s6842_s14 + $0x20] sm:$0xff] }
0x1b3f   :  { %v4084_v51 = vmul.f32 0.03125, %v4080_v50  ;;  %v4467_v50 = vld [vmem:[%s6842_s14 + $0x30] sm:$0xff] }
0x1b40   :  { %v4087_v52 = vadd.f32 1e-12, %v4085_v15  ;;  %v4466_v15 = vld [vmem:[%s6842_s14 + $0x28] sm:$0xff] }
0x1b41   :  { %v4086_v53 = vadd.f32 1e-12, %v4084_v51  ;;  %v4468_v51 = vld [vmem:[%s6842_s14 + $0x38] sm:$0xff] }
0x1b42   :  { %5880 = vrsqrt.f32 %v4087_v52  ;;  %v5753_v52 = vpack.c.bf16 %v4468_v51, %v4467_v50 }
0x1b43   :  { %5882 = vrsqrt.f32 %v4086_v53 }
0x1b4c   :  { %v5881_v54 = vpop.eup %5880 }
0x1b4d   :  { %v5883_v56 = vpop.eup %5882  ;;  %v4091_v9 = vmul.f32 %v5881_v54, %v4075_v32 }
0x1b4e   :  { %v4090_v60 = vmul.f32 %v5883_v56, %v4074_v33 }
0x1b4f   :  { %v4099_v61 = vmul.f32 %v5204_v55, %v4091_v9 }
0x1b50   :  { %v4098_v63 = vmul.f32 %v5204_v55, %v4090_v60  ;;  %v5210_v55 = vld [vmem:[%s6843_s19] ss:$0 sm:$0xff] }
0x1b51   :  { %v4107_v38 = vadd.f32 %v5205_v57, %v4099_v61 }
0x1b52   :  { %v4106_v1 = vadd.f32 %v5205_v57, %v4098_v63 }
0x1b53   :  { %v4165_v2 = vrot.slane %v4107_v38, %v6224_v59  ;;  %v4757_v5 = vrot.slane %v4107_v38, 5 }
0x1b54   :  { %v4117_v6 = vrot.slane %v4106_v1, %v6224_v59  ;;  %5548 = vmatprep.mubr.msk.f32.mxu1 %vm457_vm4, %v4106_v1  ;;  %v4110_v8 = vcombine.high %v4106_v1, %v4106_v1  ;;  %v4756_v10 = vrot.slane %v4106_v1, 5 }
0x1b55   :  { %5549 = vmatmul.mubr.msk.f32.vlgmr.msra.gmra.mrb[32].mxu1 %vm457_vm4, %v4107_v38  ;;  %v4166_v16 = vcombine.high %v4165_v2, %v4165_v2  ;;  %v4173_v23 = vrot.slane %v4165_v2, %v6224_v59 }
0x1b56   :  { %v4125_v11 = vcombine.high %v4117_v6, %v4117_v6  ;;  %v4124_v14 = vrot.slane %v4110_v8, %v6224_v59  ;;  %5736 = vmatpush3.bf16.msra.mxu1 %v5733_v48  ;;  %5559 = vmatprep.mubr.msk.f32.mxu1 %vm457_vm4, %v4106_v1  ;;  %v6729_v17 = vsel %vm4703_vm11, %v4756_v10, %v4757_v5 }
0x1b57   :  { %5738 = vmatprep.subr.bf16.mxu1 %v5737_v3  ;;  %v4133_v18 = vrot.slane %v4117_v6, %v6224_v59  ;;  %v4180_v41 = vrot.slane %v4166_v16, %v6224_v59  ;;  %v5745_v48 = vpack.c.bf16 %v4464_v47, %v4463_v26 }
0x1b58   :  { %v4147_v58 = vrot.slane %v4125_v11, %v6224_v59  ;;  %v4126_v45 = vcombine.high %v4124_v14, %v4124_v14  ;;  %v4140_v62 = vrot.slane %v4124_v14, %v6224_v59 }
0x1b59   :  { %v4242_v31 = vrot.slane %v4180_v41, %v6224_v59  ;;  %5746 = vmatprep.subr.bf16.mxu0 %v5745_v48 }
0x1b5a   :  { %v4181_v19 = vcombine.low %v4133_v18, %v4147_v58  ;;  %v5206_v20 = vcombine.high %v4133_v18, %v4147_v58  ;;  %v4154_v21 = vrot.slane %v4126_v45, %v6224_v59  ;;  %v4156_v22 = vcombine.high %v4140_v62, %v4140_v62  ;;  %5740 = vmatpush3.bf16.msra.mxu1 %v5737_v3  ;;  %v5207_v3 = vld [vmem:[%s6844_s24] ss:$0 sm:$0xff] }
0x1b5b   :  { %v4203_v24 = vrot.slane %v4140_v62, %v6224_v59  ;;  %5581 = vmatprep.subr.mxu1 %v5990_v7  ;;  %v4257_v42 = vrot.slane %v4242_v31, %v6224_v59  ;;  %5748 = vmatpush3.bf16.msra.mxu0 %v5745_v48 }
0x1b5c   :  { %v4189_v27 = vrot.slane %v4181_v19, %v6224_v59  ;;  %v4196_v28 = vrot.slane %v5206_v20, %v6224_v59  ;;  %v4158_v29 = vcombine.high %v4154_v21, %v4154_v21  ;;  %v4220_v30 = vcombine.low %v4154_v21, %v4156_v22 }
0x1b5d   :  { %5560 = vmatmul.mubr.msk.f32.vlgmr.msra.gmra.mrb[34].mxu1 %vm457_vm4, %v4107_v38  ;;  %v4218_v33 = vrot.slane %v4203_v24, %v6224_v59  ;;  %v5213_v24 = vld [vmem:[#allocation2] ss:$0 sm:$0xff] }
0x1b5e   :  { %v4204_v12 = vcombine.low %v4189_v27, %v4196_v28  ;;  %v4221_v13 = vcombine.low %v4158_v29, %v4173_v23  ;;  %5582 = vmatpush3.msk.msra.mxu1 %vm263_vm2, %v4106_v1  ;;  %5583 = vmatprep.mubr.msk.f32.mxu1 %vm5991_vm7, %v5990_v7  ;;  %v4228_v34 = vrot.slane %v4220_v30, %v6224_v59 }
0x1b5f   :  { %5586 = vmatprep.subr.mxu1 %v5990_v7 }
0x1b60   :  { %v4211_v32 = vrot.slane %v4204_v12, %v6224_v59  ;;  %v4235_v35 = vrot.slane %v4221_v13, %v6224_v59 }
0x1b62   :  { %v4219_v36 = vcombine.low %v4211_v32, %v4218_v33  ;;  %v4243_v39 = vcombine.low %v4228_v34, %v4235_v35 }
0x1b64   :  { %v4250_v40 = vrot.slane %v4243_v39, %v6224_v59  ;;  %4261 = vst.msk [vmem:[%s6162_s22] sm:$0x1f] %vm426_vm6, %v4219_v36  ;;  %v5749_v59 = vpack.c.bf16 %v4466_v15, %v4465_v49 }
0x1b66   :  { %v4258_v43 = vcombine.low %v4250_v40, %v4257_v42  ;;  %5750 = vmatprep.subr.bf16.mxu0 %v5749_v59 }
0x1b67   :  { %5752 = vmatpush3.bf16.msra.mxu0 %v5749_v59 }
0x1b68   :  { %4262 = vst.msk [vmem:[%s6162_s22 + $0x8] sm:$0x1f] %vm426_vm6, %v4258_v43  ;;  %5754 = vmatprep.subr.bf16.mxu0 %v5753_v52  ;;  %s5028_s22 = sshll.u32 %s5997_s18, 4  ;;  %s5029_s22 = int_to_ptr.vmem [resolvable:$true] %s5028_s22 }
0x1b69   :  { %s5906_s23 = scalar_lea.vmem %s5029_s22, 32  ;;  %p5911_p1 = scmp.lt.s32.totalorder %s5029_s22, %s5029_s22 }
0x1b6a   :  { %p5907_p0 = scmp.ne.s32.totalorder %s5029_s22, %s5906_s23  ;;  %p5912_p2 = scmp.lt.s32.totalorder %s5906_s23, %s5906_s23 }
0x1b6b   :  { %5756 = vmatpush3.bf16.msra.mxu0 %v5753_v52 }
0x1b6c   :  { %5763 = vmatprep.subr.bf16.mxu0 %v5988_v4  ;;  %p5913_p3 = por %p5912_p2, %p5911_p1 }
0x1b6e   :  { %p5914_p4 = pnand %p5913_p3, %p5907_p0 }
0x1c28   :  { %v5550_v53 = vpop.f32.mrb[32].mxu1 }
0x1c29   :  { %v4344_v54 = vpop.f32.mrb[33].mxu1  ;;  %v4350_v10 = vadd.f32 %v5550_v53, %v5207_v3 }
0x1c2a   :  { %v4345_v11 = vadd.f32 %v5207_v3, %v4344_v54 }
0x1c30   :  { %v5561_v56 = vpop.f32.mrb[34].mxu1 }
0x1c31   :  { %v4438_v9 = vadd.f32 %v5561_v56, %v5210_v55  ;;  %v4432_v57 = vpop.f32.mrb[35].mxu1 }
0x1c32   :  { %v4433_v60 = vadd.f32 %v5210_v55, %v4432_v57 }
0x1c33   :  { %v4444_v61 = vmul.f32 0.044715, %v4438_v9  ;;  %v4442_v18 = vmul.f32 0.5, %v4438_v9 }
0x1c34   :  { %v4443_v63 = vmul.f32 0.044715, %v4433_v60  ;;  %v4441_v45 = vmul.f32 0.5, %v4433_v60 }
0x1c35   :  { %v4446_v37 = vmul.f32 %v4444_v61, %v4438_v9 }
0x1c36   :  { %v4445_v0 = vmul.f32 %v4443_v63, %v4433_v60 }
0x1c37   :  { %v4448_v38 = vmul.f32 %v4446_v37, %v4438_v9 }
0x1c38   :  { %v4447_v1 = vmul.f32 %v4445_v0, %v4433_v60 }
0x1c39   :  { %v4450_v2 = vadd.f32 %v4448_v38, %v4438_v9 }
0x1c3a   :  { %v4449_v5 = vadd.f32 %v4447_v1, %v4433_v60 }
0x1c3b   :  { %v4452_v6 = vmul.f32 0.7978846, %v4450_v2 }
0x1c3c   :  { %v4451_v8 = vmul.f32 0.7978846, %v4449_v5 }
0x1c3d   :  { %5884 = vtanh.f32 %v4452_v6 }
0x1c3e   :  { %5886 = vtanh.f32 %v4451_v8 }
0x1c3f   :  { %5888 = vtanh.f32 %v4350_v10 }
0x1c40   :  { %5890 = vtanh.f32 %v4345_v11 }
0x1c47   :  { %v5885_v14 = vpop.eup %5884 }
0x1c48   :  { %v5887_v16 = vpop.eup %5886  ;;  %v4456_v58 = vadd.f32 1.0, %v5885_v14 }
0x1c49   :  { %v4455_v62 = vadd.f32 1.0, %v5887_v16  ;;  %v5889_v20 = vpop.eup %5888 }
0x1c4a   :  { %v4458_v19 = vmul.f32 %v4456_v58, %v4442_v18  ;;  %v5891_v22 = vpop.eup %5890 }
0x1c4b   :  { %v4457_v21 = vmul.f32 %v4455_v62, %v4441_v45 }
0x1c4c   :  { %v4460_v23 = vmul.f32 %v5889_v20, %v4458_v19 }
0x1c4d   :  { %v4459_v41 = vmul.f32 %v5891_v22, %v4457_v21  ;;  %v4839_v21 = vld [vmem:[%s6845_s6] sm:$0xff]  ;;  %v4840_v22 = vld [vmem:[%s6845_s6 + $0x8] sm:$0xff] }
0x1c4f   :  { %5578 = vmatprep.mubr.msk.f32.mxu0 %vm175_vm0, %v4459_v41  ;;  %v4841_v41 = vld [vmem:[%s6845_s6 + $0x10] sm:$0xff] }
0x1c50   :  { %5579 = vmatmul.mubr.msk.f32.vlgmr.msra.gmra.mrb[18].mxu0 %vm175_vm0, %v4460_v23  ;;  %v5758_v23 = vpack.c.bf16 %v4840_v22, %v4839_v21  ;;  %vm4853_vm0 = vcmask 1041409  }
0x1c51   :  { %5606 = vmatprep.mubr.msk.f32.mxu0 %vm5991_vm7, %v5990_v7 }
0x1d23   :  { %v5580_v27 = vpop.f32.mrb[18].mxu0 }
0x1d24   :  { %v4554_v28 = vadd.f32 %v5580_v27, %v5213_v24  ;;  %v4548_v29 = vpop.f32.mrb[19].mxu0 }
0x1d25   :  { %v4549_v30 = vadd.f32 %v5213_v24, %v4548_v29 }
0x1d26   :  { %v4687_v12 = vsel %vm4686_vm12, %v4554_v28, -inf }
0x1d27   :  { %v4558_v13 = vsel %vm4557_vm13, %v4549_v30, -inf  ;;  %v4685_v31 = vsel %vm4684_vm14, %v4549_v30, -inf }
0x1d28   :  { %v4559_v32 = vrot.slane %v4558_v13, 4  ;;  %v4688_v33 = vmax.f32 %v4685_v31, %v4687_v12 }
0x1d2a   :  { %v4560_v34 = vmax.f32 %v4558_v13, %v4559_v32  ;;  %v4689_v35 = vrot.slane %v4688_v33, 4  ;;  %v4929_v13 = vld [vmem:[%s6846_s12 + $0x8] sm:$0xff]  ;;  %v5220_v32 = vld [vmem:[%s6847_s4] ss:$0 sm:$0xff] }
0x1d2c   :  { %v4561_v36 = vrot.slane %v4560_v34, 2  ;;  %v4690_v39 = vmax.f32 %v4688_v33, %v4689_v35 }
0x1d2e   :  { %v4562_v40 = vmax.f32 %v4560_v34, %v4561_v36  ;;  %v4691_v42 = vrot.slane %v4690_v39, 2 }
0x1d30   :  { %v4563_v43 = vrot.slane %v4562_v40, 1  ;;  %v4692_v44 = vmax.f32 %v4690_v39, %v4691_v42 }
0x1d32   :  { %v4564_v25 = vmax.f32 %v4562_v40, %v4563_v43  ;;  %v4693_v46 = vrot.slane %v4692_v44, 1 }
0x1d34   :  { %v4565_v26 = vsub.f32 %v4549_v30, %v4564_v25  ;;  %v4694_v47 = vmax.f32 %v4692_v44, %v4693_v46 }
0x1d36   :  { %v4566_v48 = vmul.f32 1.442695, %v4565_v26  ;;  %v4695_v49 = vsub.f32 %v4549_v30, %v4694_v47  ;;  %v4696_v15 = vsub.f32 %v4554_v28, %v4694_v47 }
0x1d38   :  { %5892 = vpow2.f32 %v4566_v48  ;;  %v4697_v59 = vmul.f32 1.442695, %v4695_v49  ;;  %v4699_v50 = vmul.f32 1.442695, %v4696_v15 }
0x1d3a   :  { %5894 = vpow2.f32 %v4697_v59 }
0x1d3b   :  { %5896 = vpow2.f32 %v4699_v50 }
0x1d42   :  { %v5893_v51 = vpop.eup %5892 }
0x1d43   :  { %v4568_v52 = vsel %vm4557_vm13, %v5893_v51, 0.0 }
0x1d44   :  { %v5895_v53 = vpop.eup %5894  ;;  %v4569_v54 = vrot.slane %v4568_v52, 4 }
0x1d45   :  { %v5897_v55 = vpop.eup %5896  ;;  %v4704_v56 = vrot.slane %v5895_v53, 5 }
0x1d46   :  { %v4570_v9 = vadd.f32 %v4569_v54, %v4568_v52  ;;  %v4705_v57 = vrot.slane %v5897_v55, 5 }
0x1d48   :  { %v4571_v60 = vrot.slane %v4570_v9, 2  ;;  %v4706_v61 = vsel %vm4703_vm11, %v4704_v56, %v4705_v57 }
0x1d49   :  { %v4708_v63 = vsel %vm4557_vm13, %v4706_v61, 0.0 }
0x1d4a   :  { %v4572_v37 = vadd.f32 %v4571_v60, %v4570_v9  ;;  %v4709_v0 = vrot.slane %v4708_v63, 4 }
0x1d4c   :  { %v4573_v38 = vrot.slane %v4572_v37, 1  ;;  %v4710_v1 = vadd.f32 %v4709_v0, %v4708_v63 }
0x1d4e   :  { %v4574_v2 = vadd.f32 %v4573_v38, %v4572_v37  ;;  %v4711_v3 = vrot.slane %v4710_v1, 2 }
0x1d50   :  { %5898 = vrcp.f32 %v4574_v2  ;;  %v4712_v5 = vadd.f32 %v4711_v3, %v4710_v1 }
0x1d52   :  { %v4713_v6 = vrot.slane %v4712_v5, 1 }
0x1d54   :  { %v4714_v8 = vadd.f32 %v4713_v6, %v4712_v5 }
0x1d56   :  { %5900 = vrcp.f32 %v4714_v8 }
0x1d5a   :  { %v5899_v10 = vpop.eup %5898 }
0x1d5b   :  { %v4576_v11 = vmul.f32 %v5899_v10, %v5893_v51 }
0x1d5d   :  { %4577 = vxpose.xlu0.b32.start.end [1/1] (short) (narrow) %v4576_v11, 8  ;;  %4834 = vst.msk [vmem:[%s6172_s10] sm:$0x1f] %vm4557_vm13, %v4576_v11 }
0x1d60   :  { %v5901_v14 = vpop.eup %5900 }
0x1d61   :  { %v4716_v16 = vmul.f32 %v5901_v14, %v5895_v53  ;;  %v4717_v18 = vmul.f32 %v5901_v14, %v5897_v55 }
0x1d63   :  { %v4720_v58 = vrot.slane %v4716_v16, 5  ;;  %v4721_v45 = vrot.slane %v4717_v18, 5 }
0x1d65   :  { %v4722_v62 = vsel %vm4703_vm11, %v4720_v58, %v4721_v45 }
0x1d66   :  { %4724 = vxpose.xlu1.b32.start.end [1/1] (short) (narrow) %v4722_v62, 8  ;;  %4835 = vst.msk [vmem:[%s6172_s10 + $0x8] sm:$0x1f] %vm4557_vm13, %v4722_v62 }
0x1ddd   :  { %v4593_v19 = vpop.trf.xlu0 }
0x1dde   :  { %5584 = vmatmul.mubr.msk.f32.vlgmr.msra.gmra.mrb[36].mxu1 %vm914_vm10, %v4593_v19 }
0x1ddf   :  { %5587 = vmatpush3.msk.msra.mxu1 %vm263_vm2, %v6729_v17  ;;  %5588 = vmatprep.mubr.msk.f32.mxu1 %vm5991_vm7, %v5990_v7  ;;  %v4842_v17 = vld [vmem:[%s6845_s6 + $0x18] sm:$0xff] }
0x1de0   :  { %5757 = vmatprep.subr.bf16.mxu1 %v5988_v4  ;;  %v5761_v24 = vpack.c.bf16 %v4842_v17, %v4841_v41 }
0x1de6   :  { %v4740_v20 = vpop.trf.xlu1 }
0x1de7   :  { %5589 = vmatmul.mubr.msk.f32.vlgmr.msra.gmra.mrb[38].mxu1 %vm914_vm10, %v4740_v20 }
0x1de8   :  { %5599 = vmatprep.mubr.msk.f32.mxu1 %vm5991_vm7, %v5990_v7  ;;  %5759 = vmatpush3.bf16.msra.mxu1 %v5758_v23 }
0x1de9   :  { %5760 = vmatprep.subr.bf16.mxu1 %v5988_v4  ;;  %v4928_v4 = vld [vmem:[%s6846_s12] sm:$0xff] }
0x1dea   :  { %v5764_v31 = vpack.c.bf16 %v4929_v13, %v4928_v4 }
0x1dec   :  { %5762 = vmatpush3.bf16.msra.mxu1 %v5761_v24  ;;  %5765 = vmatpush3.bf16.msra.mxu0 %v5764_v31 }
0x1eb1   :  { %v4680_v27 = vpop.f32.mrb[36].mxu1 }
0x1eb2   :  { %4837 = vst.msk [vmem:[#allocation3] sm:$0x1] %vm4836_vm15, %v4680_v27  ;;  %v5585_v28 = vpop.f32.mrb[37].mxu1 }
0x1eba   :  { %v4830_v29 = vpop.f32.mrb[38].mxu1 }
0x1ebb   :  { %4838 = vst.msk [vmem:[#allocation3 + $0x1] sm:$0x1] %vm4836_vm15, %v4830_v29  ;;  %v4852_v7 = vrot.slane %v4830_v29, 7  ;;  %v5590_v30 = vpop.f32.mrb[39].mxu1 }
0x1ebd   :  { %v4854_v12 = vsel %vm4853_vm0, %v4852_v7, %v4680_v27 }
0x1ebe   :  { %5600 = vmatmul.mubr.msk.f32.vlgmr.msra.gmra.mrb[40].mxu1 %vm457_vm4, %v4854_v12 }
0x1f91   :  { %v4923_v33 = vpop.f32.mrb[40].mxu1 }
0x1f92   :  { %v4924_v34 = vadd.f32 %v5220_v32, %v4923_v33  ;;  %v5601_v35 = vpop.f32.mrb[41].mxu1 }
0x1f94   :  { %v4927_v36 = vmax.f32 %v4924_v34, 0.0 }
0x1f96   :  { %5607 = vmatmul.mubr.msk.f32.vlgmr.msra.gmra.mrb[20].mxu0 %vm697_vm8, %v4927_v36 }
0x1f97   :  { %5917 = shalt.err (!%p5914_p4)
}
0x1f98   :  { %s5918_s26 = scalar_lea.hbm %s6167_s1, 32 }
0x1f99   :  { %p5919_p5 = scmp.ne.s32.totalorder %s6167_s1, %s5918_s26  ;;  %p5922_p6 = scmp.lt.u32.totalorder %s5918_s26, %s6167_s1 }
0x1f9b   :  { %p5924_p7 = pnand %p5922_p6, %p5919_p5 }
0x1f9d   :  { %5927 = shalt.err (!%p5924_p7)
}
0x1f9e   :  { %s5998_s28 = smov 16   ;;  %s6848_s2 = sld [smem:[#allocation23_spill]]  ;;  %vm5015_vm1 = vcmask 148480  }
0x1f9f   :  { %s5999_s10 = smov 1   ;;  %s6000_s27 = smov [#allocation5]  }
0x1fa0   :  { %5034 = dma.vmem_to_hbm [thread:$0]  %s5029_s22, 32, %s6167_s1, [#allocation4], %s5998_s28, %s5998_s28, %s5999_s10  }
0x1fa1   :  { %s5043_s7 = sshll.u32 %s6000_s27, 4  ;;  %s5044_s7 = int_to_ptr.vmem [resolvable:$true] %s5043_s7 }
0x1fa2   :  { %s5928_s11 = scalar_lea.vmem %s5044_s7, 32  ;;  %p5933_p9 = scmp.lt.s32.totalorder %s5044_s7, %s5044_s7 }
0x1fa3   :  { %p5929_p8 = scmp.ne.s32.totalorder %s5044_s7, %s5928_s11  ;;  %p5934_p10 = scmp.lt.s32.totalorder %s5928_s11, %s5928_s11 }
0x1fa4   :  { %v5222_v39 = vld [vmem:[%s6848_s2] ss:$0 sm:$0xff] }
0x1fa5   :  { %p5935_p11 = por %p5934_p10, %p5933_p9 }
0x1fa7   :  { %p5936_p12 = pnand %p5935_p11, %p5929_p8 }
0x2069   :  { %v5006_v40 = vpop.f32.mrb[20].mxu0 }
0x206a   :  { %v5007_v42 = vadd.f32 %v5222_v39, %v5006_v40  ;;  %v5608_v43 = vpop.f32.mrb[21].mxu0 }
0x206c   :  { %v5010_v44 = vsub.f32 0.0, %v5007_v42 }
0x206e   :  { %v5011_v25 = vmul.f32 1.442695, %v5010_v44 }
0x2070   :  { %5902 = vpow2.f32 %v5011_v25 }
0x207a   :  { %v5903_v46 = vpop.eup %5902 }
0x207b   :  { %v5013_v26 = vadd.f32 1.0, %v5903_v46 }
0x207d   :  { %5904 = vrcp.f32 %v5013_v26 }
0x2087   :  { %v5905_v47 = vpop.eup %5904 }
0x2088   :  { %5016 = vst.msk [vmem:[#allocation5] sm:$0x3] %vm5015_vm1, %v5905_v47 }
0x2089   :  { %5939 = shalt.err (!%p5936_p12)
}
0x208a   :  { %s5940_s1 = scalar_lea.hbm %s6177_s15, 32 }
0x208b   :  { %p5941_p13 = scmp.ne.s32.totalorder %s6177_s15, %s5940_s1  ;;  %p5944_p0 = scmp.lt.u32.totalorder %s5940_s1, %s6177_s15 }
0x208d   :  { %p5946_p1 = pnand %p5944_p0, %p5941_p13 }
0x208f   :  { %5949 = shalt.err (!%p5946_p1)
}
0x2090   :  { %5046 = dma.vmem_to_hbm [thread:$0]  %s5044_s7, 32, %s6177_s15, [#allocation6]  }
0x2091   :  { %5950 = dma.done.wait [#allocation4], 32  }
0x2092   :  { %5951 = vsyncadd [#allocation4], 4294967264 }
0x2093   :  { %5952 = dma.done.wait [#allocation6], 32  }
0x2094   :  { %5953 = vsyncadd [#allocation6], 4294967264 }
0x2095   :  { %5061 = vsyncpa [#allocation4], 1 }
0x2096   :  { %5062 = vsyncpa [#allocation6], 1 }

</bundles_post_ra>
